<compile_context>
chip_gen: v6e
topology: v6e:2x2x1
jax: 0.10.0
libtpu: 0.0.40
codegen_flags: <defaults>
</compile_context>

<pallas_src>
import jax
import jax.numpy as jnp
from jax.experimental import pallas as pl
from jax.experimental.pallas import tpu as pltpu

NODE_IN = 16
EDGE_IN = 19
NUM_MP = 3
NOUT = max(2 * NODE_IN, 32)   # 32
NF = NOUT                     # unified (padded) node-feature width inside the kernel
LEAK = 0.1                    # model_config leak
NODE_LEAK = 0.12              # NodeModel LeakyReLU(0.12)
BN_EPS = 1e-5


# ---------------------------------------------------------------------------
# Fused forward kernel: BN + 3x NNConv + MetaLayer predictor + log_softmax
# (pure straight-line value code; every gather/scatter is an MXU matmul)
# ---------------------------------------------------------------------------
def _make_forward_kernel(n_params):
    def kernel(*args):
        (src_e1_ref, dst_e1_ref, src_1e_ref, dst_1e_ref,
         x_ref, e_ref, r_ref, s_ref) = args[:8]
        prm = args[8:8 + n_params]
        o_ref = args[8 + n_params]

        n_nodes = x_ref.shape[0]
        n_edges = e_ref.shape[0]
        f32 = jnp.float32

        def dot(a, b):
            return jnp.dot(a, b, preferred_element_type=f32)

        def lrelu(v, a):
            return jnp.where(v > 0, v, a * v)

        def bn(v, g_ref, b_ref):
            m = jnp.mean(v, axis=0, keepdims=True)
            var = jnp.mean((v - m) ** 2, axis=0, keepdims=True)   # biased variance
            return (v - m) * jax.lax.rsqrt(var + BN_EPS) * g_ref[...] + b_ref[...]

        # ----- fused BatchNorm1d (training-mode batch statistics) -----
        e_bn = bn(e_ref[...], prm[2], prm[3])       # (E, 19)
        x0 = bn(x_ref[...], prm[0], prm[1])         # (N, 32); padded cols stay exactly 0

        # ----- one-hot edge-index matrices, built in VMEM (no HBM traffic) -----
        iota_en = jax.lax.broadcasted_iota(jnp.int32, (n_edges, n_nodes), 1)
        iota_ne = jax.lax.broadcasted_iota(jnp.int32, (n_nodes, n_edges), 0)
        oh_src_en = (src_e1_ref[...] == iota_en).astype(f32)   # (E,N) gather x[src]/x[row]
        oh_dst_en = (dst_e1_ref[...] == iota_en).astype(f32)   # (E,N) gather x[col]
        oh_dst_ne = (dst_1e_ref[...] == iota_ne).astype(f32)   # (N,E) scatter-add to dst
        oh_src_ne = (src_1e_ref[...] == iota_ne).astype(f32)   # (N,E) scatter-mean over row

        Rm = r_ref[...]   # (32, 1024) kron(I_32, ones(1,32))
        Sm = s_ref[...]   # (1024, 32) tile(I_32, (32,1))

        # ----- one NNConv message-passing layer (aggr='add') -----
        def nnconv(x_in, w1, b1, w2, b2, root, bias):
            # edge network: Lin(19,32)+LReLU, then one lane-dense Lin(32, 32*32)+LReLU
            h1 = lrelu(dot(e_bn, w1[...]) + b1[...], LEAK)          # (E, 32)
            h2 = lrelu(dot(h1, w2[...]) + b2[...], LEAK)            # (E, 1024)
            x_src = dot(oh_src_en, x_in)                            # (E, 32)  gather x[src]
            x_rep = dot(x_src, Rm)                                  # (E, 1024) replicate
            msg = dot(x_rep * h2, Sm)                               # (E, 32)  per-edge W(e)
            # out = scatter_add(msg, dst) + x @ root + bias         (all MXU)
            return dot(oh_dst_ne, msg) + dot(x_in, root[...]) + bias[...]

        x1 = nnconv(x0, *prm[4:10])     # layer 0 (padded 16->32 weights, exact)
        x2 = nnconv(x1, *prm[10:16])    # layer 1
        x3 = nnconv(x2, *prm[16:22])    # layer 2  -> node features (N, 32)

        # ----- MetaLayer predictor -----
        x_row = dot(oh_src_en, x3)      # x[edge_index[0]]
        x_col = dot(oh_dst_en, x3)      # x[edge_index[1]]

        wa1, wb1, wc1, eb1, ew2, eb2, ew3, eb3, ew4, eb4, ew5, eb5 = prm[22:34]
        # EdgeModel MLP; first weight split so cat([x_row, x_col, e]) @ W1 needs no concat
        h = lrelu(dot(x_row, wa1[...]) + dot(x_col, wb1[...]) + dot(e_bn, wc1[...])
                  + eb1[...], LEAK)
        h = lrelu(dot(h, ew2[...]) + eb2[...], LEAK)
        h = lrelu(dot(h, ew3[...]) + eb3[...], LEAK)
        h = lrelu(dot(h, ew4[...]) + eb4[...], LEAK)
        e_pred = dot(h, ew5[...]) + eb5[...]                        # (E, 2)

        # NodeModel: scatter_mean(cat([x[col], e_pred]), row, dim_size=N) -> MLP.
        # cat is avoided by splitting Lin(34,16) into a (32,16) and a (2,16) half (exact).
        cnt = jnp.sum(oh_src_ne, axis=1, keepdims=True)             # (N, 1) edges per row
        inv = pl.reciprocal(jnp.maximum(cnt, 1.0), approx=False)
        sm_a = dot(oh_src_ne, x_col) * inv                          # (N, 32) mean of x[col]
        sm_b = dot(oh_src_ne, e_pred) * inv                         # (N, 2)  mean of e_pred

        nw1a, nw1b, nb1, nw2, nb2 = prm[34:39]
        hn = lrelu(dot(sm_a, nw1a[...]) + dot(sm_b, nw1b[...]) + nb1[...], NODE_LEAK)
        logits = dot(hn, nw2[...]) + nb2[...]                       # (N, 2)

        # log_softmax over dim=1
        mx = jnp.max(logits, axis=1, keepdims=True)
        lse = mx + jnp.log(jnp.sum(jnp.exp(logits - mx), axis=1, keepdims=True))
        o_ref[...] = logits - lse

    return kernel


# ---------------------------------------------------------------------------
# Parameter init (deterministic, PyTorch-Linear-like bounds, torch-natural shapes)
# ---------------------------------------------------------------------------
def _linear(key, fan_in, fan_out):
    kw, kb = jax.random.split(key)
    bound = 1.0 / (fan_in ** 0.5)
    w = jax.random.uniform(kw, (fan_in, fan_out), jnp.float32, -bound, bound)
    b = jax.random.uniform(kb, (1, fan_out), jnp.float32, -bound, bound)
    return w, b


def init_params(key):
    keys = iter(jax.random.split(key, 32))
    params = {
        'bn_node': {'gamma': jnp.ones((1, NODE_IN), jnp.float32),
                    'beta': jnp.zeros((1, NODE_IN), jnp.float32)},
        'bn_edge': {'gamma': jnp.ones((1, EDGE_IN), jnp.float32),
                    'beta': jnp.zeros((1, EDGE_IN), jnp.float32)},
    }
    mp = []
    in_c = NODE_IN
    for _ in range(NUM_MP):
        out_c = NOUT
        w1, b1 = _linear(next(keys), EDGE_IN, in_c)            # Lin(edge_in, in_c)
        w2, b2 = _linear(next(keys), in_c, in_c * out_c)       # Lin(in_c, in_c*out_c)
        krw, krb = jax.random.split(next(keys))
        bound = 1.0 / (in_c ** 0.5)
        root = jax.random.uniform(krw, (in_c, out_c), jnp.float32, -bound, bound)
        bias = jax.random.uniform(krb, (1, out_c), jnp.float32, -bound, bound)
        mp.append({'w1': w1, 'b1': b1, 'w2': w2, 'b2': b2, 'root': root, 'bias': bias})
        in_c = out_c
    params['mp'] = mp

    # EdgeModel (inferred, see TODO at top): Lin(2*32+19,64)->...->Lin(8,2), LeakyReLU(0.1)
    w1, eb1 = _linear(next(keys), 2 * NOUT + EDGE_IN, 64)
    em = {'wa1': w1[:NOUT], 'wb1': w1[NOUT:2 * NOUT], 'wc1': w1[2 * NOUT:], 'b1': eb1}
    em['w2'], em['b2'] = _linear(next(keys), 64, 32)
    em['w3'], em['b3'] = _linear(next(keys), 32, 16)
    em['w4'], em['b4'] = _linear(next(keys), 16, 8)
    em['w5'], em['b5'] = _linear(next(keys), 8, 2)
    params['edge_model'] = em

    # NodeModel: Lin(34,16) -> LeakyReLU(0.12) -> Lin(16,2)
    nm = {}
    nm['w1'], nm['b1'] = _linear(next(keys), NOUT + 2, 16)
    nm['w2'], nm['b2'] = _linear(next(keys), 16, 2)
    params['node_model'] = nm
    return params


def _flatten_params(params):
    """Flatten params in kernel-arg order; zero-pad layer-0 / bn_node so all node-feature
    and edge-net-hidden dims are NF=32 (exact: padded input columns are 0).  NodeModel's
    Lin(34,16) is split into a (32,16) and a (2,16) half so no (E,34) concat is needed."""
    flat = [
        jnp.pad(params['bn_node']['gamma'], ((0, 0), (0, NF - NODE_IN))),
        jnp.pad(params['bn_node']['beta'], ((0, 0), (0, NF - NODE_IN))),
        params['bn_edge']['gamma'], params['bn_edge']['beta'],
    ]
    for i, p in enumerate(params['mp']):
        in_c = NODE_IN if i == 0 else NOUT
        out_c = NOUT
        w1, b1, w2, b2, root, bias = p['w1'], p['b1'], p['w2'], p['b2'], p['root'], p['bias']
        if in_c < NF:
            pad = NF - in_c
            w1 = jnp.pad(w1, ((0, 0), (0, pad)))
            b1 = jnp.pad(b1, ((0, 0), (0, pad)))
            # torch .view(-1, in_c, out_c): flat col index = k*out_c + o
            w2 = jnp.pad(w2.reshape(in_c, in_c, out_c),
                         ((0, pad), (0, pad), (0, 0))).reshape(NF, NF * out_c)
            b2 = jnp.pad(b2.reshape(1, in_c, out_c),
                         ((0, 0), (0, pad), (0, 0))).reshape(1, NF * out_c)
            root = jnp.pad(root, ((0, pad), (0, 0)))
        flat += [w1, b1, w2, b2, root, bias]
    em = params['edge_model']
    flat += [em['wa1'], em['wb1'], em['wc1'], em['b1'], em['w2'], em['b2'],
             em['w3'], em['b3'], em['w4'], em['b4'], em['w5'], em['b5']]
    nm = params['node_model']
    flat += [nm['w1'][:NF], nm['w1'][NF:], nm['b1'], nm['w2'], nm['b2']]
    return flat   # 4 + 18 + 12 + 5 = 39 arrays


# ---------------------------------------------------------------------------
# Full forward pass (single fused pallas_call)
# ---------------------------------------------------------------------------
def node_nnconv_forward(params, x, edge_index, e, xbatch):
    del xbatch  # only used for u (=None) in the reference MetaLayer
    x = x.reshape(-1, NODE_IN).astype(jnp.float32)
    e = e.reshape(-1, EDGE_IN).astype(jnp.float32)
    n_nodes, n_edges = x.shape[0], e.shape[0]

    src = edge_index[0].astype(jnp.int32)   # row: NNConv source, NodeModel scatter index
    dst = edge_index[1].astype(jnp.int32)   # col: NNConv message destination
    src_e1 = src.reshape(n_edges, 1)
    dst_e1 = dst.reshape(n_edges, 1)
    src_1e = src.reshape(1, n_edges)
    dst_1e = dst.reshape(1, n_edges)

    x_pad = jnp.pad(x, ((0, 0), (0, NF - NODE_IN)))          # (N, 32), extra cols zero

    # Constant replicate / reduce matrices for the per-edge weight contraction (MXU form).
    k_idx = jnp.arange(NF, dtype=jnp.int32)
    j_idx = jnp.arange(NF * NF, dtype=jnp.int32)
    Rm = (j_idx[None, :] // NF == k_idx[:, None]).astype(jnp.float32)   # (32, 1024)
    Sm = (j_idx[:, None] % NF == k_idx[None, :]).astype(jnp.float32)    # (1024, 32)

    flat = _flatten_params(params)
    n_in = 8 + len(flat)

    # Explicit VMEM budget: params + inputs + live (E,1024)/(E,128)/(N,128) activations.
    nbytes = lambda a: int(a.size) * jnp.dtype(a.dtype).itemsize
    est = sum(nbytes(a) for a in flat) + nbytes(Rm) + nbytes(Sm)
    est += nbytes(x_pad) + nbytes(e) + 4 * (4 * n_edges + 2 * n_nodes)
    est += 4 * (3 * n_edges * NF * NF + 12 * n_edges * 128 + 12 * n_nodes * 128)
    vmem_limit = int(min(max(2 * est, 8 << 20), 64 << 20))

    vmem = pl.BlockSpec(memory_space=pltpu.MemorySpace.VMEM)

    node_pred = pl.pallas_call(
        _make_forward_kernel(len(flat)),
        out_shape=jax.ShapeDtypeStruct((n_nodes, 2), jnp.float32),
        in_specs=[vmem] * n_in,
        out_specs=vmem,
        compiler_params=pltpu.CompilerParams(vmem_limit_bytes=vmem_limit),
    )(src_e1, dst_e1, src_1e, dst_1e, x_pad, e, Rm, Sm, *flat)

    return {'node_pred': [node_pred]}


if __name__ == "__main__":
    key = jax.random.PRNGKey(0)
    k_x, k_e, k_ei, k_p = jax.random.split(key, 4)

    N, E = 8, 16
    x = jax.random.normal(k_x, (N, NODE_IN), jnp.float32)
    e = jax.random.normal(k_e, (E, EDGE_IN), jnp.float32)
    edge_index = jax.random.randint(k_ei, (2, E), 0, N, dtype=jnp.int32)
    xbatch = jnp.zeros((N,), jnp.int32)

    params = init_params(k_p)
    out = jax.jit(node_nnconv_forward)(params, x, edge_index, e, xbatch)
    node_pred = jax.block_until_ready(out['node_pred'][0])
    assert node_pred.shape == (N, 2)
    print("KERNEL_OK")
</pallas_src>

<mosaic_0001>
module attributes {stable_mosaic.version = 11 : i64} {
  func.func @kernel(%arg0: memref<16x1xi32, #tpu.memory_space<vmem>>, %arg1: memref<16x1xi32, #tpu.memory_space<vmem>>, %arg2: memref<1x16xi32, #tpu.memory_space<vmem>>, %arg3: memref<1x16xi32, #tpu.memory_space<vmem>>, %arg4: memref<8x32xf32, #tpu.memory_space<vmem>>, %arg5: memref<16x19xf32, #tpu.memory_space<vmem>>, %arg6: memref<32x1024xf32, #tpu.memory_space<vmem>>, %arg7: memref<1024x32xf32, #tpu.memory_space<vmem>>, %arg8: memref<1x32xf32, #tpu.memory_space<vmem>>, %arg9: memref<1x32xf32, #tpu.memory_space<vmem>>, %arg10: memref<1x19xf32, #tpu.memory_space<vmem>>, %arg11: memref<1x19xf32, #tpu.memory_space<vmem>>, %arg12: memref<19x32xf32, #tpu.memory_space<vmem>>, %arg13: memref<1x32xf32, #tpu.memory_space<vmem>>, %arg14: memref<32x1024xf32, #tpu.memory_space<vmem>>, %arg15: memref<1x1024xf32, #tpu.memory_space<vmem>>, %arg16: memref<32x32xf32, #tpu.memory_space<vmem>>, %arg17: memref<1x32xf32, #tpu.memory_space<vmem>>, %arg18: memref<19x32xf32, #tpu.memory_space<vmem>>, %arg19: memref<1x32xf32, #tpu.memory_space<vmem>>, %arg20: memref<32x1024xf32, #tpu.memory_space<vmem>>, %arg21: memref<1x1024xf32, #tpu.memory_space<vmem>>, %arg22: memref<32x32xf32, #tpu.memory_space<vmem>>, %arg23: memref<1x32xf32, #tpu.memory_space<vmem>>, %arg24: memref<19x32xf32, #tpu.memory_space<vmem>>, %arg25: memref<1x32xf32, #tpu.memory_space<vmem>>, %arg26: memref<32x1024xf32, #tpu.memory_space<vmem>>, %arg27: memref<1x1024xf32, #tpu.memory_space<vmem>>, %arg28: memref<32x32xf32, #tpu.memory_space<vmem>>, %arg29: memref<1x32xf32, #tpu.memory_space<vmem>>, %arg30: memref<32x64xf32, #tpu.memory_space<vmem>>, %arg31: memref<32x64xf32, #tpu.memory_space<vmem>>, %arg32: memref<19x64xf32, #tpu.memory_space<vmem>>, %arg33: memref<1x64xf32, #tpu.memory_space<vmem>>, %arg34: memref<64x32xf32, #tpu.memory_space<vmem>>, %arg35: memref<1x32xf32, #tpu.memory_space<vmem>>, %arg36: memref<32x16xf32, #tpu.memory_space<vmem>>, %arg37: memref<1x16xf32, #tpu.memory_space<vmem>>, %arg38: memref<16x8xf32, #tpu.memory_space<vmem>>, %arg39: memref<1x8xf32, #tpu.memory_space<vmem>>, %arg40: memref<8x2xf32, #tpu.memory_space<vmem>>, %arg41: memref<1x2xf32, #tpu.memory_space<vmem>>, %arg42: memref<32x16xf32, #tpu.memory_space<vmem>>, %arg43: memref<2x16xf32, #tpu.memory_space<vmem>>, %arg44: memref<1x16xf32, #tpu.memory_space<vmem>>, %arg45: memref<16x2xf32, #tpu.memory_space<vmem>>, %arg46: memref<1x2xf32, #tpu.memory_space<vmem>>, %arg47: memref<8x2xf32, #tpu.memory_space<vmem>>) attributes {dimension_semantics = [], scalar_prefetch = 0 : i64, scratch_operands = 0 : i64, tpu.core_type = #tpu.core_type<tc>} {
    %c0 = arith.constant 0 : index
    %c0_0 = arith.constant 0 : index
    %0 = vector.load %arg5[%c0, %c0_0] : memref<16x19xf32, #tpu.memory_space<vmem>>, vector<16x19xf32>
    %cst = arith.constant dense<0.000000e+00> : vector<19xf32>
    %1 = vector.multi_reduction <add>, %0, %cst [0] : vector<16x19xf32> to vector<19xf32>
    %2 = vector.shape_cast %1 : vector<19xf32> to vector<1x19xf32>
    %cst_1 = arith.constant 1.600000e+01 : f32
    %3 = vector.broadcast %cst_1 : f32 to vector<1x19xf32>
    %4 = arith.divf %2, %3 : vector<1x19xf32>
    %5 = vector.broadcast %4 : vector<1x19xf32> to vector<16x19xf32>
    %6 = arith.subf %0, %5 : vector<16x19xf32>
    %7 = arith.mulf %6, %6 : vector<16x19xf32>
    %cst_2 = arith.constant dense<0.000000e+00> : vector<19xf32>
    %8 = vector.multi_reduction <add>, %7, %cst_2 [0] : vector<16x19xf32> to vector<19xf32>
    %9 = vector.shape_cast %8 : vector<19xf32> to vector<1x19xf32>
    %cst_3 = arith.constant 1.600000e+01 : f32
    %10 = vector.broadcast %cst_3 : f32 to vector<1x19xf32>
    %11 = arith.divf %9, %10 : vector<1x19xf32>
    %12 = vector.broadcast %4 : vector<1x19xf32> to vector<16x19xf32>
    %13 = arith.subf %0, %12 : vector<16x19xf32>
    %cst_4 = arith.constant 9.99999974E-6 : f32
    %14 = vector.broadcast %cst_4 : f32 to vector<1x19xf32>
    %15 = arith.addf %11, %14 : vector<1x19xf32>
    %16 = math.rsqrt %15 : vector<1x19xf32>
    %17 = vector.broadcast %16 : vector<1x19xf32> to vector<16x19xf32>
    %18 = arith.mulf %13, %17 : vector<16x19xf32>
    %c0_5 = arith.constant 0 : index
    %c0_6 = arith.constant 0 : index
    %19 = vector.load %arg10[%c0_5, %c0_6] : memref<1x19xf32, #tpu.memory_space<vmem>>, vector<1x19xf32>
    %20 = vector.broadcast %19 : vector<1x19xf32> to vector<16x19xf32>
    %21 = arith.mulf %18, %20 : vector<16x19xf32>
    %c0_7 = arith.constant 0 : index
    %c0_8 = arith.constant 0 : index
    %22 = vector.load %arg11[%c0_7, %c0_8] : memref<1x19xf32, #tpu.memory_space<vmem>>, vector<1x19xf32>
    %23 = vector.broadcast %22 : vector<1x19xf32> to vector<16x19xf32>
    %24 = arith.addf %21, %23 : vector<16x19xf32>
    %c0_9 = arith.constant 0 : index
    %c0_10 = arith.constant 0 : index
    %25 = vector.load %arg4[%c0_9, %c0_10] : memref<8x32xf32, #tpu.memory_space<vmem>>, vector<8x32xf32>
    %cst_11 = arith.constant dense<0.000000e+00> : vector<32xf32>
    %26 = vector.multi_reduction <add>, %25, %cst_11 [0] : vector<8x32xf32> to vector<32xf32>
    %27 = vector.shape_cast %26 : vector<32xf32> to vector<1x32xf32>
    %cst_12 = arith.constant 8.000000e+00 : f32
    %28 = vector.broadcast %cst_12 : f32 to vector<1x32xf32>
    %29 = arith.divf %27, %28 : vector<1x32xf32>
    %30 = vector.broadcast %29 : vector<1x32xf32> to vector<8x32xf32>
    %31 = arith.subf %25, %30 : vector<8x32xf32>
    %32 = arith.mulf %31, %31 : vector<8x32xf32>
    %cst_13 = arith.constant dense<0.000000e+00> : vector<32xf32>
    %33 = vector.multi_reduction <add>, %32, %cst_13 [0] : vector<8x32xf32> to vector<32xf32>
    %34 = vector.shape_cast %33 : vector<32xf32> to vector<1x32xf32>
    %cst_14 = arith.constant 8.000000e+00 : f32
    %35 = vector.broadcast %cst_14 : f32 to vector<1x32xf32>
    %36 = arith.divf %34, %35 : vector<1x32xf32>
    %37 = vector.broadcast %29 : vector<1x32xf32> to vector<8x32xf32>
    %38 = arith.subf %25, %37 : vector<8x32xf32>
    %cst_15 = arith.constant 9.99999974E-6 : f32
    %39 = vector.broadcast %cst_15 : f32 to vector<1x32xf32>
    %40 = arith.addf %36, %39 : vector<1x32xf32>
    %41 = math.rsqrt %40 : vector<1x32xf32>
    %42 = vector.broadcast %41 : vector<1x32xf32> to vector<8x32xf32>
    %43 = arith.mulf %38, %42 : vector<8x32xf32>
    %c0_16 = arith.constant 0 : index
    %c0_17 = arith.constant 0 : index
    %44 = vector.load %arg8[%c0_16, %c0_17] : memref<1x32xf32, #tpu.memory_space<vmem>>, vector<1x32xf32>
    %45 = vector.broadcast %44 : vector<1x32xf32> to vector<8x32xf32>
    %46 = arith.mulf %43, %45 : vector<8x32xf32>
    %c0_18 = arith.constant 0 : index
    %c0_19 = arith.constant 0 : index
    %47 = vector.load %arg9[%c0_18, %c0_19] : memref<1x32xf32, #tpu.memory_space<vmem>>, vector<1x32xf32>
    %48 = vector.broadcast %47 : vector<1x32xf32> to vector<8x32xf32>
    %49 = arith.addf %46, %48 : vector<8x32xf32>
    %50 = tpu.iota {dimensions = array<i32: 1>} : vector<16x8xi32>
    %51 = tpu.iota {dimensions = array<i32: 0>} : vector<8x16xi32>
    %c0_20 = arith.constant 0 : index
    %c0_21 = arith.constant 0 : index
    %52 = vector.load %arg0[%c0_20, %c0_21] : memref<16x1xi32, #tpu.memory_space<vmem>>, vector<16x1xi32>
    %53 = vector.broadcast %52 : vector<16x1xi32> to vector<16x8xi32>
    %54 = arith.cmpi eq, %53, %50 : vector<16x8xi32>
    %55 = arith.extui %54 : vector<16x8xi1> to vector<16x8xi32>
    %56 = arith.sitofp %55 : vector<16x8xi32> to vector<16x8xf32>
    %c0_22 = arith.constant 0 : index
    %c0_23 = arith.constant 0 : index
    %57 = vector.load %arg1[%c0_22, %c0_23] : memref<16x1xi32, #tpu.memory_space<vmem>>, vector<16x1xi32>
    %58 = vector.broadcast %57 : vector<16x1xi32> to vector<16x8xi32>
    %59 = arith.cmpi eq, %58, %50 : vector<16x8xi32>
    %60 = arith.extui %59 : vector<16x8xi1> to vector<16x8xi32>
    %61 = arith.sitofp %60 : vector<16x8xi32> to vector<16x8xf32>
    %c0_24 = arith.constant 0 : index
    %c0_25 = arith.constant 0 : index
    %62 = vector.load %arg3[%c0_24, %c0_25] : memref<1x16xi32, #tpu.memory_space<vmem>>, vector<1x16xi32>
    %63 = vector.broadcast %62 : vector<1x16xi32> to vector<8x16xi32>
    %64 = arith.cmpi eq, %63, %51 : vector<8x16xi32>
    %65 = arith.extui %64 : vector<8x16xi1> to vector<8x16xi32>
    %66 = arith.sitofp %65 : vector<8x16xi32> to vector<8x16xf32>
    %c0_26 = arith.constant 0 : index
    %c0_27 = arith.constant 0 : index
    %67 = vector.load %arg2[%c0_26, %c0_27] : memref<1x16xi32, #tpu.memory_space<vmem>>, vector<1x16xi32>
    %68 = vector.broadcast %67 : vector<1x16xi32> to vector<8x16xi32>
    %69 = arith.cmpi eq, %68, %51 : vector<8x16xi32>
    %70 = arith.extui %69 : vector<8x16xi1> to vector<8x16xi32>
    %71 = arith.sitofp %70 : vector<8x16xi32> to vector<8x16xf32>
    %c0_28 = arith.constant 0 : index
    %c0_29 = arith.constant 0 : index
    %72 = vector.load %arg6[%c0_28, %c0_29] : memref<32x1024xf32, #tpu.memory_space<vmem>>, vector<32x1024xf32>
    %c0_30 = arith.constant 0 : index
    %c0_31 = arith.constant 0 : index
    %73 = vector.load %arg7[%c0_30, %c0_31] : memref<1024x32xf32, #tpu.memory_space<vmem>>, vector<1024x32xf32>
    %c0_32 = arith.constant 0 : index
    %c0_33 = arith.constant 0 : index
    %74 = vector.load %arg12[%c0_32, %c0_33] : memref<19x32xf32, #tpu.memory_space<vmem>>, vector<19x32xf32>
    %cst_34 = arith.constant dense<0.000000e+00> : vector<16x32xf32>
    %75 = tpu.matmul %24, %74, %cst_34 {dimension_numbers = #tpu.dot_dimension_numbers<[1], [0], [0], [1], [0, 0, 1, 1], [], []>} : vector<16x19xf32>, vector<19x32xf32>, vector<16x32xf32> -> vector<16x32xf32>
    %c0_35 = arith.constant 0 : index
    %c0_36 = arith.constant 0 : index
    %76 = vector.load %arg13[%c0_35, %c0_36] : memref<1x32xf32, #tpu.memory_space<vmem>>, vector<1x32xf32>
    %77 = vector.broadcast %76 : vector<1x32xf32> to vector<16x32xf32>
    %78 = arith.addf %75, %77 : vector<16x32xf32>
    %cst_37 = arith.constant 0.000000e+00 : f32
    %79 = vector.broadcast %cst_37 : f32 to vector<16x32xf32>
    %80 = arith.cmpf ogt, %78, %79 : vector<16x32xf32>
    %cst_38 = arith.constant 1.000000e-01 : f32
    %81 = vector.broadcast %cst_38 : f32 to vector<16x32xf32>
    %82 = arith.mulf %81, %78 : vector<16x32xf32>
    %83 = arith.select %80, %78, %82 : vector<16x32xi1>, vector<16x32xf32>
    %c0_39 = arith.constant 0 : index
    %c0_40 = arith.constant 0 : index
    %84 = vector.load %arg14[%c0_39, %c0_40] : memref<32x1024xf32, #tpu.memory_space<vmem>>, vector<32x1024xf32>
    %cst_41 = arith.constant dense<0.000000e+00> : vector<16x1024xf32>
    %85 = tpu.matmul %83, %84, %cst_41 {dimension_numbers = #tpu.dot_dimension_numbers<[1], [0], [0], [1], [0, 0, 1, 1], [], []>} : vector<16x32xf32>, vector<32x1024xf32>, vector<16x1024xf32> -> vector<16x1024xf32>
    %c0_42 = arith.constant 0 : index
    %c0_43 = arith.constant 0 : index
    %86 = vector.load %arg15[%c0_42, %c0_43] : memref<1x1024xf32, #tpu.memory_space<vmem>>, vector<1x1024xf32>
    %87 = vector.broadcast %86 : vector<1x1024xf32> to vector<16x1024xf32>
    %88 = arith.addf %85, %87 : vector<16x1024xf32>
    %cst_44 = arith.constant 0.000000e+00 : f32
    %89 = vector.broadcast %cst_44 : f32 to vector<16x1024xf32>
    %90 = arith.cmpf ogt, %88, %89 : vector<16x1024xf32>
    %cst_45 = arith.constant 1.000000e-01 : f32
    %91 = vector.broadcast %cst_45 : f32 to vector<16x1024xf32>
    %92 = arith.mulf %91, %88 : vector<16x1024xf32>
    %93 = arith.select %90, %88, %92 : vector<16x1024xi1>, vector<16x1024xf32>
    %cst_46 = arith.constant dense<0.000000e+00> : vector<16x32xf32>
    %94 = tpu.matmul %56, %49, %cst_46 {dimension_numbers = #tpu.dot_dimension_numbers<[1], [0], [0], [1], [0, 0, 1, 1], [], []>} : vector<16x8xf32>, vector<8x32xf32>, vector<16x32xf32> -> vector<16x32xf32>
    %cst_47 = arith.constant dense<0.000000e+00> : vector<16x1024xf32>
    %95 = tpu.matmul %94, %72, %cst_47 {dimension_numbers = #tpu.dot_dimension_numbers<[1], [0], [0], [1], [0, 0, 1, 1], [], []>} : vector<16x32xf32>, vector<32x1024xf32>, vector<16x1024xf32> -> vector<16x1024xf32>
    %96 = arith.mulf %95, %93 : vector<16x1024xf32>
    %cst_48 = arith.constant dense<0.000000e+00> : vector<16x32xf32>
    %97 = tpu.matmul %96, %73, %cst_48 {dimension_numbers = #tpu.dot_dimension_numbers<[1], [0], [0], [1], [0, 0, 1, 1], [], []>} : vector<16x1024xf32>, vector<1024x32xf32>, vector<16x32xf32> -> vector<16x32xf32>
    %cst_49 = arith.constant dense<0.000000e+00> : vector<8x32xf32>
    %98 = tpu.matmul %66, %97, %cst_49 {dimension_numbers = #tpu.dot_dimension_numbers<[1], [0], [0], [1], [0, 0, 1, 1], [], []>} : vector<8x16xf32>, vector<16x32xf32>, vector<8x32xf32> -> vector<8x32xf32>
    %c0_50 = arith.constant 0 : index
    %c0_51 = arith.constant 0 : index
    %99 = vector.load %arg16[%c0_50, %c0_51] : memref<32x32xf32, #tpu.memory_space<vmem>>, vector<32x32xf32>
    %cst_52 = arith.constant dense<0.000000e+00> : vector<8x32xf32>
    %100 = tpu.matmul %49, %99, %cst_52 {dimension_numbers = #tpu.dot_dimension_numbers<[1], [0], [0], [1], [0, 0, 1, 1], [], []>} : vector<8x32xf32>, vector<32x32xf32>, vector<8x32xf32> -> vector<8x32xf32>
    %101 = arith.addf %98, %100 : vector<8x32xf32>
    %c0_53 = arith.constant 0 : index
    %c0_54 = arith.constant 0 : index
    %102 = vector.load %arg17[%c0_53, %c0_54] : memref<1x32xf32, #tpu.memory_space<vmem>>, vector<1x32xf32>
    %103 = vector.broadcast %102 : vector<1x32xf32> to vector<8x32xf32>
    %104 = arith.addf %101, %103 : vector<8x32xf32>
    %c0_55 = arith.constant 0 : index
    %c0_56 = arith.constant 0 : index
    %105 = vector.load %arg18[%c0_55, %c0_56] : memref<19x32xf32, #tpu.memory_space<vmem>>, vector<19x32xf32>
    %cst_57 = arith.constant dense<0.000000e+00> : vector<16x32xf32>
    %106 = tpu.matmul %24, %105, %cst_57 {dimension_numbers = #tpu.dot_dimension_numbers<[1], [0], [0], [1], [0, 0, 1, 1], [], []>} : vector<16x19xf32>, vector<19x32xf32>, vector<16x32xf32> -> vector<16x32xf32>
    %c0_58 = arith.constant 0 : index
    %c0_59 = arith.constant 0 : index
    %107 = vector.load %arg19[%c0_58, %c0_59] : memref<1x32xf32, #tpu.memory_space<vmem>>, vector<1x32xf32>
    %108 = vector.broadcast %107 : vector<1x32xf32> to vector<16x32xf32>
    %109 = arith.addf %106, %108 : vector<16x32xf32>
    %cst_60 = arith.constant 0.000000e+00 : f32
    %110 = vector.broadcast %cst_60 : f32 to vector<16x32xf32>
    %111 = arith.cmpf ogt, %109, %110 : vector<16x32xf32>
    %cst_61 = arith.constant 1.000000e-01 : f32
    %112 = vector.broadcast %cst_61 : f32 to vector<16x32xf32>
    %113 = arith.mulf %112, %109 : vector<16x32xf32>
    %114 = arith.select %111, %109, %113 : vector<16x32xi1>, vector<16x32xf32>
    %c0_62 = arith.constant 0 : index
    %c0_63 = arith.constant 0 : index
    %115 = vector.load %arg20[%c0_62, %c0_63] : memref<32x1024xf32, #tpu.memory_space<vmem>>, vector<32x1024xf32>
    %cst_64 = arith.constant dense<0.000000e+00> : vector<16x1024xf32>
    %116 = tpu.matmul %114, %115, %cst_64 {dimension_numbers = #tpu.dot_dimension_numbers<[1], [0], [0], [1], [0, 0, 1, 1], [], []>} : vector<16x32xf32>, vector<32x1024xf32>, vector<16x1024xf32> -> vector<16x1024xf32>
    %c0_65 = arith.constant 0 : index
    %c0_66 = arith.constant 0 : index
    %117 = vector.load %arg21[%c0_65, %c0_66] : memref<1x1024xf32, #tpu.memory_space<vmem>>, vector<1x1024xf32>
    %118 = vector.broadcast %117 : vector<1x1024xf32> to vector<16x1024xf32>
    %119 = arith.addf %116, %118 : vector<16x1024xf32>
    %cst_67 = arith.constant 0.000000e+00 : f32
    %120 = vector.broadcast %cst_67 : f32 to vector<16x1024xf32>
    %121 = arith.cmpf ogt, %119, %120 : vector<16x1024xf32>
    %cst_68 = arith.constant 1.000000e-01 : f32
    %122 = vector.broadcast %cst_68 : f32 to vector<16x1024xf32>
    %123 = arith.mulf %122, %119 : vector<16x1024xf32>
    %124 = arith.select %121, %119, %123 : vector<16x1024xi1>, vector<16x1024xf32>
    %cst_69 = arith.constant dense<0.000000e+00> : vector<16x32xf32>
    %125 = tpu.matmul %56, %104, %cst_69 {dimension_numbers = #tpu.dot_dimension_numbers<[1], [0], [0], [1], [0, 0, 1, 1], [], []>} : vector<16x8xf32>, vector<8x32xf32>, vector<16x32xf32> -> vector<16x32xf32>
    %cst_70 = arith.constant dense<0.000000e+00> : vector<16x1024xf32>
    %126 = tpu.matmul %125, %72, %cst_70 {dimension_numbers = #tpu.dot_dimension_numbers<[1], [0], [0], [1], [0, 0, 1, 1], [], []>} : vector<16x32xf32>, vector<32x1024xf32>, vector<16x1024xf32> -> vector<16x1024xf32>
    %127 = arith.mulf %126, %124 : vector<16x1024xf32>
    %cst_71 = arith.constant dense<0.000000e+00> : vector<16x32xf32>
    %128 = tpu.matmul %127, %73, %cst_71 {dimension_numbers = #tpu.dot_dimension_numbers<[1], [0], [0], [1], [0, 0, 1, 1], [], []>} : vector<16x1024xf32>, vector<1024x32xf32>, vector<16x32xf32> -> vector<16x32xf32>
    %cst_72 = arith.constant dense<0.000000e+00> : vector<8x32xf32>
    %129 = tpu.matmul %66, %128, %cst_72 {dimension_numbers = #tpu.dot_dimension_numbers<[1], [0], [0], [1], [0, 0, 1, 1], [], []>} : vector<8x16xf32>, vector<16x32xf32>, vector<8x32xf32> -> vector<8x32xf32>
    %c0_73 = arith.constant 0 : index
    %c0_74 = arith.constant 0 : index
    %130 = vector.load %arg22[%c0_73, %c0_74] : memref<32x32xf32, #tpu.memory_space<vmem>>, vector<32x32xf32>
    %cst_75 = arith.constant dense<0.000000e+00> : vector<8x32xf32>
    %131 = tpu.matmul %104, %130, %cst_75 {dimension_numbers = #tpu.dot_dimension_numbers<[1], [0], [0], [1], [0, 0, 1, 1], [], []>} : vector<8x32xf32>, vector<32x32xf32>, vector<8x32xf32> -> vector<8x32xf32>
    %132 = arith.addf %129, %131 : vector<8x32xf32>
    %c0_76 = arith.constant 0 : index
    %c0_77 = arith.constant 0 : index
    %133 = vector.load %arg23[%c0_76, %c0_77] : memref<1x32xf32, #tpu.memory_space<vmem>>, vector<1x32xf32>
    %134 = vector.broadcast %133 : vector<1x32xf32> to vector<8x32xf32>
    %135 = arith.addf %132, %134 : vector<8x32xf32>
    %c0_78 = arith.constant 0 : index
    %c0_79 = arith.constant 0 : index
    %136 = vector.load %arg24[%c0_78, %c0_79] : memref<19x32xf32, #tpu.memory_space<vmem>>, vector<19x32xf32>
    %cst_80 = arith.constant dense<0.000000e+00> : vector<16x32xf32>
    %137 = tpu.matmul %24, %136, %cst_80 {dimension_numbers = #tpu.dot_dimension_numbers<[1], [0], [0], [1], [0, 0, 1, 1], [], []>} : vector<16x19xf32>, vector<19x32xf32>, vector<16x32xf32> -> vector<16x32xf32>
    %c0_81 = arith.constant 0 : index
    %c0_82 = arith.constant 0 : index
    %138 = vector.load %arg25[%c0_81, %c0_82] : memref<1x32xf32, #tpu.memory_space<vmem>>, vector<1x32xf32>
    %139 = vector.broadcast %138 : vector<1x32xf32> to vector<16x32xf32>
    %140 = arith.addf %137, %139 : vector<16x32xf32>
    %cst_83 = arith.constant 0.000000e+00 : f32
    %141 = vector.broadcast %cst_83 : f32 to vector<16x32xf32>
    %142 = arith.cmpf ogt, %140, %141 : vector<16x32xf32>
    %cst_84 = arith.constant 1.000000e-01 : f32
    %143 = vector.broadcast %cst_84 : f32 to vector<16x32xf32>
    %144 = arith.mulf %143, %140 : vector<16x32xf32>
    %145 = arith.select %142, %140, %144 : vector<16x32xi1>, vector<16x32xf32>
    %c0_85 = arith.constant 0 : index
    %c0_86 = arith.constant 0 : index
    %146 = vector.load %arg26[%c0_85, %c0_86] : memref<32x1024xf32, #tpu.memory_space<vmem>>, vector<32x1024xf32>
    %cst_87 = arith.constant dense<0.000000e+00> : vector<16x1024xf32>
    %147 = tpu.matmul %145, %146, %cst_87 {dimension_numbers = #tpu.dot_dimension_numbers<[1], [0], [0], [1], [0, 0, 1, 1], [], []>} : vector<16x32xf32>, vector<32x1024xf32>, vector<16x1024xf32> -> vector<16x1024xf32>
    %c0_88 = arith.constant 0 : index
    %c0_89 = arith.constant 0 : index
    %148 = vector.load %arg27[%c0_88, %c0_89] : memref<1x1024xf32, #tpu.memory_space<vmem>>, vector<1x1024xf32>
    %149 = vector.broadcast %148 : vector<1x1024xf32> to vector<16x1024xf32>
    %150 = arith.addf %147, %149 : vector<16x1024xf32>
    %cst_90 = arith.constant 0.000000e+00 : f32
    %151 = vector.broadcast %cst_90 : f32 to vector<16x1024xf32>
    %152 = arith.cmpf ogt, %150, %151 : vector<16x1024xf32>
    %cst_91 = arith.constant 1.000000e-01 : f32
    %153 = vector.broadcast %cst_91 : f32 to vector<16x1024xf32>
    %154 = arith.mulf %153, %150 : vector<16x1024xf32>
    %155 = arith.select %152, %150, %154 : vector<16x1024xi1>, vector<16x1024xf32>
    %cst_92 = arith.constant dense<0.000000e+00> : vector<16x32xf32>
    %156 = tpu.matmul %56, %135, %cst_92 {dimension_numbers = #tpu.dot_dimension_numbers<[1], [0], [0], [1], [0, 0, 1, 1], [], []>} : vector<16x8xf32>, vector<8x32xf32>, vector<16x32xf32> -> vector<16x32xf32>
    %cst_93 = arith.constant dense<0.000000e+00> : vector<16x1024xf32>
    %157 = tpu.matmul %156, %72, %cst_93 {dimension_numbers = #tpu.dot_dimension_numbers<[1], [0], [0], [1], [0, 0, 1, 1], [], []>} : vector<16x32xf32>, vector<32x1024xf32>, vector<16x1024xf32> -> vector<16x1024xf32>
    %158 = arith.mulf %157, %155 : vector<16x1024xf32>
    %cst_94 = arith.constant dense<0.000000e+00> : vector<16x32xf32>
    %159 = tpu.matmul %158, %73, %cst_94 {dimension_numbers = #tpu.dot_dimension_numbers<[1], [0], [0], [1], [0, 0, 1, 1], [], []>} : vector<16x1024xf32>, vector<1024x32xf32>, vector<16x32xf32> -> vector<16x32xf32>
    %cst_95 = arith.constant dense<0.000000e+00> : vector<8x32xf32>
    %160 = tpu.matmul %66, %159, %cst_95 {dimension_numbers = #tpu.dot_dimension_numbers<[1], [0], [0], [1], [0, 0, 1, 1], [], []>} : vector<8x16xf32>, vector<16x32xf32>, vector<8x32xf32> -> vector<8x32xf32>
    %c0_96 = arith.constant 0 : index
    %c0_97 = arith.constant 0 : index
    %161 = vector.load %arg28[%c0_96, %c0_97] : memref<32x32xf32, #tpu.memory_space<vmem>>, vector<32x32xf32>
    %cst_98 = arith.constant dense<0.000000e+00> : vector<8x32xf32>
    %162 = tpu.matmul %135, %161, %cst_98 {dimension_numbers = #tpu.dot_dimension_numbers<[1], [0], [0], [1], [0, 0, 1, 1], [], []>} : vector<8x32xf32>, vector<32x32xf32>, vector<8x32xf32> -> vector<8x32xf32>
    %163 = arith.addf %160, %162 : vector<8x32xf32>
    %c0_99 = arith.constant 0 : index
    %c0_100 = arith.constant 0 : index
    %164 = vector.load %arg29[%c0_99, %c0_100] : memref<1x32xf32, #tpu.memory_space<vmem>>, vector<1x32xf32>
    %165 = vector.broadcast %164 : vector<1x32xf32> to vector<8x32xf32>
    %166 = arith.addf %163, %165 : vector<8x32xf32>
    %cst_101 = arith.constant dense<0.000000e+00> : vector<16x32xf32>
    %167 = tpu.matmul %56, %166, %cst_101 {dimension_numbers = #tpu.dot_dimension_numbers<[1], [0], [0], [1], [0, 0, 1, 1], [], []>} : vector<16x8xf32>, vector<8x32xf32>, vector<16x32xf32> -> vector<16x32xf32>
    %cst_102 = arith.constant dense<0.000000e+00> : vector<16x32xf32>
    %168 = tpu.matmul %61, %166, %cst_102 {dimension_numbers = #tpu.dot_dimension_numbers<[1], [0], [0], [1], [0, 0, 1, 1], [], []>} : vector<16x8xf32>, vector<8x32xf32>, vector<16x32xf32> -> vector<16x32xf32>
    %c0_103 = arith.constant 0 : index
    %c0_104 = arith.constant 0 : index
    %169 = vector.load %arg30[%c0_103, %c0_104] : memref<32x64xf32, #tpu.memory_space<vmem>>, vector<32x64xf32>
    %cst_105 = arith.constant dense<0.000000e+00> : vector<16x64xf32>
    %170 = tpu.matmul %167, %169, %cst_105 {dimension_numbers = #tpu.dot_dimension_numbers<[1], [0], [0], [1], [0, 0, 1, 1], [], []>} : vector<16x32xf32>, vector<32x64xf32>, vector<16x64xf32> -> vector<16x64xf32>
    %c0_106 = arith.constant 0 : index
    %c0_107 = arith.constant 0 : index
    %171 = vector.load %arg31[%c0_106, %c0_107] : memref<32x64xf32, #tpu.memory_space<vmem>>, vector<32x64xf32>
    %cst_108 = arith.constant dense<0.000000e+00> : vector<16x64xf32>
    %172 = tpu.matmul %168, %171, %cst_108 {dimension_numbers = #tpu.dot_dimension_numbers<[1], [0], [0], [1], [0, 0, 1, 1], [], []>} : vector<16x32xf32>, vector<32x64xf32>, vector<16x64xf32> -> vector<16x64xf32>
    %173 = arith.addf %170, %172 : vector<16x64xf32>
    %c0_109 = arith.constant 0 : index
    %c0_110 = arith.constant 0 : index
    %174 = vector.load %arg32[%c0_109, %c0_110] : memref<19x64xf32, #tpu.memory_space<vmem>>, vector<19x64xf32>
    %cst_111 = arith.constant dense<0.000000e+00> : vector<16x64xf32>
    %175 = tpu.matmul %24, %174, %cst_111 {dimension_numbers = #tpu.dot_dimension_numbers<[1], [0], [0], [1], [0, 0, 1, 1], [], []>} : vector<16x19xf32>, vector<19x64xf32>, vector<16x64xf32> -> vector<16x64xf32>
    %176 = arith.addf %173, %175 : vector<16x64xf32>
    %c0_112 = arith.constant 0 : index
    %c0_113 = arith.constant 0 : index
    %177 = vector.load %arg33[%c0_112, %c0_113] : memref<1x64xf32, #tpu.memory_space<vmem>>, vector<1x64xf32>
    %178 = vector.broadcast %177 : vector<1x64xf32> to vector<16x64xf32>
    %179 = arith.addf %176, %178 : vector<16x64xf32>
    %cst_114 = arith.constant 0.000000e+00 : f32
    %180 = vector.broadcast %cst_114 : f32 to vector<16x64xf32>
    %181 = arith.cmpf ogt, %179, %180 : vector<16x64xf32>
    %cst_115 = arith.constant 1.000000e-01 : f32
    %182 = vector.broadcast %cst_115 : f32 to vector<16x64xf32>
    %183 = arith.mulf %182, %179 : vector<16x64xf32>
    %184 = arith.select %181, %179, %183 : vector<16x64xi1>, vector<16x64xf32>
    %c0_116 = arith.constant 0 : index
    %c0_117 = arith.constant 0 : index
    %185 = vector.load %arg34[%c0_116, %c0_117] : memref<64x32xf32, #tpu.memory_space<vmem>>, vector<64x32xf32>
    %cst_118 = arith.constant dense<0.000000e+00> : vector<16x32xf32>
    %186 = tpu.matmul %184, %185, %cst_118 {dimension_numbers = #tpu.dot_dimension_numbers<[1], [0], [0], [1], [0, 0, 1, 1], [], []>} : vector<16x64xf32>, vector<64x32xf32>, vector<16x32xf32> -> vector<16x32xf32>
    %c0_119 = arith.constant 0 : index
    %c0_120 = arith.constant 0 : index
    %187 = vector.load %arg35[%c0_119, %c0_120] : memref<1x32xf32, #tpu.memory_space<vmem>>, vector<1x32xf32>
    %188 = vector.broadcast %187 : vector<1x32xf32> to vector<16x32xf32>
    %189 = arith.addf %186, %188 : vector<16x32xf32>
    %cst_121 = arith.constant 0.000000e+00 : f32
    %190 = vector.broadcast %cst_121 : f32 to vector<16x32xf32>
    %191 = arith.cmpf ogt, %189, %190 : vector<16x32xf32>
    %cst_122 = arith.constant 1.000000e-01 : f32
    %192 = vector.broadcast %cst_122 : f32 to vector<16x32xf32>
    %193 = arith.mulf %192, %189 : vector<16x32xf32>
    %194 = arith.select %191, %189, %193 : vector<16x32xi1>, vector<16x32xf32>
    %c0_123 = arith.constant 0 : index
    %c0_124 = arith.constant 0 : index
    %195 = vector.load %arg36[%c0_123, %c0_124] : memref<32x16xf32, #tpu.memory_space<vmem>>, vector<32x16xf32>
    %cst_125 = arith.constant dense<0.000000e+00> : vector<16x16xf32>
    %196 = tpu.matmul %194, %195, %cst_125 {dimension_numbers = #tpu.dot_dimension_numbers<[1], [0], [0], [1], [0, 0, 1, 1], [], []>} : vector<16x32xf32>, vector<32x16xf32>, vector<16x16xf32> -> vector<16x16xf32>
    %c0_126 = arith.constant 0 : index
    %c0_127 = arith.constant 0 : index
    %197 = vector.load %arg37[%c0_126, %c0_127] : memref<1x16xf32, #tpu.memory_space<vmem>>, vector<1x16xf32>
    %198 = vector.broadcast %197 : vector<1x16xf32> to vector<16x16xf32>
    %199 = arith.addf %196, %198 : vector<16x16xf32>
    %cst_128 = arith.constant 0.000000e+00 : f32
    %200 = vector.broadcast %cst_128 : f32 to vector<16x16xf32>
    %201 = arith.cmpf ogt, %199, %200 : vector<16x16xf32>
    %cst_129 = arith.constant 1.000000e-01 : f32
    %202 = vector.broadcast %cst_129 : f32 to vector<16x16xf32>
    %203 = arith.mulf %202, %199 : vector<16x16xf32>
    %204 = arith.select %201, %199, %203 : vector<16x16xi1>, vector<16x16xf32>
    %c0_130 = arith.constant 0 : index
    %c0_131 = arith.constant 0 : index
    %205 = vector.load %arg38[%c0_130, %c0_131] : memref<16x8xf32, #tpu.memory_space<vmem>>, vector<16x8xf32>
    %cst_132 = arith.constant dense<0.000000e+00> : vector<16x8xf32>
    %206 = tpu.matmul %204, %205, %cst_132 {dimension_numbers = #tpu.dot_dimension_numbers<[1], [0], [0], [1], [0, 0, 1, 1], [], []>} : vector<16x16xf32>, vector<16x8xf32>, vector<16x8xf32> -> vector<16x8xf32>
    %c0_133 = arith.constant 0 : index
    %c0_134 = arith.constant 0 : index
    %207 = vector.load %arg39[%c0_133, %c0_134] : memref<1x8xf32, #tpu.memory_space<vmem>>, vector<1x8xf32>
    %208 = vector.broadcast %207 : vector<1x8xf32> to vector<16x8xf32>
    %209 = arith.addf %206, %208 : vector<16x8xf32>
    %cst_135 = arith.constant 0.000000e+00 : f32
    %210 = vector.broadcast %cst_135 : f32 to vector<16x8xf32>
    %211 = arith.cmpf ogt, %209, %210 : vector<16x8xf32>
    %cst_136 = arith.constant 1.000000e-01 : f32
    %212 = vector.broadcast %cst_136 : f32 to vector<16x8xf32>
    %213 = arith.mulf %212, %209 : vector<16x8xf32>
    %214 = arith.select %211, %209, %213 : vector<16x8xi1>, vector<16x8xf32>
    %c0_137 = arith.constant 0 : index
    %c0_138 = arith.constant 0 : index
    %215 = vector.load %arg40[%c0_137, %c0_138] : memref<8x2xf32, #tpu.memory_space<vmem>>, vector<8x2xf32>
    %cst_139 = arith.constant dense<0.000000e+00> : vector<16x2xf32>
    %216 = tpu.matmul %214, %215, %cst_139 {dimension_numbers = #tpu.dot_dimension_numbers<[1], [0], [0], [1], [0, 0, 1, 1], [], []>} : vector<16x8xf32>, vector<8x2xf32>, vector<16x2xf32> -> vector<16x2xf32>
    %c0_140 = arith.constant 0 : index
    %c0_141 = arith.constant 0 : index
    %217 = vector.load %arg41[%c0_140, %c0_141] : memref<1x2xf32, #tpu.memory_space<vmem>>, vector<1x2xf32>
    %218 = vector.broadcast %217 : vector<1x2xf32> to vector<16x2xf32>
    %219 = arith.addf %216, %218 : vector<16x2xf32>
    %cst_142 = arith.constant dense<0.000000e+00> : vector<8xf32>
    %220 = vector.multi_reduction <add>, %71, %cst_142 [1] : vector<8x16xf32> to vector<8xf32>
    %221 = vector.shape_cast %220 : vector<8xf32> to vector<8x1xf32>
    %cst_143 = arith.constant 1.000000e+00 : f32
    %222 = vector.broadcast %cst_143 : f32 to vector<8x1xf32>
    %223 = arith.maximumf %221, %222 : vector<8x1xf32>
    %224 = tpu.reciprocal %223 : vector<8x1xf32> -> vector<8x1xf32>
    %cst_144 = arith.constant dense<0.000000e+00> : vector<8x32xf32>
    %225 = tpu.matmul %71, %168, %cst_144 {dimension_numbers = #tpu.dot_dimension_numbers<[1], [0], [0], [1], [0, 0, 1, 1], [], []>} : vector<8x16xf32>, vector<16x32xf32>, vector<8x32xf32> -> vector<8x32xf32>
    %226 = vector.broadcast %224 : vector<8x1xf32> to vector<8x32xf32>
    %227 = arith.mulf %225, %226 : vector<8x32xf32>
    %cst_145 = arith.constant dense<0.000000e+00> : vector<8x2xf32>
    %228 = tpu.matmul %71, %219, %cst_145 {dimension_numbers = #tpu.dot_dimension_numbers<[1], [0], [0], [1], [0, 0, 1, 1], [], []>} : vector<8x16xf32>, vector<16x2xf32>, vector<8x2xf32> -> vector<8x2xf32>
    %229 = vector.broadcast %224 : vector<8x1xf32> to vector<8x2xf32>
    %230 = arith.mulf %228, %229 : vector<8x2xf32>
    %c0_146 = arith.constant 0 : index
    %c0_147 = arith.constant 0 : index
    %231 = vector.load %arg42[%c0_146, %c0_147] : memref<32x16xf32, #tpu.memory_space<vmem>>, vector<32x16xf32>
    %cst_148 = arith.constant dense<0.000000e+00> : vector<8x16xf32>
    %232 = tpu.matmul %227, %231, %cst_148 {dimension_numbers = #tpu.dot_dimension_numbers<[1], [0], [0], [1], [0, 0, 1, 1], [], []>} : vector<8x32xf32>, vector<32x16xf32>, vector<8x16xf32> -> vector<8x16xf32>
    %c0_149 = arith.constant 0 : index
    %c0_150 = arith.constant 0 : index
    %233 = vector.load %arg43[%c0_149, %c0_150] : memref<2x16xf32, #tpu.memory_space<vmem>>, vector<2x16xf32>
    %cst_151 = arith.constant dense<0.000000e+00> : vector<8x16xf32>
    %234 = tpu.matmul %230, %233, %cst_151 {dimension_numbers = #tpu.dot_dimension_numbers<[1], [0], [0], [1], [0, 0, 1, 1], [], []>} : vector<8x2xf32>, vector<2x16xf32>, vector<8x16xf32> -> vector<8x16xf32>
    %235 = arith.addf %232, %234 : vector<8x16xf32>
    %c0_152 = arith.constant 0 : index
    %c0_153 = arith.constant 0 : index
    %236 = vector.load %arg44[%c0_152, %c0_153] : memref<1x16xf32, #tpu.memory_space<vmem>>, vector<1x16xf32>
    %237 = vector.broadcast %236 : vector<1x16xf32> to vector<8x16xf32>
    %238 = arith.addf %235, %237 : vector<8x16xf32>
    %cst_154 = arith.constant 0.000000e+00 : f32
    %239 = vector.broadcast %cst_154 : f32 to vector<8x16xf32>
    %240 = arith.cmpf ogt, %238, %239 : vector<8x16xf32>
    %cst_155 = arith.constant 1.200000e-01 : f32
    %241 = vector.broadcast %cst_155 : f32 to vector<8x16xf32>
    %242 = arith.mulf %241, %238 : vector<8x16xf32>
    %243 = arith.select %240, %238, %242 : vector<8x16xi1>, vector<8x16xf32>
    %c0_156 = arith.constant 0 : index
    %c0_157 = arith.constant 0 : index
    %244 = vector.load %arg45[%c0_156, %c0_157] : memref<16x2xf32, #tpu.memory_space<vmem>>, vector<16x2xf32>
    %cst_158 = arith.constant dense<0.000000e+00> : vector<8x2xf32>
    %245 = tpu.matmul %243, %244, %cst_158 {dimension_numbers = #tpu.dot_dimension_numbers<[1], [0], [0], [1], [0, 0, 1, 1], [], []>} : vector<8x16xf32>, vector<16x2xf32>, vector<8x2xf32> -> vector<8x2xf32>
    %c0_159 = arith.constant 0 : index
    %c0_160 = arith.constant 0 : index
    %246 = vector.load %arg46[%c0_159, %c0_160] : memref<1x2xf32, #tpu.memory_space<vmem>>, vector<1x2xf32>
    %247 = vector.broadcast %246 : vector<1x2xf32> to vector<8x2xf32>
    %248 = arith.addf %245, %247 : vector<8x2xf32>
    %cst_161 = arith.constant dense<0xFF800000> : vector<8xf32>
    %249 = vector.multi_reduction <maximumf>, %248, %cst_161 [1] : vector<8x2xf32> to vector<8xf32>
    %250 = vector.shape_cast %249 : vector<8xf32> to vector<8x1xf32>
    %251 = vector.broadcast %250 : vector<8x1xf32> to vector<8x2xf32>
    %252 = arith.subf %248, %251 : vector<8x2xf32>
    %253 = math.exp %252 : vector<8x2xf32>
    %cst_162 = arith.constant dense<0.000000e+00> : vector<8xf32>
    %254 = vector.multi_reduction <add>, %253, %cst_162 [1] : vector<8x2xf32> to vector<8xf32>
    %255 = vector.shape_cast %254 : vector<8xf32> to vector<8x1xf32>
    %256 = math.log %255 : vector<8x1xf32>
    %257 = arith.addf %250, %256 : vector<8x1xf32>
    %258 = vector.broadcast %257 : vector<8x1xf32> to vector<8x2xf32>
    %259 = arith.subf %248, %258 : vector<8x2xf32>
    %c0_163 = arith.constant 0 : index
    %c0_164 = arith.constant 0 : index
    %260 = vector.load %arg47[%c0_163, %c0_164] : memref<8x2xf32, #tpu.memory_space<vmem>>, vector<8x2xf32>
    tpu.vector_store %arg47[%c0_163, %c0_164], %259 {strides = array<i32>} : memref<8x2xf32, #tpu.memory_space<vmem>>, vector<8x2xf32>,
    return
  }
}

</mosaic_0001>

<bundles_post_ra>
// kernel: node_nnconv_forward.1
= control target key start
LH: loop header
LB: loop body
LE: loop exit
PB: predicated region body
PF: predicated region fallthrough
CT: control target
= control target key end

     0   :  { %s7077_s3 = smov 12   ;;  %v7078_v0 = vmov 0   ;;  %s7079_s7 = smov 5   ;;  %vm508_vm0 = vcmask 1042432   ;;  %vm196_vm1 = vcmask 154624   ;;  %v8905_v58 = vmov 0.0   ;;  %s8904_s0 = inlined_call_operand.smem [shape: u32[48], index: -1, kind: input, shape index: {}] }
   0x1   :  { %s5918_s6 = sld [smem:[%s8904_s0 + %s7077_s3]]   ;;  %6905 = vset.pattern.permute.xlu0 %v7078_v0  ;;  %6906 = vset.pattern.permute.xlu1 %v7078_v0  ;;  %s7080_s14 = smov 10   ;;  %vm245_vm2 = vcmask 261120   ;;  %vm1029_vm6 = vcmask 64512  }
   0x2   :  { %s5911_s10 = sld [smem:[%s8904_s0 + %s7079_s7]]   ;;  %s7081_s18 = smov 11   ;;  %737 = vmatprep.mubr.f32.mxu1 %v8905_v58 }
   0x3   :  { %s1_s13 = sld [smem:[%s8904_s0]]   ;;  %s7082_s22 = smov 14  }
   0x4   :  { %s5916_s17 = sld [smem:[%s8904_s0 + %s7080_s14]]   ;;  %s7084_s26 = smov 4  }
   0x5   :  { %s5917_s21 = sld [smem:[%s8904_s0 + %s7081_s18]]   ;;  %s7085_s30 = smov 13  }
   0x6   :  { %s7164_s25 = sld [smem:[%s8904_s0 + %s7082_s22]]   ;;  %s7086_s4 = smov 8  }
   0x7   :  { %v494_v1 = vld [vmem:[%s5918_s6 + $0x10] sm:$0x7]  ;;  %v493_v2 = vld [vmem:[%s5918_s6 + $0x8] sm:$0xff]  ;;  %v492_v5 = vld [vmem:[%s5918_s6] sm:$0xff]  ;;  %s5910_s29 = sld [smem:[%s8904_s0 + %s7084_s26]]   ;;  %s7087_s8 = smov 9  }
   0x8   :  { %6639 = vmatprep.subr.msk.mxu0 %vm508_vm0, %v494_v1  ;;  %v194_v3 = vld [vmem:[%s5911_s10] sm:$0xff]  ;;  %v195_v4 = vld [vmem:[%s5911_s10 + $0x8] sm:$0xff]  ;;  %s5919_s3 = sld [smem:[%s8904_s0 + %s7085_s30]]   ;;  %s7088_s12 = smov 6  }
   0x9   :  { %6640 = vmatpush3.msk.msra.mxu0 %vm508_vm0, %v494_v1  ;;  %v197_v6 = vsel %vm196_vm1, %v194_v3, 0.0  ;;  %v198_v7 = vsel %vm196_vm1, %v195_v4, 0.0  ;;  %v288_v9 = vld [vmem:[%s1_s13] sm:$0xff]  ;;  %v289_v11 = vld [vmem:[%s1_s13 + $0x8] sm:$0xff]  ;;  %s5914_s7 = sld [smem:[%s8904_s0 + %s7086_s4]]   ;;  %s7089_s16 = smov 7  }
   0xa   :  { %6641 = vmatprep.subr.mxu0 %v493_v2  ;;  %v199_v8 = vadd.f32 %v198_v7, %v197_v6  ;;  %291 = vperm.xlu0 %6905, %v288_v9   ;;  %v5954_v34 = vld [vmem:[%s5916_s17] ss:$0 sm:$0xff]  ;;  %s7202_s11 = sld [smem:[%s8904_s0 + %s7087_s8]]   ;;  %s7090_s20 = smov 15  }
   0xb   :  { %6642 = vmatpush3.msra.mxu0 %v493_v2  ;;  %v5955_v37 = vld [vmem:[%s5917_s21] ss:$0 sm:$0xff]  ;;  %s7256_s15 = sld [smem:[%s8904_s0 + %s7088_s12]]   ;;  %s7091_s24 = smov 16  }
   0xc   :  { %6643 = vmatprep.subr.mxu0 %v492_v5  ;;  %v200_v10 = vrot.slane %v199_v8, 4  ;;  %v618_v42 = vld [vmem:[%s7164_s25 + $0xc8] sm:$0xff]  ;;  %v620_v43 = vld [vmem:[%s7164_s25 + $0xd8] sm:$0xff]  ;;  %v617_v44 = vld [vmem:[%s7164_s25 + $0xc0] sm:$0xff]  ;;  %s7303_s19 = sld [smem:[%s8904_s0 + %s7089_s16]]   ;;  %s7092_s28 = smov 18  }
   0xd   :  { %6644 = vmatpush3.msra.mxu0 %v492_v5  ;;  %697 = vmatprep.subr.mxu1 %v618_v42  ;;  %v619_v45 = vld [vmem:[%s7164_s25 + $0xd0] sm:$0xff]  ;;  %v610_v46 = vld [vmem:[%s7164_s25 + $0x88] sm:$0xff]  ;;  %v612_v47 = vld [vmem:[%s7164_s25 + $0x98] sm:$0xff]  ;;  %s5921_s23 = sld [smem:[%s8904_s0 + %s7090_s20]]   ;;  %s7094_s2 = smov 20  }
   0xe   :  { %v201_v12 = vadd.f32 %v200_v10, %v199_v8  ;;  %294 = vperm.xlu0 %6905, %v289_v11   ;;  %774 = vmatprep.subr.mxu0 %v620_v43  ;;  %v609_v48 = vld [vmem:[%s7164_s25 + $0x80] sm:$0xff]  ;;  %v611_v49 = vld [vmem:[%s7164_s25 + $0x90] sm:$0xff]  ;;  %v602_v50 = vld [vmem:[%s7164_s25 + $0x48] sm:$0xff]  ;;  %s7527_s27 = sld [smem:[%s8904_s0 + %s7091_s24]]   ;;  %s7095_s6 = smov 3  }
   0xf   :  { %698 = vmatpush1.msra.mxu1 %v617_v44  ;;  %v604_v51 = vld [vmem:[%s7164_s25 + $0x58] sm:$0xff]  ;;  %v601_v52 = vld [vmem:[%s7164_s25 + $0x40] sm:$0xff]  ;;  %v603_v53 = vld [vmem:[%s7164_s25 + $0x50] sm:$0xff]  ;;  %s5924_s1 = sld [smem:[%s8904_s0 + %s7092_s28]]   ;;  %s7096_s10 = smov 19  }
  0x10   :  { %v202_v13 = vrot.slane %v201_v12, 2  ;;  %699 = vmatprep.subr.mxu1 %v610_v46  ;;  %v594_v54 = vld [vmem:[%s7164_s25 + $0x8] sm:$0xff]  ;;  %v596_v55 = vld [vmem:[%s7164_s25 + $0x18] sm:$0xff]  ;;  %v593_v56 = vld [vmem:[%s7164_s25] sm:$0xff]  ;;  %s7574_s5 = sld [smem:[%s8904_s0 + %s7094_s2]]   ;;  %s7097_s14 = smov 17  }
  0x11   :  { %700 = vmatpush1.msra.mxu1 %v609_v48  ;;  %v595_v57 = vld [vmem:[%s7164_s25 + $0x10] sm:$0xff]  ;;  %v622_v59 = vld [vmem:[%s7164_s25 + $0xe8] sm:$0xff]  ;;  %v624_v60 = vld [vmem:[%s7164_s25 + $0xf8] sm:$0xff]  ;;  %s5909_s9 = sld [smem:[%s8904_s0 + %s7095_s6]]   ;;  %s7102_s4 = smov 25  }
  0x12   :  { %v203_v14 = vadd.f32 %v202_v13, %v201_v12  ;;  %701 = vmatprep.subr.mxu1 %v602_v50  ;;  %v244_v61 = vld [vmem:[%s5910_s29] sm:$0xff]  ;;  %v598_v42 = vld [vmem:[%s7164_s25 + $0x28] sm:$0xff]  ;;  %v600_v43 = vld [vmem:[%s7164_s25 + $0x38] sm:$0xff]  ;;  %s5925_s13 = sld [smem:[%s8904_s0 + %s7096_s10]]   ;;  %s7103_s8 = smov 23  }
  0x13   :  { %702 = vmatpush1.msra.mxu1 %v601_v52  ;;  %v246_v62 = vsel %vm245_vm2, %v244_v61, 0.0  ;;  %v5957_v48 = vld [vmem:[%s7202_s11] ss:$0 sm:$0xff]  ;;  %s5923_s18 = sld [smem:[%s8904_s0 + %s7097_s14]]   ;;  %s7104_s12 = smov 27  }
  0x14   :  { %v204_v15 = vrot.slane %v203_v14, 1  ;;  %703 = vmatprep.subr.mxu1 %v594_v54  ;;  %v247_v63 = vrot.slane %v246_v62, 4  ;;  %v357_v54 = vld [vmem:[%s7256_s15 + $0xc8] sm:$0xff]  ;;  %s5929_s11 = sld [smem:[%s8904_s0 + %s7103_s8]]   ;;  %s7105_s17 = smov 28  }
  0x15   :  { %704 = vmatpush1.msra.mxu1 %v593_v56  ;;  %v356_v56 = vld [vmem:[%s7256_s15 + $0xc0] sm:$0xff]  ;;  %s5933_s16 = sld [smem:[%s8904_s0 + %s7104_s12]]   ;;  %s7106_s21 = smov 1  }
  0x16   :  { %v205_v16 = vadd.f32 %v204_v15, %v203_v14  ;;  %851 = vmatprep.subr.mxu1 %v622_v59  ;;  %v248_v0 = vadd.f32 %v247_v63, %v246_v62  ;;  %v349_v59 = vld [vmem:[%s7256_s15 + $0x88] sm:$0xff]  ;;  %v350_v62 = vld [vmem:[%s7256_s15 + $0x90] sm:$0xff]  ;;  %s8721_s20 = sld [smem:[%s8904_s0 + %s7105_s17]]   ;;  %s7108_s29 = smov 31  }
  0x17   :  { %v341_v63 = vld [vmem:[%s7256_s15 + $0x48] sm:$0xff]  ;;  %s5907_s24 = sld [smem:[%s8904_s0 + %s7106_s21]]   ;;  %s7109_s2 = smov 30  }
  0x18   :  { %v207_v17 = vmul.f32 0.0625, %v205_v16  ;;  %v249_v1 = vrot.slane %v248_v0, 2  ;;  %s7110_s6 = smov 32   ;;  %s7111_s10 = smov 34  }
  0x19   :  { %s7112_s14 = smov 33   ;;  %s7118_s8 = smov 39  }
  0x1a   :  { %v208_v18 = vsub.f32 %v194_v3, %v207_v17  ;;  %v209_v19 = vsub.f32 %v195_v4, %v207_v17  ;;  %v250_v2 = vadd.f32 %v249_v1, %v248_v0  ;;  %v343_v0 = vld [vmem:[%s7256_s15 + $0x58] sm:$0xff]  ;;  %v340_v1 = vld [vmem:[%s7256_s15 + $0x40] sm:$0xff]  ;;  %s7119_s12 = smov 2   ;;  %s7120_s17 = smov 41  }
  0x1b   :  { %s7121_s21 = smov 42  }
  0x1c   :  { %v210_v20 = vmul.f32 %v208_v18, %v208_v18  ;;  %v211_v21 = vmul.f32 %v209_v19, %v209_v19  ;;  %v251_v3 = vrot.slane %v250_v2, 1 }
  0x1e   :  { %v212_v22 = vsel %vm196_vm1, %v210_v20, 0.0  ;;  %v213_v23 = vsel %vm196_vm1, %v211_v21, 0.0  ;;  %v252_v4 = vadd.f32 %v251_v3, %v250_v2  ;;  %v342_v2 = vld [vmem:[%s7256_s15 + $0x50] sm:$0xff]  ;;  %v333_v3 = vld [vmem:[%s7256_s15 + $0x8] sm:$0xff] }
  0x1f   :  { %v214_v24 = vadd.f32 %v213_v23, %v212_v22 }
  0x20   :  { %v254_v5 = vmul.f32 0.125, %v252_v4  ;;  %v335_v4 = vld [vmem:[%s7256_s15 + $0x18] sm:$0xff] }
  0x21   :  { %v215_v25 = vrot.slane %v214_v24, 4 }
  0x22   :  { %v255_v6 = vsub.f32 %v244_v61, %v254_v5  ;;  %v348_v61 = vld [vmem:[%s7256_s15 + $0x80] sm:$0xff] }
  0x23   :  { %v216_v26 = vadd.f32 %v215_v25, %v214_v24  ;;  %v621_v24 = vld [vmem:[%s7164_s25 + $0xe0] sm:$0xff]  ;;  %v623_v25 = vld [vmem:[%s7164_s25 + $0xf0] sm:$0xff] }
  0x24   :  { %v256_v7 = vmul.f32 %v255_v6, %v255_v6  ;;  %v332_v5 = vld [vmem:[%s7256_s15] sm:$0xff] }
  0x25   :  { %v217_v27 = vrot.slane %v216_v26, 2 }
  0x26   :  { %v257_v8 = vsel %vm245_vm2, %v256_v7, 0.0  ;;  %v361_v7 = vld [vmem:[%s7256_s15 + $0xe8] sm:$0xff] }
  0x27   :  { %v218_v28 = vadd.f32 %v217_v27, %v216_v26  ;;  %v258_v9 = vrot.slane %v257_v8, 4  ;;  %v614_v27 = vld [vmem:[%s7164_s25 + $0xa8] sm:$0xff] }
  0x29   :  { %v219_v29 = vrot.slane %v218_v28, 1  ;;  %v259_v10 = vadd.f32 %v258_v9, %v257_v8  ;;  %v363_v8 = vld [vmem:[%s7256_s15 + $0xf8] sm:$0xff] }
  0x2b   :  { %v220_v30 = vadd.f32 %v219_v29, %v218_v28  ;;  %v260_v11 = vrot.slane %v259_v10, 2  ;;  %v616_v28 = vld [vmem:[%s7164_s25 + $0xb8] sm:$0xff] }
  0x2d   :  { %v221_v31 = vmul.f32 0.0625, %v220_v30  ;;  %v261_v12 = vadd.f32 %v260_v11, %v259_v10  ;;  %v613_v30 = vld [vmem:[%s7164_s25 + $0xa0] sm:$0xff] }
  0x2f   :  { %v222_v32 = vadd.f32 1e-05, %v221_v31  ;;  %v262_v13 = vrot.slane %v261_v12, 1  ;;  %v615_v31 = vld [vmem:[%s7164_s25 + $0xb0] sm:$0xff] }
  0x31   :  { %6907 = vrsqrt.f32 %v222_v32  ;;  %v263_v14 = vadd.f32 %v262_v13, %v261_v12 }
  0x33   :  { %v264_v15 = vmul.f32 0.125, %v263_v14 }
  0x35   :  { %v265_v16 = vadd.f32 1e-05, %v264_v15 }
  0x37   :  { %6909 = vrsqrt.f32 %v265_v16 }
  0x3e   :  { %v6908_v33 = vpop.eup %6907 }
  0x3f   :  { %v224_v35 = vmul.f32 %v6908_v33, %v208_v18  ;;  %v225_v36 = vmul.f32 %v6908_v33, %v209_v19  ;;  %v5966_v18 = vld [vmem:[%s5919_s3] ss:$0 sm:$0xff]  ;;  %v284_v33 = vlaneseq }
  0x41   :  { %v233_v38 = vmul.f32 %v5954_v34, %v224_v35  ;;  %v234_v39 = vmul.f32 %v5954_v34, %v225_v36  ;;  %v5956_v34 = vld [vmem:[%s5914_s7] ss:$0 sm:$0xff]  ;;  %v606_v35 = vld [vmem:[%s7164_s25 + $0x68] sm:$0xff]  ;;  %v608_v36 = vld [vmem:[%s7164_s25 + $0x78] sm:$0xff]  ;;  %s5931_s7 = sld [smem:[%s8904_s0 + %s7102_s4]]   ;;  %s7117_s4 = smov 40  }
  0x43   :  { %v7153_v40 = vadd.f32 %v5955_v37, %v233_v38  ;;  %v7155_v41 = vadd.f32 %v5955_v37, %v234_v39  ;;  %v605_v38 = vld [vmem:[%s7164_s25 + $0x60] sm:$0xff]  ;;  %v607_v39 = vld [vmem:[%s7164_s25 + $0x70] sm:$0xff] }
  0x44   :  { %v6910_v23 = vpop.eup %6909 }
  0x45   :  { %9047 = vst [vmem:[#allocation2_spill] sm:$0xff] %v7153_v40  ;;  %9048 = vst [vmem:[#allocation3_spill] sm:$0xff] %v7155_v41  ;;  %6645 = vmatprep.mubr.msk.f32.mxu0 %vm196_vm1, %v7153_v40  ;;  %v267_v32 = vmul.f32 %v6910_v23, %v255_v6  ;;  %v334_v6 = vld [vmem:[%s7256_s15 + $0x10] sm:$0xff]  ;;  %v352_v23 = vld [vmem:[%s7256_s15 + $0xa0] sm:$0xff] }
  0x46   :  { %6646 = vmatmul.mubr.msk.f32.vlgmr.msra.gmra.mxu0 %vm196_vm1, %v7155_v41 }
  0x47   :  { %775 = vmatpush1.msra.mxu0 %v619_v45  ;;  %814 = vmatprep.mubr.f32.mxu0 %v8905_v58  ;;  %v275_v44 = vmul.f32 %v5956_v34, %v267_v32  ;;  %v7222_v45 = vand.u32 127, %v284_v33  ;;  %v338_v32 = vld [vmem:[%s7256_s15 + $0x30] sm:$0xff]  ;;  %v395_v34 = vld [vmem:[%s7303_s19 + $0xf8] sm:$0xff] }
  0x48   :  { %776 = vmatprep.subr.mxu0 %v612_v47  ;;  %v597_v47 = vld [vmem:[%s7164_s25 + $0x20] sm:$0xff] }
  0x49   :  { %777 = vmatpush1.msra.mxu0 %v611_v49  ;;  %9049 = vst [vmem:[#allocation4_spill] sm:$0xff] %v7222_v45  ;;  %v599_v49 = vld [vmem:[%s7164_s25 + $0x30] sm:$0xff]  ;;  %v7228_v50 = vadd.f32 %v5957_v48, %v275_v44  ;;  %v393_v44 = vld [vmem:[%s7303_s19 + $0xe8] sm:$0xff]  ;;  %s7107_s25 = smov 29  }
  0x4a   :  { %778 = vmatprep.subr.mxu0 %v604_v51  ;;  %v409_v48 = vld [vmem:[%s7303_s19 + $0x168] sm:$0xff]  ;;  %s5935_s28 = sld [smem:[%s8904_s0 + %s7107_s25]]   ;;  %s7122_s25 = smov 43  }
  0x4b   :  { %779 = vmatpush1.msra.mxu0 %v603_v53 }
  0x4c   :  { %780 = vmatprep.subr.mxu0 %v596_v55  ;;  %v359_v55 = vld [vmem:[%s7256_s15 + $0xd8] sm:$0xff] }
  0x4d   :  { %781 = vmatpush1.msra.mxu0 %v595_v57  ;;  %v358_v57 = vld [vmem:[%s7256_s15 + $0xd0] sm:$0xff] }
  0x4e   :  { %928 = vmatprep.subr.mxu0 %v624_v60  ;;  %v351_v60 = vld [vmem:[%s7256_s15 + $0x98] sm:$0xff] }
  0x85   :  { %v292_v46 = vpop.permute.xlu0 %291 }
  0x86   :  { %vm296_vm5 = vcmp.eq.s32.totalorder %v292_v46, %v7222_v45  ;;  %v425_v46 = vld [vmem:[%s7303_s19 + $0x1e8] sm:$0xff] }
  0x87   :  { %v7237_v52 = vsel %vm296_vm5, 1.0, %v8905_v58 }
  0x89   :  { %v295_v51 = vpop.permute.xlu0 %294 }
  0x8a   :  { %vm297_vm7 = vcmp.eq.s32.totalorder %v295_v51, %v7222_v45  ;;  %v424_v51 = vld [vmem:[%s7303_s19 + $0x1e0] sm:$0xff]  ;;  %v7847_v45 = vld [vmem:[%s7303_s19 + $0x1e8] sm:$0xff] }
  0x8b   :  { %v7248_v53 = vsel %vm297_vm7, 1.0, %v8905_v58  ;;  %9086 = vst [vmem:[#allocation41_spill] sm:$0xff] %v7847_v45 }
  0x8c   :  { %9050 = vst [vmem:[#allocation5_spill] sm:$0xff] %v7248_v53 }
 0x106   :  { %v6647_v17 = vpop.f32.mrf.mxu0 }
 0x107   :  { %v584_v21 = vadd.f32 %v6647_v17, %v5966_v18 }
 0x108   :  { %v578_v19 = vpop.f32.mrf.mxu0 }
 0x109   :  { %v579_v20 = vadd.f32 %v5966_v18, %v578_v19  ;;  %v590_v29 = vmul.f32 0.1, %v584_v21  ;;  %vm588_vm4 = vcmp.gt.f32.partialorder %v584_v21, 0.0  ;;  %v360_v18 = vld [vmem:[%s7256_s15 + $0xe0] sm:$0xff]  ;;  %v362_v19 = vld [vmem:[%s7256_s15 + $0xf0] sm:$0xff] }
 0x10b   :  { %vm587_vm3 = vcmp.gt.f32.partialorder %v579_v20, 0.0  ;;  %v589_v22 = vmul.f32 0.1, %v579_v20  ;;  %v592_v37 = vsel %vm588_vm4, %v584_v21, %v590_v29  ;;  %v353_v21 = vld [vmem:[%s7256_s15 + $0xa8] sm:$0xff] }
 0x10c   :  { %v337_v29 = vld [vmem:[%s7256_s15 + $0x28] sm:$0xff] }
 0x10d   :  { %v591_v26 = vsel %vm587_vm3, %v579_v20, %v589_v22  ;;  %v355_v22 = vld [vmem:[%s7256_s15 + $0xb8] sm:$0xff] }
 0x10e   :  { %5970 = vmatmul.mubr.msk.f32.vlgmr.msra.gmra.mxu1 %vm245_vm2, %v591_v26  ;;  %5972 = vmatmul.mubr.msk.f32.vlgmr.msra.gmra.mxu0 %vm245_vm2, %v591_v26 }
 0x10f   :  { %852 = vmatpush1.msra.mxu1 %v621_v24  ;;  %929 = vmatpush1.msra.mxu0 %v623_v25  ;;  %v354_v24 = vld [vmem:[%s7256_s15 + $0xb0] sm:$0xff]  ;;  %v345_v25 = vld [vmem:[%s7256_s15 + $0x68] sm:$0xff] }
 0x110   :  { %853 = vmatprep.subr.mxu1 %v614_v27  ;;  %930 = vmatprep.subr.mxu0 %v616_v28  ;;  %v344_v27 = vld [vmem:[%s7256_s15 + $0x60] sm:$0xff]  ;;  %v346_v28 = vld [vmem:[%s7256_s15 + $0x70] sm:$0xff] }
 0x111   :  { %743 = vmatprep.mubr.f32.mxu1 %v8905_v58  ;;  %820 = vmatprep.mubr.f32.mxu0 %v8905_v58 }
 0x112   :  { %854 = vmatpush1.msra.mxu1 %v613_v30  ;;  %931 = vmatpush1.msra.mxu0 %v615_v31  ;;  %v339_v30 = vld [vmem:[%s7256_s15 + $0x38] sm:$0xff]  ;;  %v336_v31 = vld [vmem:[%s7256_s15 + $0x20] sm:$0xff] }
 0x113   :  { %5971 = vmatmul.mubr.msk.f32.gmra.mxu1 %vm245_vm2, %v592_v37  ;;  %5973 = vmatmul.mubr.msk.f32.gmra.mxu0 %vm245_vm2, %v592_v37 }
 0x114   :  { %855 = vmatprep.subr.mxu1 %v606_v35  ;;  %932 = vmatprep.subr.mxu0 %v608_v36  ;;  %v427_v35 = vld [vmem:[%s7303_s19 + $0x1f8] sm:$0xff] }
 0x115   :  { %856 = vmatpush1.msra.mxu1 %v605_v38  ;;  %933 = vmatpush1.msra.mxu0 %v607_v39  ;;  %v379_v36 = vld [vmem:[%s7303_s19 + $0x78] sm:$0xff]  ;;  %v394_v38 = vld [vmem:[%s7303_s19 + $0xf0] sm:$0xff] }
 0x116   :  { %857 = vmatprep.subr.mxu1 %v598_v42  ;;  %934 = vmatprep.subr.mxu0 %v600_v43  ;;  %v426_v39 = vld [vmem:[%s7303_s19 + $0x1f0] sm:$0xff] }
 0x117   :  { %858 = vmatpush1.msra.mxu1 %v597_v47  ;;  %891 = vmatprep.mubr.f32.mxu1 %v8905_v58  ;;  %v378_v42 = vld [vmem:[%s7303_s19 + $0x70] sm:$0xff]  ;;  %v377_v47 = vld [vmem:[%s7303_s19 + $0x68] sm:$0xff] }
 0x118   :  { %935 = vmatpush1.msra.mxu0 %v599_v49  ;;  %968 = vmatprep.mubr.f32.mxu0 %v8905_v58  ;;  %v410_v43 = vld [vmem:[%s7303_s19 + $0x170] sm:$0xff]  ;;  %v392_v49 = vld [vmem:[%s7303_s19 + $0xe0] sm:$0xff] }
 0x119   :  { %5974 = vmatmul.mubr.msk.f32.vlgmr.msra.gmra.mxu1 %vm245_vm2, %v591_v26  ;;  %5976 = vmatmul.mubr.msk.f32.vlgmr.msra.gmra.mxu0 %vm245_vm2, %v591_v26  ;;  %v347_v26 = vld [vmem:[%s7256_s15 + $0x78] sm:$0xff] }
 0x11a   :  { %897 = vmatprep.mubr.f32.mxu1 %v8905_v58  ;;  %974 = vmatprep.mubr.f32.mxu0 %v8905_v58 }
 0x11b   :  { %6648 = vmatprep.subr.mxu1 %v7228_v50  ;;  %1141 = vmatprep.subr.mxu0 %v357_v54  ;;  %v376_v54 = vld [vmem:[%s7303_s19 + $0x60] sm:$0xff] }
 0x11c   :  { %6649 = vmatpush3.msra.mxu1 %v7228_v50  ;;  %1142 = vmatpush1.msra.mxu0 %v356_v56  ;;  %v391_v56 = vld [vmem:[%s7303_s19 + $0xd8] sm:$0xff] }
 0x11d   :  { %5975 = vmatmul.mubr.msk.f32.gmra.mxu1 %vm245_vm2, %v592_v37  ;;  %5977 = vmatmul.mubr.msk.f32.gmra.mxu0 %vm245_vm2, %v592_v37  ;;  %v411_v37 = vld [vmem:[%s7303_s19 + $0x178] sm:$0xff] }
 0x11e   :  { %6650 = vmatprep.mubr.msk.f32.mxu1 %vm1029_vm6, %v7237_v52  ;;  %1181 = vmatprep.mubr.f32.mxu0 %v8905_v58 }
 0x11f   :  { %1218 = vmatprep.subr.mxu1 %v359_v55  ;;  %1143 = vmatprep.subr.mxu0 %v349_v59  ;;  %v408_v55 = vld [vmem:[%s7303_s19 + $0x160] sm:$0xff]  ;;  %v375_v59 = vld [vmem:[%s7303_s19 + $0x58] sm:$0xff] }
 0x120   :  { %1144 = vmatpush1.msra.mxu0 %v348_v61  ;;  %v390_v61 = vld [vmem:[%s7303_s19 + $0xd0] sm:$0xff] }
 0x121   :  { %6651 = vmatmul.mubr.msk.f32.vlgmr.msra.gmra.mxu1 %vm1029_vm6, %v7248_v53  ;;  %1145 = vmatprep.subr.mxu0 %v341_v63  ;;  %v374_v63 = vld [vmem:[%s7303_s19 + $0x50] sm:$0xff] }
 0x122   :  { %1258 = vmatprep.mubr.f32.mxu1 %v8905_v58  ;;  %1219 = vmatpush1.msra.mxu1 %v358_v57  ;;  %v423_v57 = vld [vmem:[%s7303_s19 + $0x1d8] sm:$0xff] }
 0x123   :  { %1220 = vmatprep.subr.mxu1 %v351_v60  ;;  %1146 = vmatpush1.msra.mxu0 %v340_v1  ;;  %v407_v60 = vld [vmem:[%s7303_s19 + $0x158] sm:$0xff]  ;;  %v389_v1 = vld [vmem:[%s7303_s19 + $0xc8] sm:$0xff] }
 0x124   :  { %1221 = vmatpush1.msra.mxu1 %v350_v62  ;;  %1147 = vmatprep.subr.mxu0 %v333_v3  ;;  %v422_v62 = vld [vmem:[%s7303_s19 + $0x1d0] sm:$0xff]  ;;  %v373_v3 = vld [vmem:[%s7303_s19 + $0x48] sm:$0xff] }
 0x125   :  { %1222 = vmatprep.subr.mxu1 %v343_v0  ;;  %1148 = vmatpush1.msra.mxu0 %v332_v5  ;;  %v406_v0 = vld [vmem:[%s7303_s19 + $0x150] sm:$0xff]  ;;  %v388_v5 = vld [vmem:[%s7303_s19 + $0xc0] sm:$0xff] }
 0x126   :  { %1223 = vmatpush1.msra.mxu1 %v342_v2  ;;  %1295 = vmatprep.subr.mxu0 %v361_v7  ;;  %v421_v2 = vld [vmem:[%s7303_s19 + $0x1c8] sm:$0xff]  ;;  %v372_v7 = vld [vmem:[%s7303_s19 + $0x40] sm:$0xff] }
 0x127   :  { %1224 = vmatprep.subr.mxu1 %v335_v4  ;;  %v405_v4 = vld [vmem:[%s7303_s19 + $0x148] sm:$0xff] }
 0x128   :  { %1225 = vmatpush1.msra.mxu1 %v334_v6  ;;  %v420_v6 = vld [vmem:[%s7303_s19 + $0x1c0] sm:$0xff] }
 0x129   :  { %1372 = vmatprep.subr.mxu1 %v363_v8  ;;  %v404_v8 = vld [vmem:[%s7303_s19 + $0x140] sm:$0xff] }
 0x1ce   :  { %v7276_v9 = vpop.f32.mrf.mxu1 }
 0x1d0   :  { %v7278_v10 = vpop.f32.mrf.mxu1 }
 0x1d3   :  { %v7280_v11 = vpop.f32.mrf.mxu1 }
 0x1d5   :  { %v7282_v12 = vpop.f32.mrf.mxu1 }
 0x1d9   :  { %v7284_v13 = vpop.f32.mrf.mxu1 }
 0x1db   :  { %v7286_v14 = vpop.f32.mrf.mxu1 }
 0x1dd   :  { %v7288_v15 = vpop.f32.mrf.mxu1 }
 0x1df   :  { %v7290_v16 = vpop.f32.mrf.mxu1 }
 0x1e1   :  { %v6652_v17 = vpop.f32.mrf.mxu1 }
 0x1e3   :  { %v1102_v20 = vpop.f32.mrf.mxu1 }
 0x1e4   :  { %5980 = vmatmul.mubr.msk.f32.vlgmr.msra.gmra.mxu0 %vm245_vm2, %v1102_v20  ;;  %5982 = vmatmul.mubr.msk.f32.vlgmr.msra.gmra.mxu1 %vm245_vm2, %v1102_v20 }
 0x1e5   :  { %1296 = vmatpush1.msra.mxu0 %v360_v18  ;;  %1373 = vmatpush1.msra.mxu1 %v362_v19  ;;  %v419_v18 = vld [vmem:[%s7303_s19 + $0x1b8] sm:$0xff] }
 0x1e6   :  { %1297 = vmatprep.subr.mxu0 %v353_v21  ;;  %1374 = vmatprep.subr.mxu1 %v355_v22  ;;  %v371_v19 = vld [vmem:[%s7303_s19 + $0x38] sm:$0xff]  ;;  %v386_v21 = vld [vmem:[%s7303_s19 + $0xb0] sm:$0xff] }
 0x1e7   :  { %1187 = vmatprep.mubr.f32.mxu0 %v8905_v58  ;;  %1264 = vmatprep.mubr.f32.mxu1 %v8905_v58  ;;  %v418_v22 = vld [vmem:[%s7303_s19 + $0x1b0] sm:$0xff] }
 0x1e8   :  { %1298 = vmatpush1.msra.mxu0 %v352_v23  ;;  %1375 = vmatpush1.msra.mxu1 %v354_v24  ;;  %v370_v23 = vld [vmem:[%s7303_s19 + $0x30] sm:$0xff] }
 0x1e9   :  { %5981 = vmatmul.mubr.msk.f32.gmra.mxu0 %vm245_vm2, %v6652_v17  ;;  %5983 = vmatmul.mubr.msk.f32.gmra.mxu1 %vm245_vm2, %v6652_v17  ;;  %v402_v24 = vld [vmem:[%s7303_s19 + $0x130] sm:$0xff] }
 0x1ea   :  { %1299 = vmatprep.subr.mxu0 %v345_v25  ;;  %1376 = vmatprep.subr.mxu1 %v347_v26  ;;  %v385_v25 = vld [vmem:[%s7303_s19 + $0xa8] sm:$0xff] }
 0x1eb   :  { %1300 = vmatpush1.msra.mxu0 %v344_v27  ;;  %1377 = vmatpush1.msra.mxu1 %v346_v28  ;;  %v417_v26 = vld [vmem:[%s7303_s19 + $0x1a8] sm:$0xff] }
 0x1ec   :  { %1301 = vmatprep.subr.mxu0 %v337_v29  ;;  %1378 = vmatprep.subr.mxu1 %v339_v30  ;;  %v369_v27 = vld [vmem:[%s7303_s19 + $0x28] sm:$0xff]  ;;  %v384_v29 = vld [vmem:[%s7303_s19 + $0xa0] sm:$0xff] }
 0x1ed   :  { %1302 = vmatpush1.msra.mxu0 %v336_v31  ;;  %1335 = vmatprep.mubr.f32.mxu0 %v8905_v58  ;;  %v401_v28 = vld [vmem:[%s7303_s19 + $0x128] sm:$0xff]  ;;  %v416_v30 = vld [vmem:[%s7303_s19 + $0x1a0] sm:$0xff] }
 0x1ee   :  { %1379 = vmatpush1.msra.mxu1 %v338_v32  ;;  %1412 = vmatprep.mubr.f32.mxu1 %v8905_v58  ;;  %v368_v31 = vld [vmem:[%s7303_s19 + $0x20] sm:$0xff] }
 0x1ef   :  { %5984 = vmatmul.mubr.msk.f32.vlgmr.msra.gmra.mxu0 %vm245_vm2, %v1102_v20  ;;  %5986 = vmatmul.mubr.msk.f32.vlgmr.msra.gmra.mxu1 %vm245_vm2, %v1102_v20  ;;  %v403_v20 = vld [vmem:[%s7303_s19 + $0x138] sm:$0xff]  ;;  %v400_v32 = vld [vmem:[%s7303_s19 + $0x120] sm:$0xff] }
 0x1f0   :  { %1341 = vmatprep.mubr.f32.mxu0 %v8905_v58  ;;  %1418 = vmatprep.mubr.f32.mxu1 %v8905_v58 }
 0x1f1   :  { %6081 = vmatprep.subr.mxu0 %v395_v34  ;;  %6119 = vmatprep.subr.mxu1 %v427_v35  ;;  %v383_v34 = vld [vmem:[%s7303_s19 + $0x98] sm:$0xff] }
 0x1f2   :  { %6082 = vmatpush3.msra.mxu0 %v379_v36  ;;  %6120 = vmatpush3.msra.mxu1 %v411_v37  ;;  %v415_v35 = vld [vmem:[%s7303_s19 + $0x198] sm:$0xff] }
 0x1f3   :  { %5985 = vmatmul.mubr.msk.f32.gmra.mxu0 %vm245_vm2, %v6652_v17  ;;  %5987 = vmatmul.mubr.msk.f32.gmra.mxu1 %vm245_vm2, %v6652_v17  ;;  %v387_v17 = vld [vmem:[%s7303_s19 + $0xb8] sm:$0xff] }
 0x1f4   :  { %6083 = vmatprep.subr.mxu0 %v394_v38  ;;  %6121 = vmatprep.subr.mxu1 %v426_v39  ;;  %v367_v36 = vld [vmem:[%s7303_s19 + $0x18] sm:$0xff]  ;;  %v382_v38 = vld [vmem:[%s7303_s19 + $0x90] sm:$0xff] }
 0x1f5   :  { %6084 = vmatpush3.msra.mxu0 %v378_v42  ;;  %6122 = vmatpush3.msra.mxu1 %v410_v43  ;;  %v399_v37 = vld [vmem:[%s7303_s19 + $0x118] sm:$0xff]  ;;  %v414_v39 = vld [vmem:[%s7303_s19 + $0x190] sm:$0xff] }
 0x1f6   :  { %6085 = vmatprep.subr.mxu0 %v393_v44  ;;  %6123 = vmatprep.subr.mxu1 %v425_v46  ;;  %v366_v42 = vld [vmem:[%s7303_s19 + $0x10] sm:$0xff]  ;;  %v381_v44 = vld [vmem:[%s7303_s19 + $0x88] sm:$0xff] }
 0x1f7   :  { %6086 = vmatpush3.msra.mxu0 %v377_v47  ;;  %6124 = vmatpush3.msra.mxu1 %v409_v48  ;;  %v398_v43 = vld [vmem:[%s7303_s19 + $0x110] sm:$0xff]  ;;  %v413_v46 = vld [vmem:[%s7303_s19 + $0x188] sm:$0xff] }
 0x1f8   :  { %6087 = vmatprep.subr.mxu0 %v392_v49  ;;  %6125 = vmatprep.subr.mxu1 %v424_v51  ;;  %v365_v47 = vld [vmem:[%s7303_s19 + $0x8] sm:$0xff]  ;;  %v380_v49 = vld [vmem:[%s7303_s19 + $0x80] sm:$0xff] }
 0x1f9   :  { %6088 = vmatpush3.msra.mxu0 %v376_v54  ;;  %6126 = vmatpush3.msra.mxu1 %v408_v55  ;;  %v397_v48 = vld [vmem:[%s7303_s19 + $0x108] sm:$0xff]  ;;  %v412_v51 = vld [vmem:[%s7303_s19 + $0x180] sm:$0xff] }
 0x1fa   :  { %6089 = vmatprep.subr.mxu0 %v391_v56  ;;  %6127 = vmatprep.subr.mxu1 %v423_v57  ;;  %v364_v54 = vld [vmem:[%s7303_s19] sm:$0xff]  ;;  %v459_v56 = vld [vmem:[%s7303_s19 + $0x2f8] sm:$0xff] }
 0x1fb   :  { %6090 = vmatpush3.msra.mxu0 %v375_v59  ;;  %6128 = vmatpush3.msra.mxu1 %v407_v60  ;;  %v396_v55 = vld [vmem:[%s7303_s19 + $0x100] sm:$0xff]  ;;  %v491_v57 = vld [vmem:[%s7303_s19 + $0x3f8] sm:$0xff]  ;;  %v816_v59 = vpop.f32.mrf.mxu0 }
 0x1fc   :  { %6091 = vmatprep.subr.mxu0 %v390_v61  ;;  %6129 = vmatprep.subr.mxu1 %v422_v62  ;;  %v7395_v62 = vshrl.u32 %v284_v33, 7 }
 0x1fd   :  { %6092 = vmatpush3.msra.mxu0 %v374_v63  ;;  %6130 = vmatpush3.msra.mxu1 %v406_v0  ;;  %v818_v60 = vpop.f32.mrf.mxu0 }
 0x1fe   :  { %6093 = vmatprep.subr.mxu0 %v389_v1  ;;  %6131 = vmatprep.subr.mxu1 %v421_v2  ;;  %9051 = vst [vmem:[#allocation6_spill] sm:$0xff] %v7395_v62  ;;  %v7398_v0 = vsub.s32 0, %v7395_v62  ;;  %v7401_v1 = vsub.s32 2, %v7395_v62  ;;  %v7403_v2 = vld [vmem:[%s5921_s23] sm:$0xff]  ;;  %s7099_s23 = smov 22  }
 0x1ff   :  { %6094 = vmatpush3.msra.mxu0 %v373_v3  ;;  %6132 = vmatpush3.msra.mxu1 %v405_v4  ;;  %v822_v61 = vpop.f32.mrf.mxu0  ;;  %v7406_v3 = vsub.s32 1, %v7395_v62  ;;  %v7409_v4 = vsub.s32 3, %v7395_v62  ;;  %s8311_s26 = sld [smem:[%s8904_s0 + %s7099_s23]]   ;;  %s7114_s23 = smov 35  }
 0x200   :  { %6095 = vmatprep.subr.mxu0 %v388_v5  ;;  %6133 = vmatprep.subr.mxu1 %v420_v6  ;;  %9052 = vst [vmem:[#allocation7_spill] sm:$0xff] %v7398_v0  ;;  %9053 = vst [vmem:[#allocation8_spill] sm:$0xff] %v7401_v1  ;;  %v630_v33 = vrot.slane %v7403_v2, %v7398_v0  ;;  %v638_v6 = vrot.slane %v7403_v2, %v7401_v1 }
 0x201   :  { %6096 = vmatpush3.msra.mxu0 %v372_v7  ;;  %6134 = vmatpush3.msra.mxu1 %v404_v8  ;;  %v824_v63 = vpop.f32.mrf.mxu0  ;;  %9054 = vst [vmem:[#allocation9_spill] sm:$0xff] %v7406_v3  ;;  %9055 = vst [vmem:[#allocation10_spill] sm:$0xff] %v7409_v4  ;;  %v634_v7 = vrot.slane %v7403_v2, %v7406_v3  ;;  %v642_v8 = vrot.slane %v7403_v2, %v7409_v4 }
 0x202   :  { %6097 = vmatprep.subr.mxu0 %v387_v17  ;;  %6135 = vmatprep.subr.mxu1 %v419_v18  ;;  %v740_v18 = vadd.f32 %v7276_v9, %v630_v33 }
 0x203   :  { %6098 = vmatpush3.msra.mxu0 %v371_v19  ;;  %6136 = vmatpush3.msra.mxu1 %v403_v20  ;;  %v7411_v5 = vpop.f32.mrf.mxu0  ;;  %v817_v19 = vadd.f32 %v816_v59, %v638_v6  ;;  %v742_v20 = vadd.f32 %v7278_v10, %v634_v7  ;;  %v748_v9 = vadd.f32 %v7282_v12, %v634_v7  ;;  %v474_v7 = vld [vmem:[%s7303_s19 + $0x370] sm:$0xff] }
 0x204   :  { %6099 = vmatprep.subr.mxu0 %v386_v21  ;;  %6137 = vmatprep.subr.mxu1 %v418_v22  ;;  %v819_v21 = vadd.f32 %v818_v60, %v642_v8  ;;  %vm981_vm8 = vcmp.gt.f32.partialorder %v740_v18, 0.0  ;;  %v825_v10 = vadd.f32 %v824_v63, %v642_v8  ;;  %v458_v63 = vld [vmem:[%s7303_s19 + $0x2f0] sm:$0xff] }
 0x205   :  { %6100 = vmatpush3.msra.mxu0 %v370_v23  ;;  %6138 = vmatpush3.msra.mxu1 %v402_v24  ;;  %v972_v17 = vpop.f32.mrf.mxu0  ;;  %v997_v23 = vmul.f32 0.1, %v740_v18  ;;  %v999_v24 = vmul.f32 0.1, %v817_v19  ;;  %vm983_vm9 = vcmp.gt.f32.partialorder %v817_v19, 0.0  ;;  %vm982_vm10 = vcmp.gt.f32.partialorder %v742_v20, 0.0 }
 0x206   :  { %6101 = vmatprep.subr.mxu0 %v385_v25  ;;  %6139 = vmatprep.subr.mxu1 %v417_v26  ;;  %v7426_v25 = vsub.s32 5, %v7395_v62  ;;  %v7429_v26 = vsub.s32 7, %v7395_v62  ;;  %vm984_vm11 = vcmp.gt.f32.partialorder %v819_v21, 0.0  ;;  %vm990_vm12 = vcmp.gt.f32.partialorder %v748_v9, 0.0 }
 0x207   :  { %6102 = vmatpush3.msra.mxu0 %v369_v27  ;;  %6140 = vmatpush3.msra.mxu1 %v401_v28  ;;  %v7423_v22 = vpop.f32.mrf.mxu0  ;;  %v998_v27 = vmul.f32 0.1, %v742_v20  ;;  %v1000_v28 = vmul.f32 0.1, %v819_v21  ;;  %v1015_v12 = vsel %vm983_vm9, %v817_v19, %v999_v24  ;;  %vm992_vm13 = vcmp.gt.f32.partialorder %v825_v10, 0.0 }
 0x208   :  { %6103 = vmatprep.subr.mxu0 %v384_v29  ;;  %6141 = vmatprep.subr.mxu1 %v416_v30  ;;  %9056 = vst [vmem:[#allocation11_spill] sm:$0xff] %v7429_v26 }
 0x209   :  { %6104 = vmatpush3.msra.mxu0 %v368_v31  ;;  %6142 = vmatpush3.msra.mxu1 %v400_v32  ;;  %v7431_v29 = vpop.f32.mrf.mxu0  ;;  %v746_v32 = vadd.f32 %v7280_v11, %v630_v33  ;;  %v490_v33 = vld [vmem:[%s7303_s19 + $0x3f0] sm:$0xff] }
 0x20a   :  { %6105 = vmatprep.subr.mxu0 %v383_v34  ;;  %6143 = vmatprep.subr.mxu1 %v415_v35  ;;  %v823_v34 = vadd.f32 %v822_v61, %v638_v6  ;;  %v7437_v35 = vrot.slane %v7403_v2, %v7426_v25  ;;  %v442_v6 = vld [vmem:[%s7303_s19 + $0x270] sm:$0xff] }
 0x20b   :  { %6106 = vmatpush3.msra.mxu0 %v367_v36  ;;  %6144 = vmatpush3.msra.mxu1 %v399_v37  ;;  %v7441_v36 = vrot.slane %v7403_v2, %v7429_v26  ;;  %v1013_v37 = vsel %vm981_vm8, %v740_v18, %v997_v23  ;;  %vm989_vm14 = vcmp.gt.f32.partialorder %v746_v32, 0.0  ;;  %v489_v23 = vld [vmem:[%s7303_s19 + $0x3e8] sm:$0xff] }
 0x20c   :  { %6107 = vmatprep.subr.mxu0 %v382_v38  ;;  %6145 = vmatprep.subr.mxu1 %v414_v39  ;;  %v1014_v38 = vsel %vm982_vm10, %v742_v20, %v998_v27  ;;  %vm991_vm15 = vcmp.gt.f32.partialorder %v823_v34, 0.0 }
 0x20d   :  { %6108 = vmatpush3.msra.mxu0 %v366_v42  ;;  %6146 = vmatpush3.msra.mxu1 %v398_v43  ;;  %v1016_v42 = vsel %vm984_vm11, %v819_v21, %v1000_v28  ;;  %v973_v59 = vadd.f32 %v972_v17, %v7441_v36  ;;  %v457_v21 = vld [vmem:[%s7303_s19 + $0x2e8] sm:$0xff] }
 0x20e   :  { %6109 = vmatprep.subr.mxu0 %v381_v44  ;;  %6147 = vmatprep.subr.mxu1 %v413_v46  ;;  %v1006_v44 = vmul.f32 0.1, %v748_v9  ;;  %v1008_v46 = vmul.f32 0.1, %v825_v10 }
 0x20f   :  { %6110 = vmatpush3.msra.mxu0 %v365_v47  ;;  %6148 = vmatpush3.msra.mxu1 %v397_v48  ;;  %v1004_v27 = vmul.f32 0.1, %v973_v59  ;;  %vm988_vm4 = vcmp.gt.f32.partialorder %v973_v59, 0.0 }
 0x210   :  { %6111 = vmatprep.subr.mxu0 %v380_v49  ;;  %6149 = vmatprep.subr.mxu1 %v412_v51  ;;  %v443_v51 = vld [vmem:[%s7303_s19 + $0x278] sm:$0xff]  ;;  %v1022_v8 = vsel %vm990_vm12, %v748_v9, %v1006_v44  ;;  %vm7093_vm12 = vmmov 0  }
 0x211   :  { %6112 = vmatpush3.msra.mxu0 %v364_v54  ;;  %6150 = vmatpush3.msra.mxu1 %v396_v55  ;;  %v475_v54 = vld [vmem:[%s7303_s19 + $0x378] sm:$0xff]  ;;  %v1005_v55 = vmul.f32 0.1, %v746_v32 }
 0x212   :  { %6157 = vmatprep.subr.mxu0 %v459_v56  ;;  %6195 = vmatprep.subr.mxu1 %v491_v57  ;;  %v1007_v56 = vmul.f32 0.1, %v823_v34  ;;  %v896_v57 = vadd.f32 %v7286_v14, %v7437_v35  ;;  %v1024_v14 = vsel %vm992_vm13, %v825_v10, %v1008_v46  ;;  %v1020_v46 = vsel %vm988_vm4, %v973_v59, %v1004_v27  ;;  %v438_v59 = vld [vmem:[%s7303_s19 + $0x250] sm:$0xff] }
 0x213   :  { %v1021_v28 = vsel %vm989_vm14, %v746_v32, %v1005_v55  ;;  %v471_v55 = vld [vmem:[%s7303_s19 + $0x358] sm:$0xff]  ;;  %vm1818_vm14 = vcmask 130048  }
 0x214   :  { %v1002_v24 = vmul.f32 0.1, %v896_v57  ;;  %v1023_v9 = vsel %vm991_vm15, %v823_v34, %v1007_v56  ;;  %vm986_vm3 = vcmp.gt.f32.partialorder %v896_v57, 0.0  ;;  %v456_v34 = vld [vmem:[%s7303_s19 + $0x2e0] sm:$0xff]  ;;  %v454_v56 = vld [vmem:[%s7303_s19 + $0x2d0] sm:$0xff] }
 0x2a4   :  { %v1183_v30 = vpop.f32.mrf.mxu0  ;;  %v1260_v31 = vpop.f32.mrf.mxu1 }
 0x2a5   :  { %v1425_v48 = vmul.f32 %v1183_v30, %v1013_v37  ;;  %v1427_v49 = vmul.f32 %v1260_v31, %v1015_v12  ;;  %v441_v31 = vld [vmem:[%s7303_s19 + $0x268] sm:$0xff] }
 0x2a6   :  { %v1185_v39 = vpop.f32.mrf.mxu0  ;;  %v1262_v43 = vpop.f32.mrf.mxu1  ;;  %v473_v37 = vld [vmem:[%s7303_s19 + $0x368] sm:$0xff] }
 0x2a7   :  { %v1426_v11 = vmul.f32 %v1185_v39, %v1014_v38  ;;  %v1428_v47 = vmul.f32 %v1262_v43, %v1016_v42  ;;  %v488_v38 = vld [vmem:[%s7303_s19 + $0x3e0] sm:$0xff]  ;;  %v1018_v43 = vsel %vm986_vm3, %v896_v57, %v1002_v24  ;;  %v486_v57 = vld [vmem:[%s7303_s19 + $0x3d0] sm:$0xff]  ;;  %v467_v24 = vld [vmem:[%s7303_s19 + $0x338] sm:$0xff] }
 0x2a8   :  { %v440_v39 = vld [vmem:[%s7303_s19 + $0x260] sm:$0xff] }
 0x2a9   :  { %v1189_v60 = vpop.f32.mrf.mxu0  ;;  %v1266_v61 = vpop.f32.mrf.mxu1  ;;  %1505 = vmatprep.mubr.f32.mxu0 %v1426_v11  ;;  %1580 = vmatprep.mubr.f32.mxu1 %v1428_v47  ;;  %v472_v42 = vld [vmem:[%s7303_s19 + $0x360] sm:$0xff]  ;;  %v455_v47 = vld [vmem:[%s7303_s19 + $0x2d8] sm:$0xff] }
 0x2aa   :  { %1506 = vmatmul.mubr.f32.vlgmr.msra.gmra.mxu0 %v1425_v48  ;;  %1581 = vmatmul.mubr.f32.vlgmr.msra.gmra.mxu1 %v1427_v49  ;;  %v1433_v10 = vmul.f32 %v1189_v60, %v1021_v28  ;;  %v1435_v30 = vmul.f32 %v1266_v61, %v1023_v9  ;;  %v470_v60 = vld [vmem:[%s7303_s19 + $0x350] sm:$0xff]  ;;  %v453_v61 = vld [vmem:[%s7303_s19 + $0x2c8] sm:$0xff] }
 0x2ab   :  { %v1191_v18 = vpop.f32.mrf.mxu0  ;;  %v1268_v17 = vpop.f32.mrf.mxu1  ;;  %6158 = vmatpush3.msra.mxu0 %v443_v51  ;;  %6196 = vmatpush3.msra.mxu1 %v475_v54  ;;  %v487_v51 = vld [vmem:[%s7303_s19 + $0x3d8] sm:$0xff]  ;;  %v450_v28 = vld [vmem:[%s7303_s19 + $0x2b0] sm:$0xff] }
 0x2ac   :  { %v1434_v19 = vmul.f32 %v1191_v18, %v1022_v8  ;;  %v1436_v20 = vmul.f32 %v1268_v17, %v1024_v14  ;;  %6159 = vmatprep.subr.mxu0 %v458_v63  ;;  %6197 = vmatprep.subr.mxu1 %v490_v33  ;;  %v439_v54 = vld [vmem:[%s7303_s19 + $0x258] sm:$0xff]  ;;  %v485_v63 = vld [vmem:[%s7303_s19 + $0x3c8] sm:$0xff]  ;;  %v452_v8 = vld [vmem:[%s7303_s19 + $0x2c0] sm:$0xff]  ;;  %v7486_v14 = vsub.s32 6, %v7395_v62 }
 0x2ad   :  { %6160 = vmatpush3.msra.mxu0 %v442_v6  ;;  %6198 = vmatpush3.msra.mxu1 %v474_v7  ;;  %v437_v33 = vld [vmem:[%s7303_s19 + $0x248] sm:$0xff]  ;;  %v7481_v7 = vsub.s32 4, %v7395_v62  ;;  %v484_v18 = vld [vmem:[%s7303_s19 + $0x3c0] sm:$0xff]  ;;  %v482_v9 = vld [vmem:[%s7303_s19 + $0x3b0] sm:$0xff] }
 0x2ae   :  { %1510 = vmatprep.mubr.f32.mxu0 %v1434_v19  ;;  %1585 = vmatprep.mubr.f32.mxu1 %v1436_v20  ;;  %v469_v6 = vld [vmem:[%s7303_s19 + $0x348] sm:$0xff]  ;;  %9058 = vst [vmem:[#allocation13_spill] sm:$0xff] %v7486_v14  ;;  %v436_v17 = vld [vmem:[%s7303_s19 + $0x240] sm:$0xff]  ;;  %v451_v20 = vld [vmem:[%s7303_s19 + $0x2b8] sm:$0xff] }
 0x2af   :  { %v7460_v12 = vpop.f32.mrf.mxu0  ;;  %v7462_v32 = vpop.f32.mrf.mxu1  ;;  %6161 = vmatprep.subr.mxu0 %v457_v21  ;;  %6199 = vmatprep.subr.mxu1 %v489_v23  ;;  %9057 = vst [vmem:[#allocation12_spill] sm:$0xff] %v7481_v7  ;;  %v468_v19 = vld [vmem:[%s7303_s19 + $0x340] sm:$0xff]  ;;  %v483_v21 = vld [vmem:[%s7303_s19 + $0x3b8] sm:$0xff]  ;;  %v646_v27 = vrot.slane %v7403_v2, %v7481_v7 }
 0x2b0   :  { %1511 = vmatmul.mubr.f32.gmra.mxu0 %v1433_v10  ;;  %1586 = vmatmul.mubr.f32.gmra.mxu1 %v1435_v30  ;;  %v435_v23 = vld [vmem:[%s7303_s19 + $0x238] sm:$0xff]  ;;  %v654_v10 = vrot.slane %v7403_v2, %v7486_v14  ;;  %v434_v30 = vld [vmem:[%s7303_s19 + $0x230] sm:$0xff] }
 0x2b1   :  { %v1339_v44 = vpop.f32.mrf.mxu0  ;;  %v1416_v11 = vpop.f32.mrf.mxu1  ;;  %6162 = vmatpush3.msra.mxu0 %v441_v31  ;;  %6200 = vmatpush3.msra.mxu1 %v473_v37  ;;  %v466_v31 = vld [vmem:[%s7303_s19 + $0x330] sm:$0xff]  ;;  %v449_v37 = vld [vmem:[%s7303_s19 + $0x2a8] sm:$0xff]  ;;  %v894_v2 = vadd.f32 %v7284_v13, %v646_v27  ;;  %v447_v13 = vld [vmem:[%s7303_s19 + $0x298] sm:$0xff] }
 0x2b2   :  { %v1430_v48 = vmul.f32 %v1339_v44, %v1018_v43  ;;  %v1432_v49 = vmul.f32 %v1416_v11, %v1020_v46  ;;  %6163 = vmatprep.subr.mxu0 %v456_v34  ;;  %6201 = vmatprep.subr.mxu1 %v488_v38  ;;  %v481_v34 = vld [vmem:[%s7303_s19 + $0x3a8] sm:$0xff]  ;;  %v480_v43 = vld [vmem:[%s7303_s19 + $0x3a0] sm:$0xff]  ;;  %v971_v44 = vadd.f32 %v7411_v5, %v654_v10  ;;  %v431_v5 = vld [vmem:[%s7303_s19 + $0x218] sm:$0xff] }
 0x2b3   :  { %6164 = vmatpush3.msra.mxu0 %v440_v39  ;;  %6202 = vmatpush3.msra.mxu1 %v472_v42  ;;  %v433_v38 = vld [vmem:[%s7303_s19 + $0x228] sm:$0xff]  ;;  %v448_v42 = vld [vmem:[%s7303_s19 + $0x2a0] sm:$0xff]  ;;  %vm985_vm5 = vcmp.gt.f32.partialorder %v894_v2, 0.0 }
 0x2b4   :  { %6165 = vmatprep.subr.mxu0 %v455_v47  ;;  %1655 = vmatprep.mubr.f32.mxu0 %v1430_v48  ;;  %v465_v39 = vld [vmem:[%s7303_s19 + $0x328] sm:$0xff]  ;;  %v432_v46 = vld [vmem:[%s7303_s19 + $0x220] sm:$0xff]  ;;  %v902_v47 = vadd.f32 %v7290_v16, %v7437_v35  ;;  %v479_v48 = vld [vmem:[%s7303_s19 + $0x398] sm:$0xff]  ;;  %v1343_v16 = vpop.f32.mrf.mxu0  ;;  %v1420_v35 = vpop.f32.mrf.mxu1  ;;  %vm987_vm7 = vcmp.gt.f32.partialorder %v971_v44, 0.0 }
 0x2b5   :  { %6203 = vmatprep.subr.mxu1 %v487_v51  ;;  %1730 = vmatprep.mubr.f32.mxu1 %v1432_v49  ;;  %v464_v11 = vld [vmem:[%s7303_s19 + $0x320] sm:$0xff]  ;;  %v979_v49 = vadd.f32 %v7431_v29, %v7441_v36  ;;  %v463_v51 = vld [vmem:[%s7303_s19 + $0x318] sm:$0xff]  ;;  %v430_v29 = vld [vmem:[%s7303_s19 + $0x210] sm:$0xff] }
 0x2b6   :  { %6166 = vmatpush3.msra.mxu0 %v439_v54  ;;  %6204 = vmatpush3.msra.mxu1 %v471_v55  ;;  %v1001_v54 = vmul.f32 0.1, %v894_v2  ;;  %v446_v55 = vld [vmem:[%s7303_s19 + $0x290] sm:$0xff]  ;;  %vm994_vm8 = vcmp.gt.f32.partialorder %v902_v47, 0.0 }
 0x2b7   :  { %6167 = vmatprep.subr.mxu0 %v454_v56  ;;  %6205 = vmatprep.subr.mxu1 %v486_v57  ;;  %v478_v56 = vld [vmem:[%s7303_s19 + $0x390] sm:$0xff]  ;;  %v1003_v57 = vmul.f32 0.1, %v971_v44  ;;  %vm996_vm9 = vcmp.gt.f32.partialorder %v979_v49, 0.0 }
 0x2b8   :  { %6168 = vmatpush3.msra.mxu0 %v438_v59  ;;  %6206 = vmatpush3.msra.mxu1 %v470_v60  ;;  %v462_v36 = vld [vmem:[%s7303_s19 + $0x310] sm:$0xff]  ;;  %v900_v59 = vadd.f32 %v7288_v15, %v646_v27  ;;  %v977_v60 = vadd.f32 %v7423_v22, %v654_v10  ;;  %v444_v15 = vld [vmem:[%s7303_s19 + $0x280] sm:$0xff] }
 0x2b9   :  { %6169 = vmatprep.subr.mxu0 %v453_v61  ;;  %6207 = vmatprep.subr.mxu1 %v485_v63  ;;  %v1010_v61 = vmul.f32 0.1, %v902_v47  ;;  %v445_v63 = vld [vmem:[%s7303_s19 + $0x288] sm:$0xff]  ;;  %v476_v22 = vld [vmem:[%s7303_s19 + $0x380] sm:$0xff] }
 0x2ba   :  { %6170 = vmatpush3.msra.mxu0 %v437_v33  ;;  %6208 = vmatpush3.msra.mxu1 %v469_v6  ;;  %v477_v33 = vld [vmem:[%s7303_s19 + $0x388] sm:$0xff]  ;;  %v1012_v6 = vmul.f32 0.1, %v979_v49  ;;  %v1009_v27 = vmul.f32 0.1, %v900_v59  ;;  %vm993_vm10 = vcmp.gt.f32.partialorder %v900_v59, 0.0 }
 0x2bb   :  { %6171 = vmatprep.subr.mxu0 %v452_v8  ;;  %6209 = vmatprep.subr.mxu1 %v484_v18  ;;  %v429_v8 = vld [vmem:[%s7303_s19 + $0x208] sm:$0xff]  ;;  %vm995_vm11 = vcmp.gt.f32.partialorder %v977_v60, 0.0 }
 0x2bc   :  { %6172 = vmatpush3.msra.mxu0 %v436_v17  ;;  %6210 = vmatpush3.msra.mxu1 %v468_v19  ;;  %v461_v18 = vld [vmem:[%s7303_s19 + $0x308] sm:$0xff]  ;;  %v1017_v17 = vsel %vm985_vm5, %v894_v2, %v1001_v54  ;;  %v1019_v19 = vsel %vm987_vm7, %v971_v44, %v1003_v57  ;;  %v1741_v44 = vld [vmem:[%s7527_s27] sm:$0xff]  ;;  %v1997_v54 = vld [vmem:[%s7574_s5 + $0x18] sm:$0xff] }
 0x2bd   :  { %6173 = vmatprep.subr.mxu0 %v451_v20  ;;  %6211 = vmatprep.subr.mxu1 %v483_v21  ;;  %v1345_v20 = vpop.f32.mrf.mxu0  ;;  %v1422_v21 = vpop.f32.mrf.mxu1  ;;  %v1429_v10 = vmul.f32 %v7460_v12, %v1017_v17  ;;  %v1025_v12 = vsel %vm993_vm10, %v900_v59, %v1009_v27 }
 0x2be   :  { %6174 = vmatpush3.msra.mxu0 %v435_v23  ;;  %6212 = vmatpush3.msra.mxu1 %v467_v24  ;;  %v428_v23 = vld [vmem:[%s7303_s19 + $0x200] sm:$0xff] }
 0x2bf   :  { %6175 = vmatprep.subr.mxu0 %v450_v28  ;;  %6213 = vmatprep.subr.mxu1 %v482_v9  ;;  %v460_v24 = vld [vmem:[%s7303_s19 + $0x300] sm:$0xff]  ;;  %v1011_v28 = vmul.f32 0.1, %v977_v60  ;;  %v1026_v9 = vsel %vm994_vm8, %v902_v47, %v1010_v61 }
 0x2c0   :  { %6176 = vmatpush3.msra.mxu0 %v434_v30  ;;  %6214 = vmatpush3.msra.mxu1 %v466_v31  ;;  %v1431_v30 = vmul.f32 %v7462_v32, %v1019_v19  ;;  %v1028_v31 = vsel %vm996_vm9, %v979_v49, %v1012_v6  ;;  %v1900_v47 = vld [vmem:[%s5924_s1] sm:$0xff]  ;;  %v2012_v49 = vld [vmem:[%s7574_s5 + $0x90] sm:$0xff] }
 0x2c1   :  { %6177 = vmatprep.subr.mxu0 %v449_v37  ;;  %6215 = vmatprep.subr.mxu1 %v481_v34  ;;  %v1438_v37 = vmul.f32 %v1345_v20, %v1026_v9  ;;  %v1440_v34 = vmul.f32 %v1422_v21, %v1028_v31  ;;  %v1027_v32 = vsel %vm995_vm11, %v977_v60, %v1011_v28 }
 0x2c2   :  { %6178 = vmatpush3.msra.mxu0 %v433_v38  ;;  %6216 = vmatpush3.msra.mxu1 %v465_v39  ;;  %v1744_v38 = vld [vmem:[%s7527_s27 + $0x18] sm:$0xff]  ;;  %v1437_v39 = vmul.f32 %v1343_v16, %v1025_v12  ;;  %v1439_v2 = vmul.f32 %v1420_v35, %v1027_v32 }
 0x2c3   :  { %6179 = vmatprep.subr.mxu0 %v448_v42  ;;  %6217 = vmatprep.subr.mxu1 %v480_v43  ;;  %v1743_v42 = vld [vmem:[%s7527_s27 + $0x10] sm:$0xff]  ;;  %v1742_v43 = vld [vmem:[%s7527_s27 + $0x8] sm:$0xff]  ;;  %s7100_s27 = smov 24  }
 0x2c4   :  { %6180 = vmatpush3.msra.mxu0 %v432_v46  ;;  %6218 = vmatpush3.msra.mxu1 %v464_v11  ;;  %v1902_v46 = vld [vmem:[%s5924_s1 + $0x10] sm:$0x7]  ;;  %v1901_v11 = vld [vmem:[%s5924_s1 + $0x8] sm:$0xff]  ;;  %s8326_s30 = sld [smem:[%s8904_s0 + %s7100_s27]]   ;;  %s7115_s27 = smov 38  }
 0x2c5   :  { %6181 = vmatprep.subr.mxu0 %v447_v13  ;;  %6219 = vmatprep.subr.mxu1 %v479_v48  ;;  %v2020_v13 = vld [vmem:[%s7574_s5 + $0xd0] sm:$0xff]  ;;  %v2013_v48 = vld [vmem:[%s7574_s5 + $0x98] sm:$0xff]  ;;  %s8777_s1 = sld [smem:[%s8904_s0 + %s7108_s29]]   ;;  %s7123_s29 = smov 45  }
 0x2c6   :  { %6182 = vmatpush3.msra.mxu0 %v431_v5  ;;  %6220 = vmatpush3.msra.mxu1 %v463_v51  ;;  %v2005_v5 = vld [vmem:[%s7574_s5 + $0x58] sm:$0xff]  ;;  %v2004_v51 = vld [vmem:[%s7574_s5 + $0x50] sm:$0xff] }
 0x2c7   :  { %6183 = vmatprep.subr.mxu0 %v446_v55  ;;  %6221 = vmatprep.subr.mxu1 %v478_v56  ;;  %v1996_v55 = vld [vmem:[%s7574_s5 + $0x10] sm:$0xff]  ;;  %v2025_v56 = vld [vmem:[%s7574_s5 + $0xf8] sm:$0xff] }
 0x2c8   :  { %6184 = vmatpush3.msra.mxu0 %v430_v29  ;;  %6222 = vmatpush3.msra.mxu1 %v462_v36 }
 0x2c9   :  { %6185 = vmatprep.subr.mxu0 %v445_v63  ;;  %6223 = vmatprep.subr.mxu1 %v477_v33 }
 0x2ca   :  { %6186 = vmatpush3.msra.mxu0 %v429_v8  ;;  %6224 = vmatpush3.msra.mxu1 %v461_v18 }
 0x2cb   :  { %6187 = vmatprep.subr.mxu0 %v444_v15  ;;  %6225 = vmatprep.subr.mxu1 %v476_v22 }
 0x2cc   :  { %6188 = vmatpush3.msra.mxu0 %v428_v23  ;;  %6226 = vmatpush3.msra.mxu1 %v460_v24 }
 0x2cd   :  { %1656 = vmatmul.mubr.f32.vlgmr.msra.gmra.mxu0 %v1429_v10  ;;  %1731 = vmatmul.mubr.f32.vlgmr.msra.gmra.mxu1 %v1431_v30  ;;  %v5962_v10 = vld [vmem:[%s5909_s9] ss:$0 sm:$0xff]  ;;  %s5938_s9 = sld [smem:[%s8904_s0 + %s7110_s6]]   ;;  %s7125_s6 = smov 46  }
 0x2ce   :  { %1660 = vmatprep.mubr.f32.mxu0 %v1438_v37  ;;  %1735 = vmatprep.mubr.f32.mxu1 %v1440_v34  ;;  %vm321_vm13 = vcmp.eq.s32.totalorder %v5962_v10, %v7395_v62  ;;  %v7670_v10 = vld [vmem:[%s7256_s15] sm:$0xff]  ;;  %v7839_v62 = vld [vmem:[%s7303_s19 + $0x170] sm:$0xff] }
 0x2cf   :  { %6653 = vmatprep.subr.mxu0 %v8905_v58  ;;  %6664 = vmatprep.subr.mxu1 %v8905_v58  ;;  %9084 = vst [vmem:[#allocation39_spill] sm:$0xff] %v7839_v62 }
 0x2d0   :  { %6654 = vmatpush3.msra.mxu0 %v1744_v38 }
 0x2d1   :  { %1661 = vmatmul.mubr.f32.gmra.mxu0 %v1437_v39  ;;  %1736 = vmatmul.mubr.f32.gmra.mxu1 %v1439_v2  ;;  %v7595_v2 = vsel %vm321_vm13, 1.0, %v8905_v58 }
 0x2d2   :  { %6655 = vmatprep.subr.mxu0 %v8905_v58  ;;  %6661 = vmatprep.mubr.msk.f32.mxu0 %vm7093_vm12, %v8905_v58  ;;  %9059 = vst [vmem:[#allocation14_spill] sm:$0xff] %v7595_v2 }
 0x2d3   :  { %6656 = vmatpush3.msra.mxu0 %v1743_v42  ;;  %6668 = vmatprep.mubr.msk.f32.mxu1 %vm7093_vm12, %v8905_v58  ;;  %v2019_v42 = vld [vmem:[%s7574_s5 + $0xc8] sm:$0xff] }
 0x2d4   :  { %6657 = vmatprep.subr.mxu0 %v8905_v58 }
 0x2d5   :  { %6658 = vmatpush3.msra.mxu0 %v1742_v43  ;;  %v2018_v43 = vld [vmem:[%s7574_s5 + $0xc0] sm:$0xff] }
 0x2d6   :  { %6659 = vmatprep.subr.mxu0 %v8905_v58 }
 0x2d7   :  { %6660 = vmatpush3.msra.mxu0 %v1741_v44  ;;  %v2011_v44 = vld [vmem:[%s7574_s5 + $0x88] sm:$0xff] }
 0x2d8   :  { %6671 = vmatprep.subr.msk.mxu0 %vm508_vm0, %v1902_v46  ;;  %6662 = vmatmul.mubr.msk.f32.vlgmr.msra.gmra.mxu0 %vm245_vm2, %v7228_v50  ;;  %v2021_v50 = vld [vmem:[%s7574_s5 + $0xd8] sm:$0xff] }
 0x2d9   :  { %6672 = vmatpush3.msk.msra.mxu0 %vm508_vm0, %v1902_v46  ;;  %6677 = vmatprep.mubr.msk.f32.mxu0 %vm196_vm1, %v7153_v40  ;;  %v2010_v46 = vld [vmem:[%s7574_s5 + $0x80] sm:$0xff] }
 0x2da   :  { %6673 = vmatprep.subr.mxu0 %v1901_v11 }
 0x2db   :  { %6674 = vmatpush3.msra.mxu0 %v1901_v11 }
 0x2dc   :  { %6675 = vmatprep.subr.mxu0 %v1900_v47 }
 0x2dd   :  { %6676 = vmatpush3.msra.mxu0 %v1900_v47  ;;  %v5991_v47 = vld [vmem:[%s5925_s13] ss:$0 sm:$0xff]  ;;  %s5940_s13 = sld [smem:[%s8904_s0 + %s7111_s10]]   ;;  %s7126_s10 = smov 47  }
 0x2de   :  { %6678 = vmatmul.mubr.msk.f32.vlgmr.msra.gmra.mxu0 %vm196_vm1, %v7155_v41  ;;  %2175 = vmatprep.subr.mxu0 %v2021_v50  ;;  %v2003_v50 = vld [vmem:[%s7574_s5 + $0x48] sm:$0xff] }
 0x2df   :  { %2215 = vmatprep.mubr.f32.mxu0 %v8905_v58  ;;  %2176 = vmatpush1.msra.mxu0 %v2020_v13 }
 0x2e0   :  { %2177 = vmatprep.subr.mxu0 %v2013_v48  ;;  %v2002_v48 = vld [vmem:[%s7574_s5 + $0x40] sm:$0xff] }
 0x2e1   :  { %2178 = vmatpush1.msra.mxu0 %v2012_v49 }
 0x2e2   :  { %2179 = vmatprep.subr.mxu0 %v2005_v5  ;;  %v1995_v5 = vld [vmem:[%s7574_s5 + $0x8] sm:$0xff] }
 0x2e3   :  { %2180 = vmatpush1.msra.mxu0 %v2004_v51 }
 0x2e4   :  { %2181 = vmatprep.subr.mxu0 %v1997_v54  ;;  %v1994_v54 = vld [vmem:[%s7574_s5] sm:$0xff] }
 0x2e5   :  { %2182 = vmatpush1.msra.mxu0 %v1996_v55  ;;  %v2023_v55 = vld [vmem:[%s7574_s5 + $0xe8] sm:$0xff] }
 0x2e6   :  { %2329 = vmatprep.subr.mxu0 %v2025_v56 }
 0x36a   :  { %v6113_v57 = vpop.f32.mrf.mxu0  ;;  %v6151_v16 = vpop.f32.mrf.mxu1 }
 0x36c   :  { %v6114_v35 = vpop.f32.mrf.mxu0  ;;  %v6152_v29 = vpop.f32.mrf.mxu1 }
 0x36d   :  { %v6115_v18 = vadd.f32 %v6114_v35, %v6113_v57  ;;  %v6153_v15 = vadd.f32 %v6152_v29, %v6151_v16  ;;  %v2022_v16 = vld [vmem:[%s7574_s5 + $0xe0] sm:$0xff]  ;;  %v2015_v29 = vld [vmem:[%s7574_s5 + $0xa8] sm:$0xff] }
 0x36f   :  { %v1583_v27 = vadd.f32 %v6153_v15, %v6115_v18  ;;  %v2016_v18 = vld [vmem:[%s7574_s5 + $0xb0] sm:$0xff]  ;;  %v2009_v15 = vld [vmem:[%s7574_s5 + $0x78] sm:$0xff] }
 0x370   :  { %v6116_v36 = vpop.f32.mrf.mxu0  ;;  %v6154_v59 = vpop.f32.mrf.mxu1 }
 0x372   :  { %v6117_v60 = vpop.f32.mrf.mxu0  ;;  %v6155_v61 = vpop.f32.mrf.mxu1 }
 0x373   :  { %v6118_v22 = vadd.f32 %v6117_v60, %v6116_v36  ;;  %v6156_v17 = vadd.f32 %v6155_v61, %v6154_v59  ;;  %v2024_v36 = vld [vmem:[%s7574_s5 + $0xf0] sm:$0xff]  ;;  %v2014_v59 = vld [vmem:[%s7574_s5 + $0xa0] sm:$0xff]  ;;  %v2017_v60 = vld [vmem:[%s7574_s5 + $0xb8] sm:$0xff] }
 0x375   :  { %v1588_v28 = vadd.f32 %v6156_v17, %v6118_v22  ;;  %v2008_v22 = vld [vmem:[%s7574_s5 + $0x70] sm:$0xff]  ;;  %v2001_v17 = vld [vmem:[%s7574_s5 + $0x38] sm:$0xff] }
 0x38d   :  { %v6189_v63 = vpop.f32.mrf.mxu0  ;;  %v6227_v33 = vpop.f32.mrf.mxu1 }
 0x38f   :  { %v6190_v6 = vpop.f32.mrf.mxu0  ;;  %v6228_v8 = vpop.f32.mrf.mxu1 }
 0x390   :  { %v6191_v21 = vadd.f32 %v6190_v6, %v6189_v63  ;;  %v6229_v34 = vadd.f32 %v6228_v8, %v6227_v33  ;;  %v2007_v63 = vld [vmem:[%s7574_s5 + $0x68] sm:$0xff]  ;;  %v2006_v33 = vld [vmem:[%s7574_s5 + $0x60] sm:$0xff] }
 0x391   :  { %v6192_v19 = vpop.f32.mrf.mxu0  ;;  %v6230_v20 = vpop.f32.mrf.mxu1  ;;  %v1999_v6 = vld [vmem:[%s7574_s5 + $0x28] sm:$0xff]  ;;  %v1998_v8 = vld [vmem:[%s7574_s5 + $0x20] sm:$0xff] }
 0x392   :  { %v1658_v30 = vadd.f32 %v6191_v21, %v1583_v27  ;;  %v7644_v21 = vld [vmem:[%s7256_s15 + $0xc0] sm:$0xff]  ;;  %v7658_v27 = vld [vmem:[%s7256_s15 + $0x48] sm:$0xff] }
 0x393   :  { %v6193_v23 = vpop.f32.mrf.mxu0  ;;  %v6231_v24 = vpop.f32.mrf.mxu1 }
 0x394   :  { %v6194_v9 = vadd.f32 %v6193_v23, %v6192_v19  ;;  %v6232_v37 = vadd.f32 %v6231_v24, %v6230_v20  ;;  %v1733_v32 = vadd.f32 %v6229_v34, %v1658_v30  ;;  %v2000_v19 = vld [vmem:[%s7574_s5 + $0x30] sm:$0xff]  ;;  %v7640_v20 = vld [vmem:[%s7256_s15 + $0xc8] sm:$0xff]  ;;  %v7653_v24 = vld [vmem:[%s7256_s15 + $0x80] sm:$0xff]  ;;  %s8782_s5 = sld [smem:[%s8904_s0 + %s7109_s2]]   ;;  %s7124_s2 = smov 44  }
 0x395   :  { %v7648_v23 = vld [vmem:[%s7256_s15 + $0x88] sm:$0xff] }
 0x396   :  { %v1663_v31 = vadd.f32 %v6194_v9, %v1588_v28  ;;  %v7662_v28 = vld [vmem:[%s7256_s15 + $0x40] sm:$0xff]  ;;  %v7666_v9 = vld [vmem:[%s7256_s15 + $0x8] sm:$0xff] }
 0x397   :  { %v7674_v30 = vld [vmem:[%s7256_s15 + $0xe8] sm:$0xff] }
 0x398   :  { %v1738_v38 = vadd.f32 %v6232_v37, %v1663_v31  ;;  %v7592_v12 = vpop.f32.mrf.mxu0  ;;  %v5990_v37 = vld [vmem:[%s5923_s18] ss:$0 sm:$0xff]  ;;  %s5939_s18 = sld [smem:[%s8904_s0 + %s7112_s14]]  }
 0x39a   :  { %6665 = vmatpush3.msra.mxu1 %v1738_v38  ;;  %v6663_v39 = vpop.f32.mrf.mxu0 }
 0x39b   :  { %6666 = vmatprep.subr.mxu1 %v8905_v58  ;;  %v7688_v39 = vld [vmem:[%s7256_s15 + $0xd8] sm:$0xff] }
 0x39c   :  { %6667 = vmatpush3.msra.mxu1 %v1733_v32 }
 0x39d   :  { %6669 = vmatmul.mubr.msk.f32.vlgmr.msra.gmra.mxu1 %vm1818_vm14, %v7595_v2  ;;  %2098 = vmatprep.subr.mxu1 %v2019_v42  ;;  %v7692_v42 = vld [vmem:[%s7256_s15 + $0xd0] sm:$0xff] }
 0x39e   :  { %v6679_v11 = vpop.f32.mrf.mxu0  ;;  %2099 = vmatpush1.msra.mxu1 %v2018_v43  ;;  %2138 = vmatprep.mubr.f32.mxu1 %v8905_v58  ;;  %v7701_v43 = vld [vmem:[%s7256_s15 + $0x90] sm:$0xff] }
 0x39f   :  { %v1985_v13 = vadd.f32 %v6679_v11, %v5991_v47  ;;  %2100 = vmatprep.subr.mxu1 %v2011_v44  ;;  %v7705_v44 = vld [vmem:[%s7256_s15 + $0x58] sm:$0xff] }
 0x3a0   :  { %v1979_v49 = vpop.f32.mrf.mxu0  ;;  %2101 = vmatpush1.msra.mxu1 %v2010_v46  ;;  %v7709_v46 = vld [vmem:[%s7256_s15 + $0x50] sm:$0xff]  ;;  %v7713_v11 = vld [vmem:[%s7256_s15 + $0x18] sm:$0xff] }
 0x3a1   :  { %v1980_v51 = vadd.f32 %v5991_v47, %v1979_v49  ;;  %2102 = vmatprep.subr.mxu1 %v2003_v50  ;;  %v1991_v56 = vmul.f32 0.1, %v1985_v13  ;;  %vm1989_vm3 = vcmp.gt.f32.partialorder %v1985_v13, 0.0  ;;  %9060 = vst [vmem:[#allocation15_spill] sm:$0xff] %v7713_v11  ;;  %v7717_v47 = vld [vmem:[%s7256_s15 + $0x10] sm:$0xff]  ;;  %v7721_v50 = vld [vmem:[%s7256_s15 + $0xf8] sm:$0xff] }
 0x3a2   :  { %2103 = vmatpush1.msra.mxu1 %v2002_v48  ;;  %9061 = vst [vmem:[#allocation16_spill] sm:$0xff] %v7717_v47  ;;  %9062 = vst [vmem:[#allocation17_spill] sm:$0xff] %v7721_v50 }
 0x3a3   :  { %vm1988_vm15 = vcmp.gt.f32.partialorder %v1980_v51, 0.0  ;;  %v1990_v57 = vmul.f32 0.1, %v1980_v51  ;;  %2104 = vmatprep.subr.mxu1 %v1995_v5  ;;  %v1993_v61 = vsel %vm1989_vm3, %v1985_v13, %v1991_v56 }
 0x3a4   :  { %2105 = vmatpush1.msra.mxu1 %v1994_v54 }
 0x3a5   :  { %v1992_v35 = vsel %vm1988_vm15, %v1980_v51, %v1990_v57  ;;  %2252 = vmatprep.subr.mxu1 %v2023_v55 }
 0x3a6   :  { %5995 = vmatmul.mubr.msk.f32.vlgmr.msra.gmra.mxu1 %vm245_vm2, %v1992_v35  ;;  %5997 = vmatmul.mubr.msk.f32.vlgmr.msra.gmra.mxu0 %vm245_vm2, %v1992_v35 }
 0x3a7   :  { %2253 = vmatpush1.msra.mxu1 %v2022_v16  ;;  %2144 = vmatprep.mubr.f32.mxu1 %v8905_v58 }
 0x3a8   :  { %2254 = vmatprep.subr.mxu1 %v2015_v29  ;;  %2330 = vmatpush1.msra.mxu0 %v2024_v36  ;;  %v7747_v29 = vld [vmem:[%s7256_s15 + $0xf0] sm:$0xff]  ;;  %v7751_v36 = vld [vmem:[%s7256_s15 + $0xa8] sm:$0xff] }
 0x3a9   :  { %2255 = vmatpush1.msra.mxu1 %v2014_v59  ;;  %2331 = vmatprep.subr.mxu0 %v2017_v60  ;;  %9064 = vst [vmem:[#allocation19_spill] sm:$0xff] %v7747_v29  ;;  %9065 = vst [vmem:[#allocation20_spill] sm:$0xff] %v7751_v36  ;;  %v7755_v59 = vld [vmem:[%s7256_s15 + $0xb8] sm:$0xff]  ;;  %v7761_v60 = vld [vmem:[%s7256_s15 + $0xa0] sm:$0xff] }
 0x3aa   :  { %5996 = vmatmul.mubr.msk.f32.gmra.mxu1 %vm245_vm2, %v1993_v61  ;;  %2256 = vmatprep.subr.mxu1 %v2007_v63  ;;  %9066 = vst [vmem:[#allocation21_spill] sm:$0xff] %v7755_v59  ;;  %9067 = vst [vmem:[#allocation22_spill] sm:$0xff] %v7761_v60  ;;  %v7771_v63 = vld [vmem:[%s7256_s15 + $0x68] sm:$0xff] }
 0x3ab   :  { %2257 = vmatpush1.msra.mxu1 %v2006_v33  ;;  %2292 = vmatprep.mubr.f32.mxu1 %v8905_v58  ;;  %9069 = vst [vmem:[#allocation24_spill] sm:$0xff] %v7771_v63  ;;  %v7775_v33 = vld [vmem:[%s7256_s15 + $0x78] sm:$0xff] }
 0x3ac   :  { %2258 = vmatprep.subr.mxu1 %v1999_v6  ;;  %2221 = vmatprep.mubr.f32.mxu0 %v8905_v58  ;;  %9070 = vst [vmem:[#allocation25_spill] sm:$0xff] %v7775_v33  ;;  %v7779_v6 = vld [vmem:[%s7256_s15 + $0x60] sm:$0xff] }
 0x3ad   :  { %2259 = vmatpush1.msra.mxu1 %v1998_v8  ;;  %2332 = vmatpush1.msra.mxu0 %v2016_v18  ;;  %9071 = vst [vmem:[#allocation26_spill] sm:$0xff] %v7779_v6  ;;  %v7783_v8 = vld [vmem:[%s7256_s15 + $0x70] sm:$0xff]  ;;  %v7787_v18 = vld [vmem:[%s7256_s15 + $0x28] sm:$0xff] }
 0x3ae   :  { %5999 = vmatmul.mubr.msk.f32.vlgmr.msra.gmra.mxu1 %vm245_vm2, %v1992_v35  ;;  %5998 = vmatmul.mubr.msk.f32.gmra.mxu0 %vm245_vm2, %v1993_v61  ;;  %9072 = vst [vmem:[#allocation27_spill] sm:$0xff] %v7783_v8  ;;  %9073 = vst [vmem:[#allocation28_spill] sm:$0xff] %v7787_v18 }
 0x3af   :  { %2298 = vmatprep.mubr.f32.mxu1 %v8905_v58  ;;  %2333 = vmatprep.subr.mxu0 %v2009_v15  ;;  %v7791_v15 = vld [vmem:[%s7256_s15 + $0x38] sm:$0xff] }
 0x3b0   :  { %2334 = vmatpush1.msra.mxu0 %v2008_v22  ;;  %2369 = vmatprep.mubr.f32.mxu0 %v8905_v58  ;;  %9074 = vst [vmem:[#allocation29_spill] sm:$0xff] %v7791_v15  ;;  %v7795_v22 = vld [vmem:[%s7256_s15 + $0x20] sm:$0xff] }
 0x3b1   :  { %2335 = vmatprep.subr.mxu0 %v2001_v17  ;;  %9075 = vst [vmem:[#allocation30_spill] sm:$0xff] %v7795_v22  ;;  %v7800_v17 = vld [vmem:[%s7256_s15 + $0x30] sm:$0xff] }
 0x3b2   :  { %6000 = vmatmul.mubr.msk.f32.gmra.mxu1 %vm245_vm2, %v1993_v61  ;;  %2336 = vmatpush1.msra.mxu0 %v2000_v19  ;;  %9076 = vst [vmem:[#allocation31_spill] sm:$0xff] %v7800_v17  ;;  %v7809_v19 = vld [vmem:[%s7303_s19 + $0xf8] sm:$0xff] }
 0x3b3   :  { %6682 = vmatprep.mubr.msk.f32.mxu1 %vm1029_vm6, %v7237_v52  ;;  %6001 = vmatmul.mubr.msk.f32.vlgmr.msra.gmra.mxu0 %vm245_vm2, %v1992_v35  ;;  %v7743_v35 = vld [vmem:[%s7256_s15 + $0xe0] sm:$0xff]  ;;  %9077 = vst [vmem:[#allocation32_spill] sm:$0xff] %v7809_v19 }
 0x3b4   :  { %2375 = vmatprep.mubr.f32.mxu0 %v8905_v58  ;;  %2535 = vmatprep.subr.mxu0 %v7640_v20  ;;  %9063 = vst [vmem:[#allocation18_spill] sm:$0xff] %v7743_v35 }
 0x3b5   :  { %2536 = vmatpush1.msra.mxu0 %v7644_v21 }
 0x3b6   :  { %2537 = vmatprep.subr.mxu0 %v7648_v23 }
 0x3b7   :  { %6002 = vmatmul.mubr.msk.f32.gmra.mxu0 %vm245_vm2, %v1993_v61  ;;  %v7765_v61 = vld [vmem:[%s7256_s15 + $0xb0] sm:$0xff] }
 0x3b8   :  { %2538 = vmatpush1.msra.mxu0 %v7653_v24  ;;  %2575 = vmatprep.mubr.f32.mxu0 %v8905_v58  ;;  %9068 = vst [vmem:[#allocation23_spill] sm:$0xff] %v7765_v61 }
 0x3b9   :  { %2539 = vmatprep.subr.mxu0 %v7658_v27 }
 0x3ba   :  { %2540 = vmatpush1.msra.mxu0 %v7662_v28 }
 0x3bb   :  { %2541 = vmatprep.subr.mxu0 %v7666_v9 }
 0x3bc   :  { %2542 = vmatpush1.msra.mxu0 %v7670_v10 }
 0x3bd   :  { %2689 = vmatprep.subr.mxu0 %v7674_v30 }
 0x45d   :  { %v1888_v31 = vpop.f32.mrf.mxu1 }
 0x45e   :  { %v1889_v34 = vadd.f32 %v1888_v31, %v7592_v12  ;;  %v7697_v12 = vld [vmem:[%s7256_s15 + $0x98] sm:$0xff]  ;;  %s7098_s15 = smov 21  }
 0x45f   :  { %v6670_v38 = vpop.f32.mrf.mxu1  ;;  %v7813_v31 = vld [vmem:[%s7303_s19 + $0x1f8] sm:$0xff]  ;;  %s5927_s22 = sld [smem:[%s8904_s0 + %s7098_s15]]   ;;  %s7113_s15 = smov 36  }
 0x460   :  { %v7681_v32 = vadd.f32 %v5990_v37, %v1889_v34  ;;  %9078 = vst [vmem:[#allocation33_spill] sm:$0xff] %v7813_v31  ;;  %v7817_v37 = vld [vmem:[%s7303_s19 + $0x78] sm:$0xff]  ;;  %v7827_v38 = vld [vmem:[%s7303_s19 + $0xf0] sm:$0xff] }
 0x461   :  { %9079 = vst [vmem:[#allocation34_spill] sm:$0xff] %v7817_v37  ;;  %v7821_v34 = vld [vmem:[%s7303_s19 + $0x178] sm:$0xff]  ;;  %9081 = vst [vmem:[#allocation36_spill] sm:$0xff] %v7827_v38 }
 0x462   :  { %6680 = vmatprep.subr.mxu1 %v7681_v32  ;;  %9080 = vst [vmem:[#allocation35_spill] sm:$0xff] %v7821_v34 }
 0x463   :  { %6681 = vmatpush3.msra.mxu1 %v7681_v32 }
 0x464   :  { %6683 = vmatmul.mubr.msk.f32.vlgmr.msra.gmra.mxu1 %vm1029_vm6, %v7248_v53  ;;  %2612 = vmatprep.subr.mxu1 %v7688_v39 }
 0x465   :  { %2613 = vmatpush1.msra.mxu1 %v7692_v42  ;;  %2652 = vmatprep.mubr.f32.mxu1 %v8905_v58 }
 0x466   :  { %2614 = vmatprep.subr.mxu1 %v7697_v12  ;;  %v7724_v13 = vpop.f32.mrf.mxu1 }
 0x467   :  { %2615 = vmatpush1.msra.mxu1 %v7701_v43 }
 0x468   :  { %2616 = vmatprep.subr.mxu1 %v7705_v44  ;;  %v7726_v48 = vpop.f32.mrf.mxu1 }
 0x469   :  { %2617 = vmatpush1.msra.mxu1 %v7709_v46 }
 0x46a   :  { %2618 = vmatprep.subr.mxu1 %v7713_v11  ;;  %v7728_v49 = vpop.f32.mrf.mxu1 }
 0x46b   :  { %2619 = vmatpush1.msra.mxu1 %v7717_v47 }
 0x46c   :  { %2766 = vmatprep.subr.mxu1 %v7721_v50  ;;  %v7730_v5 = vpop.f32.mrf.mxu1 }
 0x46e   :  { %v7732_v51 = vpop.f32.mrf.mxu1 }
 0x470   :  { %v7734_v54 = vpop.f32.mrf.mxu1 }
 0x472   :  { %v7736_v55 = vpop.f32.mrf.mxu1 }
 0x474   :  { %v7738_v56 = vpop.f32.mrf.mxu1 }
 0x524   :  { %v6684_v57 = vpop.f32.mrf.mxu1 }
 0x526   :  { %v2496_v16 = vpop.f32.mrf.mxu1 }
 0x527   :  { %6005 = vmatmul.mubr.msk.f32.vlgmr.msra.gmra.mxu0 %vm245_vm2, %v2496_v16  ;;  %6007 = vmatmul.mubr.msk.f32.vlgmr.msra.gmra.mxu1 %vm245_vm2, %v2496_v16 }
 0x528   :  { %2690 = vmatpush1.msra.mxu0 %v7743_v35  ;;  %2767 = vmatpush1.msra.mxu1 %v7747_v29 }
 0x529   :  { %2691 = vmatprep.subr.mxu0 %v7751_v36  ;;  %2768 = vmatprep.subr.mxu1 %v7755_v59 }
 0x52a   :  { %2581 = vmatprep.mubr.f32.mxu0 %v8905_v58  ;;  %2658 = vmatprep.mubr.f32.mxu1 %v8905_v58 }
 0x52b   :  { %2692 = vmatpush1.msra.mxu0 %v7761_v60  ;;  %2769 = vmatpush1.msra.mxu1 %v7765_v61 }
 0x52c   :  { %6006 = vmatmul.mubr.msk.f32.gmra.mxu0 %vm245_vm2, %v6684_v57  ;;  %6008 = vmatmul.mubr.msk.f32.gmra.mxu1 %vm245_vm2, %v6684_v57 }
 0x52d   :  { %2693 = vmatprep.subr.mxu0 %v7771_v63  ;;  %2770 = vmatprep.subr.mxu1 %v7775_v33 }
 0x52e   :  { %2694 = vmatpush1.msra.mxu0 %v7779_v6  ;;  %2771 = vmatpush1.msra.mxu1 %v7783_v8 }
 0x52f   :  { %2695 = vmatprep.subr.mxu0 %v7787_v18  ;;  %2772 = vmatprep.subr.mxu1 %v7791_v15 }
 0x530   :  { %2696 = vmatpush1.msra.mxu0 %v7795_v22  ;;  %2729 = vmatprep.mubr.f32.mxu0 %v8905_v58 }
 0x531   :  { %2773 = vmatpush1.msra.mxu1 %v7800_v17  ;;  %2806 = vmatprep.mubr.f32.mxu1 %v8905_v58 }
 0x532   :  { %6009 = vmatmul.mubr.msk.f32.vlgmr.msra.gmra.mxu0 %vm245_vm2, %v2496_v16  ;;  %6011 = vmatmul.mubr.msk.f32.vlgmr.msra.gmra.mxu1 %vm245_vm2, %v2496_v16  ;;  %v7831_v16 = vld [vmem:[%s7303_s19 + $0x1f0] sm:$0xff] }
 0x533   :  { %2735 = vmatprep.mubr.f32.mxu0 %v8905_v58  ;;  %2812 = vmatprep.mubr.f32.mxu1 %v8905_v58  ;;  %9082 = vst [vmem:[#allocation37_spill] sm:$0xff] %v7831_v16  ;;  %v7835_v58 = vld [vmem:[%s7303_s19 + $0x70] sm:$0xff] }
 0x534   :  { %6249 = vmatprep.subr.mxu0 %v7809_v19  ;;  %6287 = vmatprep.subr.mxu1 %v7813_v31  ;;  %9083 = vst [vmem:[#allocation38_spill] sm:$0xff] %v7835_v58 }
 0x535   :  { %6250 = vmatpush3.msra.mxu0 %v7817_v37  ;;  %6288 = vmatpush3.msra.mxu1 %v7821_v34 }
 0x536   :  { %6010 = vmatmul.mubr.msk.f32.gmra.mxu0 %vm245_vm2, %v6684_v57  ;;  %6012 = vmatmul.mubr.msk.f32.gmra.mxu1 %vm245_vm2, %v6684_v57  ;;  %v7843_v57 = vld [vmem:[%s7303_s19 + $0xe8] sm:$0xff] }
 0x537   :  { %6251 = vmatprep.subr.mxu0 %v7827_v38  ;;  %6289 = vmatprep.subr.mxu1 %v7831_v16  ;;  %9085 = vst [vmem:[#allocation40_spill] sm:$0xff] %v7843_v57  ;;  %v7851_v16 = vld [vmem:[%s7303_s19 + $0x68] sm:$0xff]  ;;  %v8051_v38 = vld [vmem:[%s7303_s19 + $0x80] sm:$0xff] }
 0x538   :  { %6252 = vmatpush3.msra.mxu0 %v7835_v58  ;;  %6290 = vmatpush3.msra.mxu1 %v7839_v62  ;;  %9087 = vst [vmem:[#allocation42_spill] sm:$0xff] %v7851_v16  ;;  %v7855_v58 = vld [vmem:[%s7303_s19 + $0x168] sm:$0xff]  ;;  %v7859_v62 = vld [vmem:[%s7303_s19 + $0xe0] sm:$0xff]  ;;  %9137 = vst [vmem:[#allocation92_spill] sm:$0xff] %v8051_v38 }
 0x539   :  { %6253 = vmatprep.subr.mxu0 %v7843_v57  ;;  %6291 = vmatprep.subr.mxu1 %v7847_v45  ;;  %9088 = vst [vmem:[#allocation43_spill] sm:$0xff] %v7855_v58  ;;  %9089 = vst [vmem:[#allocation44_spill] sm:$0xff] %v7859_v62  ;;  %v7863_v57 = vld [vmem:[%s7303_s19 + $0x1e0] sm:$0xff] }
 0x53a   :  { %6254 = vmatpush3.msra.mxu0 %v7851_v16  ;;  %6292 = vmatpush3.msra.mxu1 %v7855_v58  ;;  %9090 = vst [vmem:[#allocation45_spill] sm:$0xff] %v7863_v57  ;;  %v7867_v45 = vld [vmem:[%s7303_s19 + $0x60] sm:$0xff]  ;;  %v7875_v58 = vld [vmem:[%s7303_s19 + $0xd8] sm:$0xff] }
 0x53b   :  { %6255 = vmatprep.subr.mxu0 %v7859_v62  ;;  %6293 = vmatprep.subr.mxu1 %v7863_v57  ;;  %9091 = vst [vmem:[#allocation46_spill] sm:$0xff] %v7867_v45  ;;  %v7871_v16 = vld [vmem:[%s7303_s19 + $0x160] sm:$0xff]  ;;  %9093 = vst [vmem:[#allocation48_spill] sm:$0xff] %v7875_v58  ;;  %v7879_v62 = vld [vmem:[%s7303_s19 + $0x1d8] sm:$0xff] }
 0x53c   :  { %6256 = vmatpush3.msra.mxu0 %v7867_v45  ;;  %9092 = vst [vmem:[#allocation47_spill] sm:$0xff] %v7871_v16  ;;  %6294 = vmatpush3.msra.mxu1 %v7871_v16  ;;  %9094 = vst [vmem:[#allocation49_spill] sm:$0xff] %v7879_v62  ;;  %v7883_v57 = vld [vmem:[%s7303_s19 + $0x58] sm:$0xff]  ;;  %v7891_v16 = vld [vmem:[%s7303_s19 + $0xd0] sm:$0xff] }
 0x53d   :  { %6257 = vmatprep.subr.mxu0 %v7875_v58  ;;  %6295 = vmatprep.subr.mxu1 %v7879_v62  ;;  %9095 = vst [vmem:[#allocation50_spill] sm:$0xff] %v7883_v57  ;;  %v7887_v45 = vld [vmem:[%s7303_s19 + $0x158] sm:$0xff]  ;;  %9097 = vst [vmem:[#allocation52_spill] sm:$0xff] %v7891_v16  ;;  %v7895_v58 = vld [vmem:[%s7303_s19 + $0x1d0] sm:$0xff] }
 0x53e   :  { %6258 = vmatpush3.msra.mxu0 %v7883_v57  ;;  %9096 = vst [vmem:[#allocation51_spill] sm:$0xff] %v7887_v45  ;;  %6296 = vmatpush3.msra.mxu1 %v7887_v45  ;;  %9098 = vst [vmem:[#allocation53_spill] sm:$0xff] %v7895_v58  ;;  %v7899_v62 = vld [vmem:[%s7303_s19 + $0x50] sm:$0xff]  ;;  %v7907_v45 = vld [vmem:[%s7303_s19 + $0xc8] sm:$0xff] }
 0x53f   :  { %6259 = vmatprep.subr.mxu0 %v7891_v16  ;;  %6297 = vmatprep.subr.mxu1 %v7895_v58  ;;  %9099 = vst [vmem:[#allocation54_spill] sm:$0xff] %v7899_v62  ;;  %v7903_v57 = vld [vmem:[%s7303_s19 + $0x150] sm:$0xff]  ;;  %9101 = vst [vmem:[#allocation56_spill] sm:$0xff] %v7907_v45  ;;  %v7911_v16 = vld [vmem:[%s7303_s19 + $0x1c8] sm:$0xff] }
 0x540   :  { %6260 = vmatpush3.msra.mxu0 %v7899_v62  ;;  %9100 = vst [vmem:[#allocation55_spill] sm:$0xff] %v7903_v57  ;;  %6298 = vmatpush3.msra.mxu1 %v7903_v57  ;;  %9102 = vst [vmem:[#allocation57_spill] sm:$0xff] %v7911_v16  ;;  %v7915_v58 = vld [vmem:[%s7303_s19 + $0x48] sm:$0xff]  ;;  %v7923_v57 = vld [vmem:[%s7303_s19 + $0xc0] sm:$0xff] }
 0x541   :  { %6261 = vmatprep.subr.mxu0 %v7907_v45  ;;  %6299 = vmatprep.subr.mxu1 %v7911_v16  ;;  %9103 = vst [vmem:[#allocation58_spill] sm:$0xff] %v7915_v58  ;;  %v7919_v62 = vld [vmem:[%s7303_s19 + $0x148] sm:$0xff]  ;;  %9105 = vst [vmem:[#allocation60_spill] sm:$0xff] %v7923_v57  ;;  %v7927_v45 = vld [vmem:[%s7303_s19 + $0x1c0] sm:$0xff] }
 0x542   :  { %6262 = vmatpush3.msra.mxu0 %v7915_v58  ;;  %9104 = vst [vmem:[#allocation59_spill] sm:$0xff] %v7919_v62  ;;  %6300 = vmatpush3.msra.mxu1 %v7919_v62  ;;  %9106 = vst [vmem:[#allocation61_spill] sm:$0xff] %v7927_v45  ;;  %v7931_v16 = vld [vmem:[%s7303_s19 + $0x40] sm:$0xff]  ;;  %v7939_v62 = vld [vmem:[%s7303_s19 + $0xb8] sm:$0xff] }
 0x543   :  { %6263 = vmatprep.subr.mxu0 %v7923_v57  ;;  %6301 = vmatprep.subr.mxu1 %v7927_v45  ;;  %9107 = vst [vmem:[#allocation62_spill] sm:$0xff] %v7931_v16  ;;  %v7935_v58 = vld [vmem:[%s7303_s19 + $0x140] sm:$0xff]  ;;  %9109 = vst [vmem:[#allocation64_spill] sm:$0xff] %v7939_v62  ;;  %v7943_v57 = vld [vmem:[%s7303_s19 + $0x1b8] sm:$0xff] }
 0x544   :  { %6264 = vmatpush3.msra.mxu0 %v7931_v16  ;;  %9108 = vst [vmem:[#allocation63_spill] sm:$0xff] %v7935_v58  ;;  %6302 = vmatpush3.msra.mxu1 %v7935_v58  ;;  %9110 = vst [vmem:[#allocation65_spill] sm:$0xff] %v7943_v57  ;;  %v7947_v45 = vld [vmem:[%s7303_s19 + $0x38] sm:$0xff]  ;;  %v7955_v58 = vld [vmem:[%s7303_s19 + $0xb0] sm:$0xff] }
 0x545   :  { %6265 = vmatprep.subr.mxu0 %v7939_v62  ;;  %6303 = vmatprep.subr.mxu1 %v7943_v57  ;;  %9111 = vst [vmem:[#allocation66_spill] sm:$0xff] %v7947_v45  ;;  %v7951_v16 = vld [vmem:[%s7303_s19 + $0x138] sm:$0xff]  ;;  %9113 = vst [vmem:[#allocation68_spill] sm:$0xff] %v7955_v58  ;;  %v7959_v62 = vld [vmem:[%s7303_s19 + $0x1b0] sm:$0xff] }
 0x546   :  { %6266 = vmatpush3.msra.mxu0 %v7947_v45  ;;  %9112 = vst [vmem:[#allocation67_spill] sm:$0xff] %v7951_v16  ;;  %6304 = vmatpush3.msra.mxu1 %v7951_v16  ;;  %9114 = vst [vmem:[#allocation69_spill] sm:$0xff] %v7959_v62  ;;  %v7963_v57 = vld [vmem:[%s7303_s19 + $0x30] sm:$0xff]  ;;  %v7971_v16 = vld [vmem:[%s7303_s19 + $0xa8] sm:$0xff] }
 0x547   :  { %6267 = vmatprep.subr.mxu0 %v7955_v58  ;;  %6305 = vmatprep.subr.mxu1 %v7959_v62  ;;  %9115 = vst [vmem:[#allocation70_spill] sm:$0xff] %v7963_v57  ;;  %v7967_v45 = vld [vmem:[%s7303_s19 + $0x130] sm:$0xff]  ;;  %9117 = vst [vmem:[#allocation72_spill] sm:$0xff] %v7971_v16  ;;  %v7975_v58 = vld [vmem:[%s7303_s19 + $0x1a8] sm:$0xff] }
 0x548   :  { %6268 = vmatpush3.msra.mxu0 %v7963_v57  ;;  %9116 = vst [vmem:[#allocation71_spill] sm:$0xff] %v7967_v45  ;;  %6306 = vmatpush3.msra.mxu1 %v7967_v45  ;;  %9118 = vst [vmem:[#allocation73_spill] sm:$0xff] %v7975_v58  ;;  %v7979_v62 = vld [vmem:[%s7303_s19 + $0x28] sm:$0xff]  ;;  %v7987_v45 = vld [vmem:[%s7303_s19 + $0xa0] sm:$0xff] }
 0x549   :  { %6269 = vmatprep.subr.mxu0 %v7971_v16  ;;  %6307 = vmatprep.subr.mxu1 %v7975_v58  ;;  %9119 = vst [vmem:[#allocation74_spill] sm:$0xff] %v7979_v62  ;;  %v7983_v57 = vld [vmem:[%s7303_s19 + $0x128] sm:$0xff]  ;;  %9121 = vst [vmem:[#allocation76_spill] sm:$0xff] %v7987_v45  ;;  %v7991_v16 = vld [vmem:[%s7303_s19 + $0x1a0] sm:$0xff] }
 0x54a   :  { %6270 = vmatpush3.msra.mxu0 %v7979_v62  ;;  %9120 = vst [vmem:[#allocation75_spill] sm:$0xff] %v7983_v57  ;;  %6308 = vmatpush3.msra.mxu1 %v7983_v57  ;;  %9122 = vst [vmem:[#allocation77_spill] sm:$0xff] %v7991_v16  ;;  %v7995_v58 = vld [vmem:[%s7303_s19 + $0x20] sm:$0xff]  ;;  %v8003_v57 = vld [vmem:[%s7303_s19 + $0x98] sm:$0xff] }
 0x54b   :  { %6271 = vmatprep.subr.mxu0 %v7987_v45  ;;  %6309 = vmatprep.subr.mxu1 %v7991_v16  ;;  %9123 = vst [vmem:[#allocation78_spill] sm:$0xff] %v7995_v58  ;;  %v7999_v62 = vld [vmem:[%s7303_s19 + $0x120] sm:$0xff]  ;;  %9125 = vst [vmem:[#allocation80_spill] sm:$0xff] %v8003_v57  ;;  %v8007_v45 = vld [vmem:[%s7303_s19 + $0x198] sm:$0xff] }
 0x54c   :  { %6272 = vmatpush3.msra.mxu0 %v7995_v58  ;;  %9124 = vst [vmem:[#allocation79_spill] sm:$0xff] %v7999_v62  ;;  %6310 = vmatpush3.msra.mxu1 %v7999_v62  ;;  %9126 = vst [vmem:[#allocation81_spill] sm:$0xff] %v8007_v45  ;;  %v8011_v16 = vld [vmem:[%s7303_s19 + $0x18] sm:$0xff]  ;;  %v8019_v62 = vld [vmem:[%s7303_s19 + $0x90] sm:$0xff] }
 0x54d   :  { %6273 = vmatprep.subr.mxu0 %v8003_v57  ;;  %6311 = vmatprep.subr.mxu1 %v8007_v45  ;;  %9127 = vst [vmem:[#allocation82_spill] sm:$0xff] %v8011_v16  ;;  %v8015_v58 = vld [vmem:[%s7303_s19 + $0x118] sm:$0xff]  ;;  %9129 = vst [vmem:[#allocation84_spill] sm:$0xff] %v8019_v62  ;;  %v8023_v57 = vld [vmem:[%s7303_s19 + $0x190] sm:$0xff] }
 0x54e   :  { %6274 = vmatpush3.msra.mxu0 %v8011_v16  ;;  %9128 = vst [vmem:[#allocation83_spill] sm:$0xff] %v8015_v58  ;;  %6312 = vmatpush3.msra.mxu1 %v8015_v58  ;;  %9130 = vst [vmem:[#allocation85_spill] sm:$0xff] %v8023_v57  ;;  %v8027_v45 = vld [vmem:[%s7303_s19 + $0x10] sm:$0xff]  ;;  %v8035_v58 = vld [vmem:[%s7303_s19 + $0x88] sm:$0xff] }
 0x54f   :  { %6275 = vmatprep.subr.mxu0 %v8019_v62  ;;  %6313 = vmatprep.subr.mxu1 %v8023_v57  ;;  %9131 = vst [vmem:[#allocation86_spill] sm:$0xff] %v8027_v45  ;;  %v8031_v16 = vld [vmem:[%s7303_s19 + $0x110] sm:$0xff]  ;;  %9133 = vst [vmem:[#allocation88_spill] sm:$0xff] %v8035_v58  ;;  %v8039_v62 = vld [vmem:[%s7303_s19 + $0x188] sm:$0xff] }
 0x550   :  { %6276 = vmatpush3.msra.mxu0 %v8027_v45  ;;  %9132 = vst [vmem:[#allocation87_spill] sm:$0xff] %v8031_v16  ;;  %6314 = vmatpush3.msra.mxu1 %v8031_v16  ;;  %9134 = vst [vmem:[#allocation89_spill] sm:$0xff] %v8039_v62  ;;  %v8043_v57 = vld [vmem:[%s7303_s19 + $0x8] sm:$0xff]  ;;  %v8055_v16 = vld [vmem:[%s7303_s19 + $0x180] sm:$0xff] }
 0x551   :  { %6277 = vmatprep.subr.mxu0 %v8035_v58  ;;  %6315 = vmatprep.subr.mxu1 %v8039_v62  ;;  %9135 = vst [vmem:[#allocation90_spill] sm:$0xff] %v8043_v57  ;;  %v8047_v45 = vld [vmem:[%s7303_s19 + $0x108] sm:$0xff]  ;;  %9138 = vst [vmem:[#allocation93_spill] sm:$0xff] %v8055_v16  ;;  %v8059_v58 = vld [vmem:[%s7303_s19] sm:$0xff] }
 0x552   :  { %6278 = vmatpush3.msra.mxu0 %v8043_v57  ;;  %9136 = vst [vmem:[#allocation91_spill] sm:$0xff] %v8047_v45  ;;  %6316 = vmatpush3.msra.mxu1 %v8047_v45  ;;  %9139 = vst [vmem:[#allocation94_spill] sm:$0xff] %v8059_v58  ;;  %v8063_v62 = vld [vmem:[%s7303_s19 + $0x100] sm:$0xff]  ;;  %v8067_v57 = vld [vmem:[%s7303_s19 + $0x2f8] sm:$0xff] }
 0x553   :  { %6279 = vmatprep.subr.mxu0 %v8051_v38  ;;  %6317 = vmatprep.subr.mxu1 %v8055_v16  ;;  %9140 = vst [vmem:[#allocation95_spill] sm:$0xff] %v8063_v62  ;;  %9141 = vst [vmem:[#allocation96_spill] sm:$0xff] %v8067_v57  ;;  %v8071_v45 = vld [vmem:[%s7303_s19 + $0x3f8] sm:$0xff]  ;;  %v2217_v38 = vpop.f32.mrf.mxu0 }
 0x554   :  { %6280 = vmatpush3.msra.mxu0 %v8059_v58  ;;  %6318 = vmatpush3.msra.mxu1 %v8063_v62  ;;  %9142 = vst [vmem:[#allocation97_spill] sm:$0xff] %v8071_v45  ;;  %v8079_v62 = vld [vmem:[%s5927_s22] sm:$0xff]  ;;  %s5942_s22 = sld [smem:[%s8904_s0 + %s7113_s15]]  }
 0x555   :  { %6325 = vmatprep.subr.mxu0 %v8067_v57  ;;  %6363 = vmatprep.subr.mxu1 %v8071_v45  ;;  %v2219_v34 = vpop.f32.mrf.mxu0  ;;  %v2035_v57 = vrot.slane %v8079_v62, %v7406_v3  ;;  %v2043_v31 = vrot.slane %v8079_v62, %v7409_v4  ;;  %v2031_v19 = vrot.slane %v8079_v62, %v7398_v0 }
 0x556   :  { %v2039_v17 = vrot.slane %v8079_v62, %v7401_v1 }
 0x557   :  { %v2223_v37 = vpop.f32.mrf.mxu0  ;;  %v2143_v22 = vadd.f32 %v7726_v48, %v2035_v57  ;;  %v2220_v15 = vadd.f32 %v2219_v34, %v2043_v31  ;;  %v2141_v8 = vadd.f32 %v7724_v13, %v2031_v19  ;;  %v2149_v63 = vadd.f32 %v7730_v5, %v2035_v57 }
 0x558   :  { %v2218_v6 = vadd.f32 %v2217_v38, %v2039_v17  ;;  %v2147_v34 = vadd.f32 %v7728_v49, %v2031_v19  ;;  %v2224_v59 = vadd.f32 %v2223_v37, %v2039_v17  ;;  %v8099_v13 = vrot.slane %v8079_v62, %v7426_v25 }
 0x559   :  { %v2225_v58 = vpop.f32.mrf.mxu0  ;;  %v2399_v33 = vmul.f32 0.1, %v2143_v22  ;;  %v2401_v3 = vmul.f32 0.1, %v2220_v15  ;;  %v2398_v60 = vmul.f32 0.1, %v2141_v8 }
 0x55a   :  { %v2226_v4 = vadd.f32 %v2225_v58, %v2043_v31  ;;  %v2400_v0 = vmul.f32 0.1, %v2218_v6  ;;  %vm2383_vm4 = vcmp.gt.f32.partialorder %v2143_v22, 0.0  ;;  %vm2385_vm5 = vcmp.gt.f32.partialorder %v2220_v15, 0.0 }
 0x55b   :  { %v8077_v16 = vpop.f32.mrf.mxu0  ;;  %vm2382_vm7 = vcmp.gt.f32.partialorder %v2141_v8, 0.0  ;;  %vm2384_vm8 = vcmp.gt.f32.partialorder %v2218_v6, 0.0  ;;  %v8103_v58 = vrot.slane %v8079_v62, %v7429_v26  ;;  %v2407_v5 = vmul.f32 0.1, %v2149_v63 }
 0x55c   :  { %v2409_v31 = vmul.f32 0.1, %v2226_v4  ;;  %v2415_v38 = vsel %vm2383_vm4, %v2143_v22, %v2399_v33  ;;  %v2417_v36 = vsel %vm2385_vm5, %v2220_v15, %v2401_v3  ;;  %v2414_v35 = vsel %vm2382_vm7, %v2141_v8, %v2398_v60  ;;  %v8127_v8 = vld [vmem:[%s7303_s19 + $0x270] sm:$0xff] }
 0x55d   :  { %v2373_v45 = vpop.f32.mrf.mxu0  ;;  %v2416_v50 = vsel %vm2384_vm8, %v2218_v6, %v2400_v0  ;;  %vm2391_vm9 = vcmp.gt.f32.partialorder %v2149_v63, 0.0  ;;  %vm2393_vm10 = vcmp.gt.f32.partialorder %v2226_v4, 0.0  ;;  %v2406_v19 = vmul.f32 0.1, %v2147_v34  ;;  %v8131_v15 = vld [vmem:[%s7303_s19 + $0x370] sm:$0xff] }
 0x55e   :  { %v2408_v37 = vmul.f32 0.1, %v2224_v59  ;;  %v2297_v26 = vadd.f32 %v7734_v54, %v8099_v13  ;;  %v2374_v33 = vadd.f32 %v2373_v45, %v8103_v58  ;;  %vm2390_vm11 = vcmp.gt.f32.partialorder %v2147_v34, 0.0  ;;  %v8113_v45 = vld [vmem:[%s7303_s19 + $0x378] sm:$0xff]  ;;  %v8117_v54 = vld [vmem:[%s7303_s19 + $0x2f0] sm:$0xff] }
 0x55f   :  { %v8090_v18 = vpop.f32.mrf.mxu0  ;;  %vm2392_vm13 = vcmp.gt.f32.partialorder %v2224_v59, 0.0  ;;  %v2423_v0 = vsel %vm2391_vm9, %v2149_v63, %v2407_v5  ;;  %v2422_v63 = vsel %vm2390_vm11, %v2147_v34, %v2406_v19 }
 0x560   :  { %v2405_v60 = vmul.f32 0.1, %v2374_v33  ;;  %v2424_v6 = vsel %vm2392_vm13, %v2224_v59, %v2408_v37  ;;  %vm2387_vm15 = vcmp.gt.f32.partialorder %v2297_v26, 0.0  ;;  %vm2389_vm3 = vcmp.gt.f32.partialorder %v2374_v33, 0.0  ;;  %v8139_v59 = vld [vmem:[%s7303_s19 + $0x2e8] sm:$0xff] }
 0x561   :  { %v8094_v61 = vpop.f32.mrf.mxu0  ;;  %v8147_v37 = vld [vmem:[%s7303_s19 + $0x268] sm:$0xff] }
 0x5e7   :  { %v2577_v1 = vpop.f32.mrf.mxu0  ;;  %v2654_v48 = vpop.f32.mrf.mxu1 }
 0x5e8   :  { %v2819_v49 = vmul.f32 %v2577_v1, %v2414_v35  ;;  %v2821_v17 = vmul.f32 %v2654_v48, %v2416_v50  ;;  %v2425_v50 = vsel %vm2393_vm10, %v2226_v4, %v2409_v31  ;;  %v2403_v4 = vmul.f32 0.1, %v2297_v26 }
 0x5e9   :  { %v2579_v57 = vpop.f32.mrf.mxu0  ;;  %v2656_v29 = vpop.f32.mrf.mxu1 }
 0x5ea   :  { %v2820_v47 = vmul.f32 %v2579_v57, %v2415_v38  ;;  %v2822_v11 = vmul.f32 %v2656_v29, %v2417_v36  ;;  %v8109_v29 = vld [vmem:[%s7303_s19 + $0x278] sm:$0xff]  ;;  %v8121_v36 = vld [vmem:[%s7303_s19 + $0x3f0] sm:$0xff]  ;;  %v8143_v38 = vld [vmem:[%s7303_s19 + $0x3e8] sm:$0xff]  ;;  %v2419_v57 = vsel %vm2387_vm15, %v2297_v26, %v2403_v4 }
 0x5eb   :  { %v8159_v26 = vld [vmem:[%s7303_s19 + $0x3e0] sm:$0xff]  ;;  %v8183_v4 = vld [vmem:[%s7303_s19 + $0x358] sm:$0xff] }
 0x5ec   :  { %v2583_v22 = vpop.f32.mrf.mxu0  ;;  %v2660_v3 = vpop.f32.mrf.mxu1  ;;  %2899 = vmatprep.mubr.f32.mxu0 %v2820_v47  ;;  %2974 = vmatprep.mubr.f32.mxu1 %v2822_v11 }
 0x5ed   :  { %2900 = vmatmul.mubr.f32.vlgmr.msra.gmra.mxu0 %v2819_v49  ;;  %2975 = vmatmul.mubr.f32.vlgmr.msra.gmra.mxu1 %v2821_v17  ;;  %v2827_v48 = vmul.f32 %v2583_v22, %v2422_v63  ;;  %v2829_v5 = vmul.f32 %v2660_v3, %v2424_v6  ;;  %v2421_v17 = vsel %vm2389_vm3, %v2374_v33, %v2405_v60  ;;  %v8151_v22 = vld [vmem:[%s7303_s19 + $0x368] sm:$0xff]  ;;  %v8163_v33 = vld [vmem:[%s7303_s19 + $0x260] sm:$0xff]  ;;  %v8187_v60 = vld [vmem:[%s7303_s19 + $0x2d0] sm:$0xff] }
 0x5ee   :  { %v2585_v1 = vpop.f32.mrf.mxu0  ;;  %v2662_v35 = vpop.f32.mrf.mxu1  ;;  %6326 = vmatpush3.msra.mxu0 %v8109_v29  ;;  %6364 = vmatpush3.msra.mxu1 %v8113_v45  ;;  %9143 = vst [vmem:[#allocation98_spill] sm:$0xff] %v8187_v60  ;;  %v8191_v63 = vld [vmem:[%s7303_s19 + $0x3d0] sm:$0xff] }
 0x5ef   :  { %v2828_v11 = vmul.f32 %v2585_v1, %v2423_v0  ;;  %v2830_v47 = vmul.f32 %v2662_v35, %v2425_v50  ;;  %6327 = vmatprep.subr.mxu0 %v8117_v54  ;;  %6365 = vmatprep.subr.mxu1 %v8121_v36  ;;  %v8155_v1 = vld [vmem:[%s7303_s19 + $0x2e0] sm:$0xff]  ;;  %v8171_v35 = vld [vmem:[%s7303_s19 + $0x2d8] sm:$0xff]  ;;  %9144 = vst [vmem:[#allocation99_spill] sm:$0xff] %v8191_v63  ;;  %v8195_v6 = vld [vmem:[%s7303_s19 + $0x250] sm:$0xff] }
 0x5f0   :  { %6328 = vmatpush3.msra.mxu0 %v8127_v8  ;;  %6366 = vmatpush3.msra.mxu1 %v8131_v15  ;;  %v8167_v50 = vld [vmem:[%s7303_s19 + $0x360] sm:$0xff]  ;;  %9145 = vst [vmem:[#allocation100_spill] sm:$0xff] %v8195_v6 }
 0x5f1   :  { %2904 = vmatprep.mubr.f32.mxu0 %v2828_v11  ;;  %2979 = vmatprep.mubr.f32.mxu1 %v2830_v47  ;;  %v8175_v11 = vld [vmem:[%s7303_s19 + $0x3d8] sm:$0xff] }
 0x5f2   :  { %v8134_v34 = vpop.f32.mrf.mxu0  ;;  %v8136_v31 = vpop.f32.mrf.mxu1  ;;  %6329 = vmatprep.subr.mxu0 %v8139_v59  ;;  %6367 = vmatprep.subr.mxu1 %v8143_v38  ;;  %v8179_v47 = vld [vmem:[%s7303_s19 + $0x258] sm:$0xff] }
 0x5f3   :  { %2905 = vmatmul.mubr.f32.gmra.mxu0 %v2827_v48  ;;  %2980 = vmatmul.mubr.f32.gmra.mxu1 %v2829_v5  ;;  %v8199_v48 = vld [vmem:[%s7303_s19 + $0x350] sm:$0xff]  ;;  %v8203_v5 = vld [vmem:[%s7303_s19 + $0x2c8] sm:$0xff] }
 0x5f4   :  { %v2733_v49 = vpop.f32.mrf.mxu0  ;;  %v2810_v19 = vpop.f32.mrf.mxu1  ;;  %6330 = vmatpush3.msra.mxu0 %v8147_v37  ;;  %6368 = vmatpush3.msra.mxu1 %v8151_v22  ;;  %9146 = vst [vmem:[#allocation101_spill] sm:$0xff] %v8199_v48  ;;  %9147 = vst [vmem:[#allocation102_spill] sm:$0xff] %v8203_v5 }
 0x5f5   :  { %v2824_v3 = vmul.f32 %v2733_v49, %v2419_v57  ;;  %v2826_v0 = vmul.f32 %v2810_v19, %v2421_v17  ;;  %6331 = vmatprep.subr.mxu0 %v8155_v1  ;;  %6369 = vmatprep.subr.mxu1 %v8159_v26  ;;  %v8207_v57 = vld [vmem:[%s7303_s19 + $0x3c8] sm:$0xff]  ;;  %v8219_v19 = vld [vmem:[%s7303_s19 + $0x2c0] sm:$0xff] }
 0x5f6   :  { %6332 = vmatpush3.msra.mxu0 %v8163_v33  ;;  %6370 = vmatpush3.msra.mxu1 %v8167_v50  ;;  %9148 = vst [vmem:[#allocation103_spill] sm:$0xff] %v8207_v57  ;;  %v8211_v49 = vld [vmem:[%s7303_s19 + $0x248] sm:$0xff]  ;;  %9151 = vst [vmem:[#allocation106_spill] sm:$0xff] %v8219_v19 }
 0x5f7   :  { %6333 = vmatprep.subr.mxu0 %v8171_v35  ;;  %3049 = vmatprep.mubr.f32.mxu0 %v2824_v3  ;;  %9149 = vst [vmem:[#allocation104_spill] sm:$0xff] %v8211_v49  ;;  %v8215_v17 = vld [vmem:[%s7303_s19 + $0x348] sm:$0xff]  ;;  %v8223_v3 = vld [vmem:[%s7303_s19 + $0x3c0] sm:$0xff] }
 0x5f8   :  { %6371 = vmatprep.subr.mxu1 %v8175_v11  ;;  %3124 = vmatprep.mubr.f32.mxu1 %v2826_v0  ;;  %9150 = vst [vmem:[#allocation105_spill] sm:$0xff] %v8215_v17  ;;  %9152 = vst [vmem:[#allocation107_spill] sm:$0xff] %v8223_v3  ;;  %v8227_v0 = vld [vmem:[%s7303_s19 + $0x240] sm:$0xff] }
 0x5f9   :  { %6334 = vmatpush3.msra.mxu0 %v8179_v47  ;;  %6372 = vmatpush3.msra.mxu1 %v8183_v4  ;;  %9153 = vst [vmem:[#allocation108_spill] sm:$0xff] %v8227_v0 }
 0x5fa   :  { %6335 = vmatprep.subr.mxu0 %v8187_v60  ;;  %6373 = vmatprep.subr.mxu1 %v8191_v63 }
 0x5fb   :  { %6336 = vmatpush3.msra.mxu0 %v8195_v6  ;;  %6374 = vmatpush3.msra.mxu1 %v8199_v48 }
 0x5fc   :  { %6337 = vmatprep.subr.mxu0 %v8203_v5  ;;  %6375 = vmatprep.subr.mxu1 %v8207_v57  ;;  %v8247_v57 = vld [vmem:[%s7303_s19 + $0x238] sm:$0xff]  ;;  %v8339_v5 = vld [vmem:[%s7303_s19 + $0x290] sm:$0xff] }
 0x5fd   :  { %6338 = vmatpush3.msra.mxu0 %v8211_v49  ;;  %6376 = vmatpush3.msra.mxu1 %v8215_v17  ;;  %v8231_v49 = vld [vmem:[%s7303_s19 + $0x340] sm:$0xff]  ;;  %v8235_v17 = vld [vmem:[%s7303_s19 + $0x2b8] sm:$0xff]  ;;  %9157 = vst [vmem:[#allocation112_spill] sm:$0xff] %v8247_v57  ;;  %9175 = vst [vmem:[#allocation130_spill] sm:$0xff] %v8339_v5 }
 0x5fe   :  { %6339 = vmatprep.subr.mxu0 %v8219_v19  ;;  %6377 = vmatprep.subr.mxu1 %v8223_v3  ;;  %9154 = vst [vmem:[#allocation109_spill] sm:$0xff] %v8231_v49  ;;  %9155 = vst [vmem:[#allocation110_spill] sm:$0xff] %v8235_v17  ;;  %v8239_v19 = vld [vmem:[%s7303_s19 + $0x3b8] sm:$0xff]  ;;  %v2047_v3 = vrot.slane %v8079_v62, %v7481_v7  ;;  %v8291_v7 = vld [vmem:[%s7303_s19 + $0x2a0] sm:$0xff] }
 0x5ff   :  { %6340 = vmatpush3.msra.mxu0 %v8227_v0  ;;  %6378 = vmatpush3.msra.mxu1 %v8231_v49  ;;  %9156 = vst [vmem:[#allocation111_spill] sm:$0xff] %v8239_v19  ;;  %v2055_v0 = vrot.slane %v8079_v62, %v7486_v14  ;;  %v8251_v49 = vld [vmem:[%s7303_s19 + $0x338] sm:$0xff]  ;;  %v8263_v62 = vld [vmem:[%s7303_s19 + $0x230] sm:$0xff]  ;;  %9167 = vst [vmem:[#allocation122_spill] sm:$0xff] %v8291_v7 }
 0x600   :  { %6341 = vmatprep.subr.mxu0 %v8235_v17  ;;  %6379 = vmatprep.subr.mxu1 %v8239_v19  ;;  %9158 = vst [vmem:[#allocation113_spill] sm:$0xff] %v8251_v49  ;;  %v8255_v17 = vld [vmem:[%s7303_s19 + $0x2b0] sm:$0xff]  ;;  %9161 = vst [vmem:[#allocation116_spill] sm:$0xff] %v8263_v62 }
 0x601   :  { %6342 = vmatpush3.msra.mxu0 %v8247_v57  ;;  %6380 = vmatpush3.msra.mxu1 %v8251_v49  ;;  %9159 = vst [vmem:[#allocation114_spill] sm:$0xff] %v8255_v17  ;;  %v8259_v19 = vld [vmem:[%s7303_s19 + $0x3b0] sm:$0xff]  ;;  %v8271_v49 = vld [vmem:[%s7303_s19 + $0x2a8] sm:$0xff]  ;;  %v2372_v14 = vadd.f32 %v8077_v16, %v2055_v0  ;;  %v2380_v16 = vadd.f32 %v8094_v61, %v8103_v58  ;;  %v8320_v61 = vld [vmem:[%s7303_s19 + $0x398] sm:$0xff] }
 0x602   :  { %6343 = vmatprep.subr.mxu0 %v8255_v17  ;;  %9160 = vst [vmem:[#allocation115_spill] sm:$0xff] %v8259_v19  ;;  %6381 = vmatprep.subr.mxu1 %v8259_v19  ;;  %v8267_v57 = vld [vmem:[%s7303_s19 + $0x330] sm:$0xff]  ;;  %9163 = vst [vmem:[#allocation118_spill] sm:$0xff] %v8271_v49  ;;  %v8275_v17 = vld [vmem:[%s7303_s19 + $0x3a8] sm:$0xff]  ;;  %v2295_v19 = vadd.f32 %v7732_v51, %v2047_v3 }
 0x603   :  { %6344 = vmatpush3.msra.mxu0 %v8263_v62  ;;  %9162 = vst [vmem:[#allocation117_spill] sm:$0xff] %v8267_v57  ;;  %6382 = vmatpush3.msra.mxu1 %v8267_v57  ;;  %9164 = vst [vmem:[#allocation119_spill] sm:$0xff] %v8275_v17  ;;  %v8281_v62 = vld [vmem:[%s7303_s19 + $0x228] sm:$0xff]  ;;  %v8295_v51 = vld [vmem:[%s7303_s19 + $0x3a0] sm:$0xff]  ;;  %vm2388_vm5 = vcmp.gt.f32.partialorder %v2372_v14, 0.0  ;;  %vm2397_vm8 = vcmp.gt.f32.partialorder %v2380_v16, 0.0 }
 0x604   :  { %6345 = vmatprep.subr.mxu0 %v8271_v49  ;;  %6383 = vmatprep.subr.mxu1 %v8275_v17  ;;  %9165 = vst [vmem:[#allocation120_spill] sm:$0xff] %v8281_v62  ;;  %v8285_v57 = vld [vmem:[%s7303_s19 + $0x328] sm:$0xff]  ;;  %v2303_v49 = vadd.f32 %v7738_v56, %v8099_v13  ;;  %9168 = vst [vmem:[#allocation123_spill] sm:$0xff] %v8295_v51  ;;  %v8313_v56 = vpop.f32.mrf.mxu0  ;;  %v8316_v13 = vld [vmem:[%s7303_s19 + $0x298] sm:$0xff]  ;;  %v2402_v58 = vmul.f32 0.1, %v2295_v19 }
 0x605   :  { %6346 = vmatpush3.msra.mxu0 %v8281_v62  ;;  %9166 = vst [vmem:[#allocation121_spill] sm:$0xff] %v8285_v57  ;;  %6384 = vmatpush3.msra.mxu1 %v8285_v57  ;;  %v8301_v62 = vld [vmem:[%s7303_s19 + $0x220] sm:$0xff]  ;;  %9171 = vst [vmem:[#allocation126_spill] sm:$0xff] %v8316_v13  ;;  %vm2386_vm4 = vcmp.gt.f32.partialorder %v2295_v19, 0.0 }
 0x606   :  { %6347 = vmatprep.subr.mxu0 %v8291_v7  ;;  %6385 = vmatprep.subr.mxu1 %v8295_v51  ;;  %9169 = vst [vmem:[#allocation124_spill] sm:$0xff] %v8301_v62  ;;  %v8305_v57 = vld [vmem:[%s7303_s19 + $0x320] sm:$0xff]  ;;  %9172 = vst [vmem:[#allocation127_spill] sm:$0xff] %v8320_v61  ;;  %v2378_v51 = vadd.f32 %v8090_v18, %v2055_v0  ;;  %v8331_v7 = vld [vmem:[%s7303_s19 + $0x218] sm:$0xff]  ;;  %v2411_v17 = vmul.f32 0.1, %v2303_v49 }
 0x607   :  { %6348 = vmatpush3.msra.mxu0 %v8301_v62  ;;  %9170 = vst [vmem:[#allocation125_spill] sm:$0xff] %v8305_v57  ;;  %6386 = vmatpush3.msra.mxu1 %v8305_v57  ;;  %v2404_v57 = vmul.f32 0.1, %v2372_v14  ;;  %v2301_v62 = vadd.f32 %v7736_v55, %v2047_v3  ;;  %9173 = vst [vmem:[#allocation128_spill] sm:$0xff] %v8331_v7  ;;  %v8343_v55 = vld [vmem:[%s7303_s19 + $0x390] sm:$0xff]  ;;  %vm2395_vm7 = vcmp.gt.f32.partialorder %v2303_v49, 0.0 }
 0x608   :  { %6349 = vmatprep.subr.mxu0 %v8316_v13  ;;  %6387 = vmatprep.subr.mxu1 %v8320_v61  ;;  %v2814_v13 = vpop.f32.mrf.mxu1  ;;  %v8335_v61 = vld [vmem:[%s7303_s19 + $0x318] sm:$0xff]  ;;  %9176 = vst [vmem:[#allocation131_spill] sm:$0xff] %v8343_v55  ;;  %v2413_v18 = vmul.f32 0.1, %v2380_v16  ;;  %v8347_v3 = vld [vmem:[%s7303_s19 + $0x210] sm:$0xff]  ;;  %vm2396_vm9 = vcmp.gt.f32.partialorder %v2378_v51, 0.0 }
 0x609   :  { %6350 = vmatpush3.msra.mxu0 %v8331_v7  ;;  %9174 = vst [vmem:[#allocation129_spill] sm:$0xff] %v8335_v61  ;;  %6388 = vmatpush3.msra.mxu1 %v8335_v61  ;;  %9177 = vst [vmem:[#allocation132_spill] sm:$0xff] %v8347_v3  ;;  %v8351_v0 = vld [vmem:[%s7303_s19 + $0x310] sm:$0xff]  ;;  %v2739_v61 = vpop.f32.mrf.mxu0  ;;  %v8355_v7 = vld [vmem:[%s7303_s19 + $0x288] sm:$0xff]  ;;  %v2412_v48 = vmul.f32 0.1, %v2378_v51  ;;  %v2420_v6 = vsel %vm2388_vm5, %v2372_v14, %v2404_v57 }
 0x60a   :  { %6351 = vmatprep.subr.mxu0 %v8339_v5  ;;  %6389 = vmatprep.subr.mxu1 %v8343_v55  ;;  %9178 = vst [vmem:[#allocation133_spill] sm:$0xff] %v8351_v0  ;;  %9179 = vst [vmem:[#allocation134_spill] sm:$0xff] %v8355_v7  ;;  %v8359_v55 = vld [vmem:[%s7303_s19 + $0x388] sm:$0xff]  ;;  %v2410_v5 = vmul.f32 0.1, %v2301_v62  ;;  %v2816_v63 = vpop.f32.mrf.mxu1  ;;  %v2825_v60 = vmul.f32 %v8136_v31, %v2420_v6  ;;  %v8376_v14 = vld [vmem:[%s7303_s19 + $0x280] sm:$0xff] }
 0x60b   :  { %6352 = vmatpush3.msra.mxu0 %v8347_v3  ;;  %6390 = vmatpush3.msra.mxu1 %v8351_v0  ;;  %9180 = vst [vmem:[#allocation135_spill] sm:$0xff] %v8359_v55  ;;  %v2418_v3 = vsel %vm2386_vm4, %v2295_v19, %v2402_v58  ;;  %v8365_v0 = vld [vmem:[%s7303_s19 + $0x208] sm:$0xff]  ;;  %v2427_v19 = vsel %vm2395_vm7, %v2303_v49, %v2411_v17  ;;  %9182 = vst [vmem:[#allocation137_spill] sm:$0xff] %v8376_v14  ;;  %v8380_v57 = vld [vmem:[%s7303_s19 + $0x380] sm:$0xff]  ;;  %vm2394_vm10 = vcmp.gt.f32.partialorder %v2301_v62, 0.0 }
 0x60c   :  { %6353 = vmatprep.subr.mxu0 %v8355_v7  ;;  %6391 = vmatprep.subr.mxu1 %v8359_v55  ;;  %v8369_v7 = vld [vmem:[%s7303_s19 + $0x308] sm:$0xff]  ;;  %v2823_v55 = vmul.f32 %v8134_v34, %v2418_v3  ;;  %9183 = vst [vmem:[#allocation138_spill] sm:$0xff] %v8380_v57  ;;  %v2832_v58 = vmul.f32 %v2739_v61, %v2427_v19  ;;  %v8385_v34 = vld [vmem:[%s7303_s19 + $0x200] sm:$0xff]  ;;  %v3138_v6 = vld [vmem:[%s8311_s26 + $0x18] sm:$0xff] }
 0x60d   :  { %6354 = vmatpush3.msra.mxu0 %v8365_v0  ;;  %9181 = vst [vmem:[#allocation136_spill] sm:$0xff] %v8369_v7  ;;  %6392 = vmatpush3.msra.mxu1 %v8369_v7  ;;  %v2429_v7 = vsel %vm2397_vm8, %v2380_v16, %v2413_v18  ;;  %9184 = vst [vmem:[#allocation139_spill] sm:$0xff] %v8385_v34  ;;  %v8389_v31 = vld [vmem:[%s7303_s19 + $0x300] sm:$0xff]  ;;  %v3292_v17 = vld [vmem:[%s8326_s30 + $0x10] sm:$0x7]  ;;  %v2428_v3 = vsel %vm2396_vm9, %v2378_v51, %v2412_v48  ;;  %s7101_s19 = smov 26  }
 0x60e   :  { %6355 = vmatprep.subr.mxu0 %v8376_v14  ;;  %6393 = vmatprep.subr.mxu1 %v8380_v57  ;;  %9185 = vst [vmem:[#allocation140_spill] sm:$0xff] %v8389_v31  ;;  %v2834_v49 = vmul.f32 %v2816_v63, %v2429_v7  ;;  %v9186_v57 = vmov 0.0   ;;  %v3137_v16 = vld [vmem:[%s8311_s26 + $0x10] sm:$0xff]  ;;  %v2426_v61 = vsel %vm2394_vm10, %v2301_v62, %v2410_v5  ;;  %v3136_v7 = vld [vmem:[%s8311_s26 + $0x8] sm:$0xff]  ;;  %v3290_v48 = vld [vmem:[%s8326_s30] sm:$0xff]  ;;  %s8423_s3 = sld [smem:[%s8904_s0 + %s7101_s19]]   ;;  %s7116_s19 = smov 37  }
 0x60f   :  { %6356 = vmatpush3.msra.mxu0 %v8385_v34  ;;  %6394 = vmatpush3.msra.mxu1 %v8389_v31  ;;  %v2833_v18 = vmul.f32 %v2814_v13, %v2428_v3  ;;  %v2831_v19 = vmul.f32 %v8313_v56, %v2426_v61  ;;  %v3291_v63 = vld [vmem:[%s8326_s30 + $0x8] sm:$0xff]  ;;  %s5944_s30 = sld [smem:[%s8904_s0 + %s7115_s27]]  }
 0x610   :  { %3050 = vmatmul.mubr.f32.vlgmr.msra.gmra.mxu0 %v2823_v55  ;;  %3125 = vmatmul.mubr.f32.vlgmr.msra.gmra.mxu1 %v2825_v60  ;;  %v3135_v60 = vld [vmem:[%s8311_s26] sm:$0xff]  ;;  %s5941_s26 = sld [smem:[%s8904_s0 + %s7114_s23]]  }
 0x611   :  { %6685 = vmatprep.subr.mxu0 %v9186_v57  ;;  %3054 = vmatprep.mubr.f32.mxu0 %v2832_v58 }
 0x612   :  { %3129 = vmatprep.mubr.f32.mxu1 %v2834_v49  ;;  %6686 = vmatpush3.msra.mxu0 %v3138_v6 }
 0x613   :  { %6687 = vmatprep.subr.mxu0 %v9186_v57  ;;  %6703 = vmatprep.subr.msk.mxu1 %vm508_vm0, %v3292_v17 }
 0x614   :  { %6688 = vmatpush3.msra.mxu0 %v3137_v16  ;;  %3130 = vmatmul.mubr.f32.gmra.mxu1 %v2833_v18  ;;  %v3410_v5 = vld [vmem:[%s8423_s3 + $0xd0] sm:$0xff]  ;;  %v3403_v62 = vld [vmem:[%s8423_s3 + $0x98] sm:$0xff] }
 0x615   :  { %3055 = vmatmul.mubr.f32.gmra.mxu0 %v2831_v19  ;;  %6689 = vmatprep.subr.mxu0 %v9186_v57  ;;  %v3402_v51 = vld [vmem:[%s8423_s3 + $0x90] sm:$0xff]  ;;  %v3395_v56 = vld [vmem:[%s8423_s3 + $0x58] sm:$0xff] }
 0x616   :  { %6690 = vmatpush3.msra.mxu0 %v3136_v7  ;;  %6693 = vmatprep.mubr.msk.f32.mxu0 %vm7093_vm12, %v9186_v57  ;;  %v3394_v13 = vld [vmem:[%s8423_s3 + $0x50] sm:$0xff]  ;;  %v3387_v55 = vld [vmem:[%s8423_s3 + $0x18] sm:$0xff] }
 0x617   :  { %6691 = vmatprep.subr.mxu0 %v9186_v57  ;;  %6704 = vmatpush3.msk.msra.mxu1 %vm508_vm0, %v3292_v17  ;;  %v3386_v58 = vld [vmem:[%s8423_s3 + $0x10] sm:$0xff]  ;;  %v3415_v6 = vld [vmem:[%s8423_s3 + $0xf8] sm:$0xff] }
 0x618   :  { %6692 = vmatpush3.msra.mxu0 %v3135_v60  ;;  %6705 = vmatprep.subr.mxu1 %v3291_v63 }
 0x619   :  { %6694 = vmatmul.mubr.msk.f32.vlgmr.msra.gmra.mxu0 %vm245_vm2, %v7681_v32  ;;  %6706 = vmatpush3.msra.mxu1 %v3291_v63  ;;  %v3411_v32 = vld [vmem:[%s8423_s3 + $0xd8] sm:$0xff] }
 0x61a   :  { %6707 = vmatprep.subr.mxu1 %v3290_v48  ;;  %6709 = vmatprep.mubr.msk.f32.mxu1 %vm196_vm1, %v7153_v40 }
 0x61b   :  { %6708 = vmatpush3.msra.mxu1 %v3290_v48  ;;  %6696 = vmatprep.subr.mxu0 %v9186_v57 }
 0x61c   :  { %6710 = vmatmul.mubr.msk.f32.vlgmr.msra.gmra.mxu1 %vm196_vm1, %v7155_v41  ;;  %6700 = vmatprep.mubr.msk.f32.mxu0 %vm7093_vm12, %v9186_v57 }
 0x61d   :  { %3605 = vmatprep.mubr.f32.mxu1 %v9186_v57  ;;  %3565 = vmatprep.subr.mxu1 %v3411_v32 }
 0x61e   :  { %3566 = vmatpush1.msra.mxu1 %v3410_v5 }
 0x61f   :  { %3567 = vmatprep.subr.mxu1 %v3403_v62 }
 0x620   :  { %3568 = vmatpush1.msra.mxu1 %v3402_v51 }
 0x621   :  { %3569 = vmatprep.subr.mxu1 %v3395_v56 }
 0x622   :  { %3570 = vmatpush1.msra.mxu1 %v3394_v13 }
 0x623   :  { %3571 = vmatprep.subr.mxu1 %v3387_v55 }
 0x624   :  { %3572 = vmatpush1.msra.mxu1 %v3386_v58 }
 0x625   :  { %3719 = vmatprep.subr.mxu1 %v3415_v6 }
 0x6ad   :  { %v6281_v49 = vpop.f32.mrf.mxu0  ;;  %v6319_v17 = vpop.f32.mrf.mxu1 }
 0x6af   :  { %v6282_v3 = vpop.f32.mrf.mxu0  ;;  %v6320_v16 = vpop.f32.mrf.mxu1 }
 0x6b0   :  { %v6283_v5 = vadd.f32 %v6282_v3, %v6281_v49  ;;  %v6321_v62 = vadd.f32 %v6320_v16, %v6319_v17 }
 0x6b2   :  { %v2977_v40 = vadd.f32 %v6321_v62, %v6283_v5  ;;  %v3408_v62 = vld [vmem:[%s8423_s3 + $0xc0] sm:$0xff] }
 0x6b3   :  { %v6284_v61 = vpop.f32.mrf.mxu0  ;;  %v6322_v18 = vpop.f32.mrf.mxu1 }
 0x6b5   :  { %v6285_v19 = vpop.f32.mrf.mxu0  ;;  %v6323_v7 = vpop.f32.mrf.mxu1 }
 0x6b6   :  { %v6286_v51 = vadd.f32 %v6285_v19, %v6284_v61  ;;  %v6324_v56 = vadd.f32 %v6323_v7, %v6322_v18  ;;  %v6016_v7 = vld [vmem:[%s5931_s7] ss:$0 sm:$0xff]  ;;  %s5946_s7 = sld [smem:[%s8904_s0 + %s7117_s4]]  }
 0x6b8   :  { %v2982_v31 = vadd.f32 %v6324_v56, %v6286_v51  ;;  %v3414_v51 = vld [vmem:[%s8423_s3 + $0xf0] sm:$0xff] }
 0x6d0   :  { %v6357_v60 = vpop.f32.mrf.mxu0  ;;  %v6395_v63 = vpop.f32.mrf.mxu1 }
 0x6d2   :  { %v6358_v48 = vpop.f32.mrf.mxu0  ;;  %v6396_v32 = vpop.f32.mrf.mxu1 }
 0x6d3   :  { %v6359_v58 = vadd.f32 %v6358_v48, %v6357_v60  ;;  %v6397_v61 = vadd.f32 %v6396_v32, %v6395_v63  ;;  %v3409_v48 = vld [vmem:[%s8423_s3 + $0xc8] sm:$0xff] }
 0x6d4   :  { %v6398_v13 = vpop.f32.mrf.mxu1  ;;  %v3393_v32 = vld [vmem:[%s8423_s3 + $0x48] sm:$0xff] }
 0x6d5   :  { %v6360_v55 = vpop.f32.mrf.mxu0  ;;  %v3052_v49 = vadd.f32 %v6359_v58, %v2977_v40  ;;  %v3385_v58 = vld [vmem:[%s8423_s3 + $0x8] sm:$0xff] }
 0x6d6   :  { %v6399_v41 = vpop.f32.mrf.mxu1 }
 0x6d7   :  { %v6361_v6 = vpop.f32.mrf.mxu0  ;;  %v6400_v3 = vadd.f32 %v6399_v41, %v6398_v13  ;;  %v3127_v60 = vadd.f32 %v6397_v61, %v3052_v49  ;;  %v3401_v41 = vld [vmem:[%s8423_s3 + $0x88] sm:$0xff]  ;;  %v3392_v13 = vld [vmem:[%s8423_s3 + $0x40] sm:$0xff]  ;;  %v3406_v49 = vld [vmem:[%s8423_s3 + $0xb0] sm:$0xff] }
 0x6d8   :  { %v6362_v34 = vadd.f32 %v6361_v6, %v6360_v55  ;;  %v3407_v55 = vld [vmem:[%s8423_s3 + $0xb8] sm:$0xff]  ;;  %v3384_v6 = vld [vmem:[%s8423_s3] sm:$0xff]  ;;  %v3405_v61 = vld [vmem:[%s8423_s3 + $0xa8] sm:$0xff] }
 0x6d9   :  { %v8437_v14 = vpop.f32.mrf.mxu0 }
 0x6da   :  { %v3057_v17 = vadd.f32 %v6362_v34, %v2982_v31  ;;  %v3400_v31 = vld [vmem:[%s8423_s3 + $0x80] sm:$0xff] }
 0x6db   :  { %v6695_v16 = vpop.f32.mrf.mxu0 }
 0x6dc   :  { %v3132_v18 = vadd.f32 %v6400_v3, %v3057_v17  ;;  %v6711_v19 = vpop.f32.mrf.mxu1  ;;  %v3413_v3 = vld [vmem:[%s8423_s3 + $0xe8] sm:$0xff]  ;;  %v3412_v16 = vld [vmem:[%s8423_s3 + $0xe0] sm:$0xff] }
 0x6dd   :  { %v3375_v63 = vadd.f32 %v6711_v19, %v6016_v7  ;;  %v3399_v19 = vld [vmem:[%s8423_s3 + $0x78] sm:$0xff] }
 0x6de   :  { %6697 = vmatpush3.msra.mxu0 %v3132_v18  ;;  %v3369_v5 = vpop.f32.mrf.mxu1  ;;  %v3404_v18 = vld [vmem:[%s8423_s3 + $0xa0] sm:$0xff] }
 0x6df   :  { %6698 = vmatprep.subr.mxu0 %v9186_v57  ;;  %v3370_v40 = vadd.f32 %v6016_v7, %v3369_v5  ;;  %v3381_v17 = vmul.f32 0.1, %v3375_v63  ;;  %vm3379_vm13 = vcmp.gt.f32.partialorder %v3375_v63, 0.0  ;;  %v3389_v5 = vld [vmem:[%s8423_s3 + $0x28] sm:$0xff] }
 0x6e0   :  { %6699 = vmatpush3.msra.mxu0 %v3127_v60  ;;  %v3397_v60 = vld [vmem:[%s8423_s3 + $0x68] sm:$0xff] }
 0x6e1   :  { %6701 = vmatmul.mubr.msk.f32.vlgmr.msra.gmra.mxu0 %vm1818_vm14, %v7595_v2  ;;  %3488 = vmatprep.subr.mxu0 %v3409_v48  ;;  %vm3378_vm11 = vcmp.gt.f32.partialorder %v3370_v40, 0.0  ;;  %v3380_v34 = vmul.f32 0.1, %v3370_v40  ;;  %v3383_v7 = vsel %vm3379_vm13, %v3375_v63, %v3381_v17  ;;  %v3396_v48 = vld [vmem:[%s8423_s3 + $0x60] sm:$0xff] }
 0x6e2   :  { %3489 = vmatpush1.msra.mxu0 %v3408_v62  ;;  %3528 = vmatprep.mubr.f32.mxu0 %v9186_v57  ;;  %v3398_v62 = vld [vmem:[%s8423_s3 + $0x70] sm:$0xff]  ;;  %v9198_v17 = vld [vmem:[#allocation26_spill] sm:$0xff] }
 0x6e3   :  { %v3382_v56 = vsel %vm3378_vm11, %v3370_v40, %v3380_v34  ;;  %3490 = vmatprep.subr.mxu0 %v3401_v41  ;;  %v3388_v40 = vld [vmem:[%s8423_s3 + $0x20] sm:$0xff]  ;;  %v3391_v41 = vld [vmem:[%s8423_s3 + $0x38] sm:$0xff]  ;;  %v3390_v34 = vld [vmem:[%s8423_s3 + $0x30] sm:$0xff]  ;;  %s5943_s3 = sld [smem:[%s8904_s0 + %s7116_s19]]  }
 0x6e4   :  { %3491 = vmatpush1.msra.mxu0 %v3400_v31  ;;  %6022 = vmatmul.mubr.msk.f32.vlgmr.msra.gmra.mxu1 %vm245_vm2, %v3382_v56 }
 0x6e5   :  { %3492 = vmatprep.subr.mxu0 %v3393_v32  ;;  %3720 = vmatpush1.msra.mxu1 %v3414_v51  ;;  %v9190_v32 = vld [vmem:[#allocation18_spill] sm:$0xff]  ;;  %v9191_v51 = vld [vmem:[#allocation19_spill] sm:$0xff] }
 0x6e6   :  { %3493 = vmatpush1.msra.mxu0 %v3392_v13  ;;  %3721 = vmatprep.subr.mxu1 %v3407_v55  ;;  %v9193_v13 = vld [vmem:[#allocation21_spill] sm:$0xff]  ;;  %v9194_v55 = vld [vmem:[#allocation22_spill] sm:$0xff] }
 0x6e7   :  { %3494 = vmatprep.subr.mxu0 %v3385_v58  ;;  %3611 = vmatprep.mubr.f32.mxu1 %v9186_v57  ;;  %v9195_v58 = vld [vmem:[#allocation23_spill] sm:$0xff] }
 0x6e8   :  { %3495 = vmatpush1.msra.mxu0 %v3384_v6  ;;  %3722 = vmatpush1.msra.mxu1 %v3406_v49  ;;  %v9196_v6 = vld [vmem:[#allocation24_spill] sm:$0xff]  ;;  %v9197_v49 = vld [vmem:[#allocation25_spill] sm:$0xff] }
 0x6e9   :  { %6020 = vmatmul.mubr.msk.f32.vlgmr.msra.gmra.mxu0 %vm245_vm2, %v3382_v56  ;;  %3642 = vmatprep.subr.mxu0 %v3413_v3  ;;  %v9199_v3 = vld [vmem:[#allocation27_spill] sm:$0xff] }
 0x6ea   :  { %3643 = vmatpush1.msra.mxu0 %v3412_v16  ;;  %3534 = vmatprep.mubr.f32.mxu0 %v9186_v57  ;;  %v9200_v16 = vld [vmem:[#allocation28_spill] sm:$0xff] }
 0x6eb   :  { %3644 = vmatprep.subr.mxu0 %v3405_v61  ;;  %6023 = vmatmul.mubr.msk.f32.gmra.mxu1 %vm245_vm2, %v3383_v7  ;;  %v9201_v61 = vld [vmem:[#allocation29_spill] sm:$0xff] }
 0x6ec   :  { %3645 = vmatpush1.msra.mxu0 %v3404_v18  ;;  %3723 = vmatprep.subr.mxu1 %v3399_v19  ;;  %v9202_v18 = vld [vmem:[#allocation30_spill] sm:$0xff]  ;;  %v9203_v19 = vld [vmem:[#allocation31_spill] sm:$0xff] }
 0x6ed   :  { %6021 = vmatmul.mubr.msk.f32.gmra.mxu0 %vm245_vm2, %v3383_v7  ;;  %3646 = vmatprep.subr.mxu0 %v3397_v60  ;;  %v9205_v60 = vld [vmem:[#allocation33_spill] sm:$0xff] }
 0x6ee   :  { %3647 = vmatpush1.msra.mxu0 %v3396_v48  ;;  %3682 = vmatprep.mubr.f32.mxu0 %v9186_v57  ;;  %v9206_v48 = vld [vmem:[#allocation34_spill] sm:$0xff] }
 0x6ef   :  { %3648 = vmatprep.subr.mxu0 %v3389_v5  ;;  %3724 = vmatpush1.msra.mxu1 %v3398_v62  ;;  %v9207_v5 = vld [vmem:[#allocation35_spill] sm:$0xff]  ;;  %v9208_v62 = vld [vmem:[#allocation36_spill] sm:$0xff] }
 0x6f0   :  { %3649 = vmatpush1.msra.mxu0 %v3388_v40  ;;  %3725 = vmatprep.subr.mxu1 %v3391_v41  ;;  %v9209_v40 = vld [vmem:[#allocation37_spill] sm:$0xff]  ;;  %v9210_v41 = vld [vmem:[#allocation38_spill] sm:$0xff] }
 0x6f1   :  { %6024 = vmatmul.mubr.msk.f32.vlgmr.msra.gmra.mxu0 %vm245_vm2, %v3382_v56  ;;  %3726 = vmatpush1.msra.mxu1 %v3390_v34  ;;  %v9211_v34 = vld [vmem:[#allocation39_spill] sm:$0xff] }
 0x6f2   :  { %3688 = vmatprep.mubr.f32.mxu0 %v9186_v57  ;;  %3759 = vmatprep.mubr.f32.mxu1 %v9186_v57 }
 0x6f3   :  { %6026 = vmatmul.mubr.msk.f32.vlgmr.msra.gmra.mxu1 %vm245_vm2, %v3382_v56  ;;  %3925 = vmatprep.subr.mxu1 %v7640_v20  ;;  %v9192_v56 = vld [vmem:[#allocation20_spill] sm:$0xff] }
 0x6f4   :  { %3765 = vmatprep.mubr.f32.mxu1 %v9186_v57  ;;  %3926 = vmatpush1.msra.mxu1 %v7644_v21  ;;  %v6015_v21 = vld [vmem:[%s5929_s11] ss:$0 sm:$0xff]  ;;  %s5945_s11 = sld [smem:[%s8904_s0 + %s7118_s8]]  }
 0x6f5   :  { %6025 = vmatmul.mubr.msk.f32.gmra.mxu0 %vm245_vm2, %v3383_v7  ;;  %3927 = vmatprep.subr.mxu1 %v7648_v23 }
 0x6f6   :  { %6714 = vmatprep.mubr.msk.f32.mxu0 %vm1029_vm6, %v7237_v52  ;;  %3928 = vmatpush1.msra.mxu1 %v7653_v24 }
 0x6f7   :  { %6027 = vmatmul.mubr.msk.f32.gmra.mxu1 %vm245_vm2, %v3383_v7  ;;  %3929 = vmatprep.subr.mxu1 %v7658_v27  ;;  %v9204_v7 = vld [vmem:[#allocation32_spill] sm:$0xff] }
 0x6f8   :  { %3930 = vmatpush1.msra.mxu1 %v7662_v28  ;;  %3965 = vmatprep.mubr.f32.mxu1 %v9186_v57  ;;  %v9187_v28 = vld [vmem:[#allocation15_spill] sm:$0xff] }
 0x6f9   :  { %3931 = vmatprep.subr.mxu1 %v7666_v9  ;;  %v9188_v9 = vld [vmem:[#allocation16_spill] sm:$0xff] }
 0x6fa   :  { %3932 = vmatpush1.msra.mxu1 %v7670_v10  ;;  %v9189_v10 = vld [vmem:[#allocation17_spill] sm:$0xff] }
 0x6fb   :  { %4079 = vmatprep.subr.mxu1 %v7674_v30 }
 0x7a1   :  { %v3278_v20 = vpop.f32.mrf.mxu0 }
 0x7a2   :  { %v3279_v23 = vadd.f32 %v3278_v20, %v8437_v14  ;;  %v9212_v20 = vld [vmem:[#allocation40_spill] sm:$0xff] }
 0x7a3   :  { %v6702_v24 = vpop.f32.mrf.mxu0 }
 0x7a4   :  { %v8496_v27 = vadd.f32 %v6015_v21, %v3279_v23  ;;  %v9213_v21 = vld [vmem:[#allocation41_spill] sm:$0xff]  ;;  %v9214_v23 = vld [vmem:[#allocation42_spill] sm:$0xff]  ;;  %v9215_v24 = vld [vmem:[#allocation43_spill] sm:$0xff] }
 0x7a6   :  { %6712 = vmatprep.subr.mxu0 %v8496_v27 }
 0x7a7   :  { %6713 = vmatpush3.msra.mxu0 %v8496_v27 }
 0x7a8   :  { %6715 = vmatmul.mubr.msk.f32.vlgmr.msra.gmra.mxu0 %vm1029_vm6, %v7248_v53  ;;  %4002 = vmatprep.subr.mxu0 %v7688_v39 }
 0x7a9   :  { %4003 = vmatpush1.msra.mxu0 %v7692_v42  ;;  %4042 = vmatprep.mubr.f32.mxu0 %v9186_v57  ;;  %v8512_v30 = vpop.f32.mrf.mxu0 }
 0x7aa   :  { %4004 = vmatprep.subr.mxu0 %v7697_v12 }
 0x7ab   :  { %4005 = vmatpush1.msra.mxu0 %v7701_v43  ;;  %v8514_v39 = vpop.f32.mrf.mxu0 }
 0x7ac   :  { %4006 = vmatprep.subr.mxu0 %v7705_v44 }
 0x7ad   :  { %4007 = vmatpush1.msra.mxu0 %v7709_v46  ;;  %v8516_v42 = vpop.f32.mrf.mxu0 }
 0x7ae   :  { %4008 = vmatprep.subr.mxu0 %v9187_v28  ;;  %v9216_v28 = vld [vmem:[#allocation44_spill] sm:$0xff] }
 0x7af   :  { %4009 = vmatpush1.msra.mxu0 %v9188_v9  ;;  %v8518_v14 = vpop.f32.mrf.mxu0  ;;  %v9217_v9 = vld [vmem:[#allocation45_spill] sm:$0xff] }
 0x7b0   :  { %4156 = vmatprep.subr.mxu0 %v9189_v10  ;;  %v9218_v10 = vld [vmem:[#allocation46_spill] sm:$0xff] }
 0x7b1   :  { %v8520_v12 = vpop.f32.mrf.mxu0 }
 0x7b3   :  { %v8522_v43 = vpop.f32.mrf.mxu0 }
 0x7b5   :  { %v8524_v44 = vpop.f32.mrf.mxu0 }
 0x7b7   :  { %v8526_v46 = vpop.f32.mrf.mxu0 }
 0x868   :  { %v6716_v31 = vpop.f32.mrf.mxu0 }
 0x86a   :  { %v3886_v63 = vpop.f32.mrf.mxu0 }
 0x86b   :  { %6030 = vmatmul.mubr.msk.f32.vlgmr.msra.gmra.mxu1 %vm245_vm2, %v3886_v63  ;;  %6032 = vmatmul.mubr.msk.f32.vlgmr.msra.gmra.mxu0 %vm245_vm2, %v3886_v63 }
 0x86c   :  { %4080 = vmatpush1.msra.mxu1 %v9190_v32  ;;  %4157 = vmatpush1.msra.mxu0 %v9191_v51  ;;  %v9221_v32 = vld [vmem:[#allocation49_spill] sm:$0xff]  ;;  %v9222_v51 = vld [vmem:[#allocation50_spill] sm:$0xff] }
 0x86d   :  { %4081 = vmatprep.subr.mxu1 %v9192_v56  ;;  %4158 = vmatprep.subr.mxu0 %v9193_v13  ;;  %v9223_v56 = vld [vmem:[#allocation51_spill] sm:$0xff]  ;;  %v9224_v13 = vld [vmem:[#allocation52_spill] sm:$0xff] }
 0x86e   :  { %3971 = vmatprep.mubr.f32.mxu1 %v9186_v57  ;;  %4048 = vmatprep.mubr.f32.mxu0 %v9186_v57 }
 0x86f   :  { %4082 = vmatpush1.msra.mxu1 %v9194_v55  ;;  %4159 = vmatpush1.msra.mxu0 %v9195_v58  ;;  %v9225_v55 = vld [vmem:[#allocation53_spill] sm:$0xff]  ;;  %v9226_v58 = vld [vmem:[#allocation54_spill] sm:$0xff] }
 0x870   :  { %6031 = vmatmul.mubr.msk.f32.gmra.mxu1 %vm245_vm2, %v6716_v31  ;;  %6033 = vmatmul.mubr.msk.f32.gmra.mxu0 %vm245_vm2, %v6716_v31 }
 0x871   :  { %4083 = vmatprep.subr.mxu1 %v9196_v6  ;;  %4160 = vmatprep.subr.mxu0 %v9197_v49  ;;  %v9227_v6 = vld [vmem:[#allocation55_spill] sm:$0xff]  ;;  %v9228_v49 = vld [vmem:[#allocation56_spill] sm:$0xff] }
 0x872   :  { %4084 = vmatpush1.msra.mxu1 %v9198_v17  ;;  %4161 = vmatpush1.msra.mxu0 %v9199_v3  ;;  %v9229_v17 = vld [vmem:[#allocation57_spill] sm:$0xff]  ;;  %v9230_v3 = vld [vmem:[#allocation58_spill] sm:$0xff] }
 0x873   :  { %4085 = vmatprep.subr.mxu1 %v9200_v16  ;;  %4162 = vmatprep.subr.mxu0 %v9201_v61  ;;  %v9231_v16 = vld [vmem:[#allocation59_spill] sm:$0xff]  ;;  %v9232_v61 = vld [vmem:[#allocation60_spill] sm:$0xff] }
 0x874   :  { %4086 = vmatpush1.msra.mxu1 %v9202_v18  ;;  %4119 = vmatprep.mubr.f32.mxu1 %v9186_v57  ;;  %v9233_v18 = vld [vmem:[#allocation61_spill] sm:$0xff] }
 0x875   :  { %4163 = vmatpush1.msra.mxu0 %v9203_v19  ;;  %4196 = vmatprep.mubr.f32.mxu0 %v9186_v57  ;;  %v9234_v19 = vld [vmem:[#allocation62_spill] sm:$0xff] }
 0x876   :  { %6034 = vmatmul.mubr.msk.f32.vlgmr.msra.gmra.mxu1 %vm245_vm2, %v3886_v63  ;;  %6036 = vmatmul.mubr.msk.f32.vlgmr.msra.gmra.mxu0 %vm245_vm2, %v3886_v63  ;;  %v9220_v63 = vld [vmem:[#allocation48_spill] sm:$0xff] }
 0x877   :  { %4125 = vmatprep.mubr.f32.mxu1 %v9186_v57  ;;  %4202 = vmatprep.mubr.f32.mxu0 %v9186_v57 }
 0x878   :  { %6417 = vmatprep.subr.mxu1 %v9204_v7  ;;  %6455 = vmatprep.subr.mxu0 %v9205_v60  ;;  %v9235_v7 = vld [vmem:[#allocation63_spill] sm:$0xff]  ;;  %v9236_v60 = vld [vmem:[#allocation64_spill] sm:$0xff] }
 0x879   :  { %6418 = vmatpush3.msra.mxu1 %v9206_v48  ;;  %6456 = vmatpush3.msra.mxu0 %v9207_v5  ;;  %v9237_v48 = vld [vmem:[#allocation65_spill] sm:$0xff]  ;;  %v9238_v5 = vld [vmem:[#allocation66_spill] sm:$0xff] }
 0x87a   :  { %6035 = vmatmul.mubr.msk.f32.gmra.mxu1 %vm245_vm2, %v6716_v31  ;;  %6037 = vmatmul.mubr.msk.f32.gmra.mxu0 %vm245_vm2, %v6716_v31  ;;  %v9219_v31 = vld [vmem:[#allocation47_spill] sm:$0xff] }
 0x87b   :  { %6419 = vmatprep.subr.mxu1 %v9208_v62  ;;  %6457 = vmatprep.subr.mxu0 %v9209_v40  ;;  %v9239_v62 = vld [vmem:[#allocation67_spill] sm:$0xff]  ;;  %v9240_v40 = vld [vmem:[#allocation68_spill] sm:$0xff] }
 0x87c   :  { %6420 = vmatpush3.msra.mxu1 %v9210_v41  ;;  %6458 = vmatpush3.msra.mxu0 %v9211_v34  ;;  %v9241_v41 = vld [vmem:[#allocation69_spill] sm:$0xff]  ;;  %v9242_v34 = vld [vmem:[#allocation70_spill] sm:$0xff] }
 0x87d   :  { %6421 = vmatprep.subr.mxu1 %v9212_v20  ;;  %6459 = vmatprep.subr.mxu0 %v9213_v21  ;;  %v9243_v20 = vld [vmem:[#allocation71_spill] sm:$0xff]  ;;  %v9244_v21 = vld [vmem:[#allocation72_spill] sm:$0xff] }
 0x87e   :  { %6422 = vmatpush3.msra.mxu1 %v9214_v23  ;;  %6460 = vmatpush3.msra.mxu0 %v9215_v24  ;;  %v9245_v23 = vld [vmem:[#allocation73_spill] sm:$0xff]  ;;  %v9246_v24 = vld [vmem:[#allocation74_spill] sm:$0xff] }
 0x87f   :  { %6423 = vmatprep.subr.mxu1 %v9216_v28  ;;  %6461 = vmatprep.subr.mxu0 %v9217_v9  ;;  %v9247_v28 = vld [vmem:[#allocation75_spill] sm:$0xff]  ;;  %v9248_v9 = vld [vmem:[#allocation76_spill] sm:$0xff] }
 0x880   :  { %6424 = vmatpush3.msra.mxu1 %v9218_v10  ;;  %6462 = vmatpush3.msra.mxu0 %v9219_v31  ;;  %v9249_v10 = vld [vmem:[#allocation77_spill] sm:$0xff]  ;;  %v9250_v31 = vld [vmem:[#allocation78_spill] sm:$0xff] }
 0x881   :  { %6425 = vmatprep.subr.mxu1 %v9220_v63  ;;  %6463 = vmatprep.subr.mxu0 %v9221_v32  ;;  %v9251_v63 = vld [vmem:[#allocation79_spill] sm:$0xff]  ;;  %v9252_v32 = vld [vmem:[#allocation80_spill] sm:$0xff] }
 0x882   :  { %6426 = vmatpush3.msra.mxu1 %v9222_v51  ;;  %6464 = vmatpush3.msra.mxu0 %v9223_v56  ;;  %v9253_v51 = vld [vmem:[#allocation81_spill] sm:$0xff]  ;;  %v9254_v56 = vld [vmem:[#allocation82_spill] sm:$0xff] }
 0x883   :  { %6427 = vmatprep.subr.mxu1 %v9224_v13  ;;  %6465 = vmatprep.subr.mxu0 %v9225_v55  ;;  %v9255_v13 = vld [vmem:[#allocation83_spill] sm:$0xff]  ;;  %v9256_v55 = vld [vmem:[#allocation84_spill] sm:$0xff] }
 0x884   :  { %6428 = vmatpush3.msra.mxu1 %v9226_v58  ;;  %6466 = vmatpush3.msra.mxu0 %v9227_v6  ;;  %v9257_v58 = vld [vmem:[#allocation85_spill] sm:$0xff]  ;;  %v9258_v6 = vld [vmem:[#allocation86_spill] sm:$0xff] }
 0x885   :  { %6429 = vmatprep.subr.mxu1 %v9228_v49  ;;  %6467 = vmatprep.subr.mxu0 %v9229_v17  ;;  %v9259_v49 = vld [vmem:[#allocation87_spill] sm:$0xff]  ;;  %v9260_v17 = vld [vmem:[#allocation88_spill] sm:$0xff] }
 0x886   :  { %6430 = vmatpush3.msra.mxu1 %v9230_v3  ;;  %6468 = vmatpush3.msra.mxu0 %v9231_v16  ;;  %v9261_v3 = vld [vmem:[#allocation89_spill] sm:$0xff]  ;;  %v9262_v16 = vld [vmem:[#allocation90_spill] sm:$0xff] }
 0x887   :  { %6431 = vmatprep.subr.mxu1 %v9232_v61  ;;  %6469 = vmatprep.subr.mxu0 %v9233_v18  ;;  %v9263_v61 = vld [vmem:[#allocation91_spill] sm:$0xff]  ;;  %v9264_v18 = vld [vmem:[#allocation92_spill] sm:$0xff] }
 0x888   :  { %6432 = vmatpush3.msra.mxu1 %v9234_v19  ;;  %6470 = vmatpush3.msra.mxu0 %v9235_v7  ;;  %v9265_v19 = vld [vmem:[#allocation93_spill] sm:$0xff]  ;;  %v9266_v7 = vld [vmem:[#allocation94_spill] sm:$0xff] }
 0x889   :  { %6433 = vmatprep.subr.mxu1 %v9236_v60  ;;  %6471 = vmatprep.subr.mxu0 %v9237_v48  ;;  %v9267_v60 = vld [vmem:[#allocation95_spill] sm:$0xff]  ;;  %v9268_v48 = vld [vmem:[#allocation96_spill] sm:$0xff] }
 0x88a   :  { %6434 = vmatpush3.msra.mxu1 %v9238_v5  ;;  %6472 = vmatpush3.msra.mxu0 %v9239_v62  ;;  %v9269_v5 = vld [vmem:[#allocation97_spill] sm:$0xff]  ;;  %v3607_v62 = vpop.f32.mrf.mxu1 }
 0x88b   :  { %6435 = vmatprep.subr.mxu1 %v9240_v40  ;;  %6473 = vmatprep.subr.mxu0 %v9241_v41 }
 0x88c   :  { %6436 = vmatpush3.msra.mxu1 %v9242_v34  ;;  %6474 = vmatpush3.msra.mxu0 %v9243_v20  ;;  %v3609_v40 = vpop.f32.mrf.mxu1 }
 0x88d   :  { %6437 = vmatprep.subr.mxu1 %v9244_v21  ;;  %6475 = vmatprep.subr.mxu0 %v9245_v23  ;;  %v8627_v21 = vld [vmem:[%s5933_s16] sm:$0xff]  ;;  %v9270_v23 = vld [vmem:[#allocation9_spill] sm:$0xff]  ;;  %s5908_s16 = sld [smem:[%s8904_s0 + %s7119_s12]]  }
 0x88e   :  { %6438 = vmatpush3.msra.mxu1 %v9246_v24  ;;  %6476 = vmatpush3.msra.mxu0 %v9247_v28  ;;  %v3613_v41 = vpop.f32.mrf.mxu1  ;;  %v3425_v24 = vrot.slane %v8627_v21, %v9270_v23  ;;  %v9271_v28 = vld [vmem:[#allocation10_spill] sm:$0xff] }
 0x88f   :  { %6439 = vmatprep.subr.mxu1 %v9248_v9  ;;  %6477 = vmatprep.subr.mxu0 %v9249_v10  ;;  %v3433_v9 = vrot.slane %v8627_v21, %v9271_v28 }
 0x890   :  { %6440 = vmatpush3.msra.mxu1 %v9250_v31  ;;  %6478 = vmatpush3.msra.mxu0 %v9251_v63  ;;  %v3615_v34 = vpop.f32.mrf.mxu1  ;;  %v9272_v31 = vld [vmem:[#allocation7_spill] sm:$0xff] }
 0x891   :  { %6441 = vmatprep.subr.mxu1 %v9252_v32  ;;  %6479 = vmatprep.subr.mxu0 %v9253_v51  ;;  %v3421_v63 = vrot.slane %v8627_v21, %v9272_v31  ;;  %v9273_v32 = vld [vmem:[#allocation8_spill] sm:$0xff] }
 0x892   :  { %6442 = vmatpush3.msra.mxu1 %v9254_v56  ;;  %6480 = vmatpush3.msra.mxu0 %v9255_v13  ;;  %v8625_v20 = vpop.f32.mrf.mxu1  ;;  %v3429_v51 = vrot.slane %v8627_v21, %v9273_v32  ;;  %v3533_v56 = vadd.f32 %v8514_v39, %v3425_v24  ;;  %v3610_v13 = vadd.f32 %v3609_v40, %v3433_v9 }
 0x893   :  { %6443 = vmatprep.subr.mxu1 %v9256_v55  ;;  %6481 = vmatprep.subr.mxu0 %v9257_v58  ;;  %v3531_v58 = vadd.f32 %v8512_v30, %v3421_v63  ;;  %v8647_v30 = vrot.slane %v8627_v21, %v7426_v25 }
 0x894   :  { %6444 = vmatpush3.msra.mxu1 %v9258_v6  ;;  %6482 = vmatpush3.msra.mxu0 %v9259_v49  ;;  %v3763_v10 = vpop.f32.mrf.mxu1  ;;  %v3608_v6 = vadd.f32 %v3607_v62, %v3429_v51  ;;  %v3789_v49 = vmul.f32 0.1, %v3533_v56  ;;  %vm3773_vm15 = vcmp.gt.f32.partialorder %v3533_v56, 0.0  ;;  %vm3775_vm3 = vcmp.gt.f32.partialorder %v3610_v13, 0.0 }
 0x895   :  { %6445 = vmatprep.subr.mxu1 %v9260_v17  ;;  %6483 = vmatprep.subr.mxu0 %v9261_v3  ;;  %v3791_v17 = vmul.f32 0.1, %v3610_v13  ;;  %v3539_v3 = vadd.f32 %v8518_v14, %v3425_v24  ;;  %vm3772_vm4 = vcmp.gt.f32.partialorder %v3531_v58, 0.0 }
 0x896   :  { %6446 = vmatpush3.msra.mxu1 %v9262_v16  ;;  %6484 = vmatpush3.msra.mxu0 %v9263_v61  ;;  %v8638_v55 = vpop.f32.mrf.mxu1  ;;  %v3616_v16 = vadd.f32 %v3615_v34, %v3433_v9  ;;  %vm3774_vm5 = vcmp.gt.f32.partialorder %v3608_v6, 0.0  ;;  %v3805_v34 = vsel %vm3773_vm15, %v3533_v56, %v3789_v49 }
 0x897   :  { %6447 = vmatprep.subr.mxu1 %v9264_v18  ;;  %6485 = vmatprep.subr.mxu0 %v9265_v19  ;;  %v3788_v18 = vmul.f32 0.1, %v3531_v58  ;;  %v3790_v19 = vmul.f32 0.1, %v3608_v6  ;;  %v3797_v62 = vmul.f32 0.1, %v3539_v3  ;;  %v3807_v24 = vsel %vm3775_vm3, %v3610_v13, %v3791_v17 }
 0x898   :  { %6448 = vmatpush3.msra.mxu1 %v9266_v7  ;;  %6486 = vmatpush3.msra.mxu0 %v9267_v60  ;;  %v8642_v61 = vpop.f32.mrf.mxu1  ;;  %v3537_v60 = vadd.f32 %v8516_v42, %v3421_v63  ;;  %v3799_v40 = vmul.f32 0.1, %v3616_v16  ;;  %vm3781_vm7 = vcmp.gt.f32.partialorder %v3539_v3, 0.0  ;;  %vm3783_vm8 = vcmp.gt.f32.partialorder %v3616_v16, 0.0 }
 0x899   :  { %6493 = vmatprep.subr.mxu1 %v9268_v48  ;;  %6531 = vmatprep.subr.mxu0 %v9269_v5  ;;  %v3614_v48 = vadd.f32 %v3613_v41, %v3429_v51  ;;  %v9274_v5 = vld [vmem:[#allocation11_spill] sm:$0xff]  ;;  %v3804_v9 = vsel %vm3772_vm4, %v3531_v58, %v3788_v18  ;;  %v3806_v31 = vsel %vm3774_vm5, %v3608_v6, %v3790_v19 }
 0x89a   :  { %v8651_v14 = vrot.slane %v8627_v21, %v9274_v5  ;;  %v3796_v25 = vmul.f32 0.1, %v3537_v60  ;;  %v3687_v51 = vadd.f32 %v8522_v43, %v8647_v30  ;;  %vm3780_vm9 = vcmp.gt.f32.partialorder %v3537_v60, 0.0 }
 0x89b   :  { %v3798_v63 = vmul.f32 0.1, %v3614_v48  ;;  %vm3782_vm10 = vcmp.gt.f32.partialorder %v3614_v48, 0.0  ;;  %v3813_v13 = vsel %vm3781_vm7, %v3539_v3, %v3797_v62  ;;  %v3815_v6 = vsel %vm3783_vm8, %v3616_v16, %v3799_v40  ;;  %v9290_v40 = vld [vmem:[#allocation13_spill] sm:$0xff] }
 0x89c   :  { %v3764_v5 = vadd.f32 %v3763_v10, %v8651_v14  ;;  %v3793_v10 = vmul.f32 0.1, %v3687_v51  ;;  %v3812_v18 = vsel %vm3780_vm9, %v3537_v60, %v3796_v25  ;;  %vm3777_vm11 = vcmp.gt.f32.partialorder %v3687_v51, 0.0  ;;  %v9288_v60 = vld [vmem:[#allocation111_spill] sm:$0xff] }
 0x89d   :  { %v3814_v19 = vsel %vm3782_vm10, %v3614_v48, %v3798_v63  ;;  %v9289_v48 = vld [vmem:[#allocation12_spill] sm:$0xff] }
 0x89e   :  { %vm3779_vm13 = vcmp.gt.f32.partialorder %v3764_v5, 0.0  ;;  %v3437_v62 = vrot.slane %v8627_v21, %v9289_v48  ;;  %v9299_v63 = vld [vmem:[#allocation120_spill] sm:$0xff] }
 0x8a0   :  { %v3685_v25 = vadd.f32 %v8520_v12, %v3437_v62 }
 0x8a2   :  { %vm3776_vm15 = vcmp.gt.f32.partialorder %v3685_v25, 0.0 }
 0x92b   :  { %v3967_v7 = vpop.f32.mrf.mxu1  ;;  %v4044_v39 = vpop.f32.mrf.mxu0 }
 0x92c   :  { %v4209_v42 = vmul.f32 %v3967_v7, %v3804_v9  ;;  %v4211_v41 = vmul.f32 %v4044_v39, %v3806_v31  ;;  %v9287_v39 = vld [vmem:[#allocation110_spill] sm:$0xff]  ;;  %v9294_v9 = vld [vmem:[#allocation115_spill] sm:$0xff]  ;;  %v9295_v31 = vld [vmem:[#allocation116_spill] sm:$0xff] }
 0x92d   :  { %v3969_v23 = vpop.f32.mrf.mxu1  ;;  %v4046_v28 = vpop.f32.mrf.mxu0 }
 0x92e   :  { %v4210_v32 = vmul.f32 %v3969_v23, %v3805_v34  ;;  %v4212_v53 = vmul.f32 %v4046_v28, %v3807_v24  ;;  %v3445_v34 = vrot.slane %v8627_v21, %v9290_v40  ;;  %v9291_v23 = vld [vmem:[#allocation112_spill] sm:$0xff]  ;;  %v9292_v24 = vld [vmem:[#allocation113_spill] sm:$0xff]  ;;  %v9293_v28 = vld [vmem:[#allocation114_spill] sm:$0xff] }
 0x92f   :  { %v4526_v40 = vld [vmem:[%s8721_s20 + $0x8] sm:$0xff] }
 0x930   :  { %v3973_v2 = vpop.f32.mrf.mxu1  ;;  %v4050_v56 = vpop.f32.mrf.mxu0  ;;  %4289 = vmatprep.mubr.f32.mxu1 %v4210_v32  ;;  %4364 = vmatprep.mubr.f32.mxu0 %v4212_v53  ;;  %v3795_v53 = vmul.f32 0.1, %v3764_v5  ;;  %v9296_v32 = vld [vmem:[#allocation117_spill] sm:$0xff]  ;;  %v3762_v21 = vadd.f32 %v8625_v20, %v3445_v34  ;;  %v9305_v20 = vld [vmem:[#allocation126_spill] sm:$0xff] }
 0x931   :  { %4290 = vmatmul.mubr.f32.vlgmr.msra.gmra.mxu1 %v4209_v42  ;;  %4365 = vmatmul.mubr.f32.vlgmr.msra.gmra.mxu0 %v4211_v41  ;;  %v4217_v3 = vmul.f32 %v3973_v2, %v3812_v18  ;;  %v9297_v42 = vld [vmem:[#allocation118_spill] sm:$0xff]  ;;  %v9298_v41 = vld [vmem:[#allocation119_spill] sm:$0xff] }
 0x932   :  { %v3975_v58 = vpop.f32.mrf.mxu1  ;;  %v4052_v49 = vpop.f32.mrf.mxu0  ;;  %6494 = vmatpush3.msra.mxu1 %v8109_v29  ;;  %6532 = vmatpush3.msra.mxu0 %v8113_v45  ;;  %v4219_v29 = vmul.f32 %v4050_v56, %v3814_v19  ;;  %v3811_v16 = vsel %vm3779_vm13, %v3764_v5, %v3795_v53  ;;  %v3693_v5 = vadd.f32 %v8526_v46, %v8647_v30  ;;  %v9301_v56 = vld [vmem:[#allocation122_spill] sm:$0xff]  ;;  %v9306_v46 = vld [vmem:[#allocation127_spill] sm:$0xff]  ;;  %v3792_v30 = vmul.f32 0.1, %v3685_v25  ;;  %v9308_v53 = vld [vmem:[#allocation129_spill] sm:$0xff] }
 0x933   :  { %v4218_v17 = vmul.f32 %v3975_v58, %v3813_v13  ;;  %v4220_v43 = vmul.f32 %v4052_v49, %v3815_v6  ;;  %6495 = vmatprep.subr.mxu1 %v8117_v54  ;;  %6533 = vmatprep.subr.mxu0 %v8121_v36  ;;  %v3809_v36 = vsel %vm3777_vm11, %v3687_v51, %v3793_v10  ;;  %v9300_v51 = vld [vmem:[#allocation121_spill] sm:$0xff]  ;;  %v9302_v13 = vld [vmem:[#allocation123_spill] sm:$0xff]  ;;  %v9303_v6 = vld [vmem:[#allocation124_spill] sm:$0xff]  ;;  %vm3778_vm3 = vcmp.gt.f32.partialorder %v3762_v21, 0.0 }
 0x934   :  { %6496 = vmatpush3.msra.mxu1 %v8127_v8  ;;  %6534 = vmatpush3.msra.mxu0 %v8131_v15  ;;  %v3770_v58 = vadd.f32 %v8642_v61, %v8651_v14  ;;  %v9304_v49 = vld [vmem:[#allocation125_spill] sm:$0xff]  ;;  %v3768_v61 = vadd.f32 %v8638_v55, %v3445_v34  ;;  %v9307_v10 = vld [vmem:[#allocation128_spill] sm:$0xff]  ;;  %v3801_v18 = vmul.f32 0.1, %v3693_v5  ;;  %v9309_v19 = vld [vmem:[#allocation130_spill] sm:$0xff]  ;;  %vm3785_vm4 = vcmp.gt.f32.partialorder %v3693_v5, 0.0 }
 0x935   :  { %4294 = vmatprep.mubr.f32.mxu1 %v4218_v17  ;;  %4369 = vmatprep.mubr.f32.mxu0 %v4220_v43  ;;  %v3794_v17 = vmul.f32 0.1, %v3762_v21  ;;  %v3691_v43 = vadd.f32 %v8524_v44, %v3437_v62  ;;  %v9313_v55 = vld [vmem:[#allocation134_spill] sm:$0xff]  ;;  %vm5119_vm11 = vcmask 523264  }
 0x936   :  { %v8664_v45 = vpop.f32.mrf.mxu1  ;;  %v8666_v54 = vpop.f32.mrf.mxu0  ;;  %6497 = vmatprep.subr.mxu1 %v8139_v59  ;;  %6535 = vmatprep.subr.mxu0 %v8143_v38  ;;  %v9275_v59 = vld [vmem:[#allocation98_spill] sm:$0xff]  ;;  %v9276_v38 = vld [vmem:[#allocation99_spill] sm:$0xff]  ;;  %vm3787_vm5 = vcmp.gt.f32.partialorder %v3770_v58, 0.0  ;;  %vm3786_vm7 = vcmp.gt.f32.partialorder %v3768_v61, 0.0 }
 0x937   :  { %4295 = vmatmul.mubr.f32.gmra.mxu1 %v4217_v3  ;;  %4370 = vmatmul.mubr.f32.gmra.mxu0 %v4219_v29  ;;  %v9310_v3 = vld [vmem:[#allocation131_spill] sm:$0xff]  ;;  %v3803_v29 = vmul.f32 0.1, %v3770_v58  ;;  %vm3784_vm8 = vcmp.gt.f32.partialorder %v3691_v43, 0.0  ;;  %v4525_v34 = vld [vmem:[%s8721_s20] sm:$0xff] }
 0x938   :  { %v4123_v8 = vpop.f32.mrf.mxu1  ;;  %v4200_v15 = vpop.f32.mrf.mxu0  ;;  %6498 = vmatpush3.msra.mxu1 %v8147_v37  ;;  %6536 = vmatpush3.msra.mxu0 %v8151_v22  ;;  %v9277_v37 = vld [vmem:[#allocation100_spill] sm:$0xff]  ;;  %v9278_v22 = vld [vmem:[#allocation101_spill] sm:$0xff] }
 0x939   :  { %v4214_v2 = vmul.f32 %v4123_v8, %v3809_v36  ;;  %v4216_v7 = vmul.f32 %v4200_v15, %v3811_v16  ;;  %6499 = vmatprep.subr.mxu1 %v8155_v1  ;;  %6537 = vmatprep.subr.mxu0 %v8159_v26  ;;  %v9279_v1 = vld [vmem:[#allocation102_spill] sm:$0xff]  ;;  %v9280_v26 = vld [vmem:[#allocation103_spill] sm:$0xff]  ;;  %v9311_v36 = vld [vmem:[#allocation132_spill] sm:$0xff]  ;;  %v3800_v15 = vmul.f32 0.1, %v3691_v43 }
 0x93a   :  { %6500 = vmatpush3.msra.mxu1 %v8163_v33  ;;  %6538 = vmatpush3.msra.mxu0 %v8167_v50  ;;  %v9281_v33 = vld [vmem:[#allocation104_spill] sm:$0xff]  ;;  %v9282_v50 = vld [vmem:[#allocation105_spill] sm:$0xff]  ;;  %v4127_v12 = vpop.f32.mrf.mxu1  ;;  %v4204_v14 = vpop.f32.mrf.mxu0  ;;  %v9314_v16 = vld [vmem:[#allocation135_spill] sm:$0xff] }
 0x93b   :  { %6501 = vmatprep.subr.mxu1 %v8171_v35  ;;  %4439 = vmatprep.mubr.f32.mxu1 %v4214_v2  ;;  %v9283_v35 = vld [vmem:[#allocation106_spill] sm:$0xff]  ;;  %v9312_v8 = vld [vmem:[#allocation133_spill] sm:$0xff]  ;;  %v3802_v2 = vmul.f32 0.1, %v3768_v61 }
 0x93c   :  { %6539 = vmatprep.subr.mxu0 %v8175_v11  ;;  %4514 = vmatprep.mubr.f32.mxu0 %v4216_v7  ;;  %v9284_v11 = vld [vmem:[#allocation107_spill] sm:$0xff]  ;;  %v4129_v44 = vpop.f32.mrf.mxu1  ;;  %v3808_v7 = vsel %vm3776_vm15, %v3685_v25, %v3792_v30 }
 0x93d   :  { %6502 = vmatpush3.msra.mxu1 %v8179_v47  ;;  %6540 = vmatpush3.msra.mxu0 %v8183_v4  ;;  %v9285_v47 = vld [vmem:[#allocation108_spill] sm:$0xff]  ;;  %v9286_v4 = vld [vmem:[#allocation109_spill] sm:$0xff] }
 0x93e   :  { %6503 = vmatprep.subr.mxu1 %v9275_v59  ;;  %6541 = vmatprep.subr.mxu0 %v9276_v38  ;;  %v3810_v59 = vsel %vm3778_vm3, %v3762_v21, %v3794_v17  ;;  %v4206_v38 = vpop.f32.mrf.mxu0 }
 0x93f   :  { %6504 = vmatpush3.msra.mxu1 %v9277_v37  ;;  %6542 = vmatpush3.msra.mxu0 %v9278_v22  ;;  %v9315_v37 = vld [vmem:[#allocation136_spill] sm:$0xff]  ;;  %v4213_v22 = vmul.f32 %v8664_v45, %v3808_v7  ;;  %v4528_v45 = vld [vmem:[%s8721_s20 + $0x18] sm:$0xff] }
 0x940   :  { %6505 = vmatprep.subr.mxu1 %v9279_v1  ;;  %6543 = vmatprep.subr.mxu0 %v9280_v26  ;;  %v4215_v1 = vmul.f32 %v8666_v54, %v3810_v59  ;;  %v3817_v26 = vsel %vm3785_vm4, %v3693_v5, %v3801_v18  ;;  %v3818_v54 = vsel %vm3786_vm7, %v3768_v61, %v3802_v2 }
 0x941   :  { %6506 = vmatpush3.msra.mxu1 %v9281_v33  ;;  %6544 = vmatpush3.msra.mxu0 %v9282_v50  ;;  %v9316_v33 = vld [vmem:[#allocation137_spill] sm:$0xff]  ;;  %v9317_v50 = vld [vmem:[#allocation138_spill] sm:$0xff]  ;;  %v4223_v48 = vmul.f32 %v4204_v14, %v3818_v54 }
 0x942   :  { %6507 = vmatprep.subr.mxu1 %v9283_v35  ;;  %6545 = vmatprep.subr.mxu0 %v9284_v11  ;;  %v4222_v35 = vmul.f32 %v4129_v44, %v3817_v26  ;;  %v3819_v11 = vsel %vm3787_vm5, %v3770_v58, %v3803_v29  ;;  %v9321_v44 = vld [vmem:[#allocation4_spill] sm:$0xff]  ;;  %v9322_v26 = vld [vmem:[#allocation5_spill] sm:$0xff] }
 0x943   :  { %6508 = vmatpush3.msra.mxu1 %v9285_v47  ;;  %6546 = vmatpush3.msra.mxu0 %v9286_v4  ;;  %v9318_v47 = vld [vmem:[#allocation139_spill] sm:$0xff]  ;;  %v4224_v4 = vmul.f32 %v4206_v38, %v3819_v11 }
 0x944   :  { %6509 = vmatprep.subr.mxu1 %v9287_v39  ;;  %6547 = vmatprep.subr.mxu0 %v9288_v60  ;;  %v4527_v39 = vld [vmem:[%s8721_s20 + $0x10] sm:$0xff]  ;;  %v3816_v60 = vsel %vm3784_vm8, %v3691_v43, %v3800_v15  ;;  %v6040_v15 = vld [vmem:[%s5935_s28] ss:$0 sm:$0xff]  ;;  %v4837_v11 = vld [vmem:[%s8782_s5 + $0x8] sm:$0xff]  ;;  %s5947_s20 = sld [smem:[%s8904_s0 + %s7120_s17]]  }
 0x945   :  { %6510 = vmatpush3.msra.mxu1 %v9291_v23  ;;  %6548 = vmatpush3.msra.mxu0 %v9292_v24  ;;  %v4221_v62 = vmul.f32 %v4127_v12, %v3816_v60  ;;  %v303_v23 = vld [vmem:[%s5907_s24 + $0x8] sm:$0xff]  ;;  %s5949_s28 = sld [smem:[%s8904_s0 + %s7122_s25]]  }
 0x946   :  { %6511 = vmatprep.subr.mxu1 %v9293_v28  ;;  %6549 = vmatprep.subr.mxu0 %v9294_v9 }
 0x947   :  { %6512 = vmatpush3.msra.mxu1 %v9295_v31  ;;  %6550 = vmatpush3.msra.mxu0 %v9296_v32 }
 0x948   :  { %6513 = vmatprep.subr.mxu1 %v9297_v42  ;;  %6551 = vmatprep.subr.mxu0 %v9298_v41 }
 0x949   :  { %6514 = vmatpush3.msra.mxu1 %v9299_v63  ;;  %6552 = vmatpush3.msra.mxu0 %v9300_v51 }
 0x94a   :  { %6515 = vmatprep.subr.mxu1 %v9301_v56  ;;  %6553 = vmatprep.subr.mxu0 %v9302_v13 }
 0x94b   :  { %6516 = vmatpush3.msra.mxu1 %v9303_v6  ;;  %6554 = vmatpush3.msra.mxu0 %v9304_v49 }
 0x94c   :  { %6517 = vmatprep.subr.mxu1 %v9305_v20  ;;  %6555 = vmatprep.subr.mxu0 %v9306_v46 }
 0x94d   :  { %6518 = vmatpush3.msra.mxu1 %v9307_v10  ;;  %6556 = vmatpush3.msra.mxu0 %v9308_v53 }
 0x94e   :  { %6519 = vmatprep.subr.mxu1 %v9309_v19  ;;  %6557 = vmatprep.subr.mxu0 %v9310_v3 }
 0x94f   :  { %6520 = vmatpush3.msra.mxu1 %v9311_v36  ;;  %6558 = vmatpush3.msra.mxu0 %v9312_v8  ;;  %v9320_v36 = vld [vmem:[#allocation14_spill] sm:$0xff] }
 0x950   :  { %6521 = vmatprep.subr.mxu1 %v9313_v55  ;;  %6559 = vmatprep.subr.mxu0 %v9314_v16 }
 0x951   :  { %6522 = vmatpush3.msra.mxu1 %v8365_v0  ;;  %6560 = vmatpush3.msra.mxu0 %v9315_v37  ;;  %v9319_v0 = vld [vmem:[#allocation140_spill] sm:$0xff]  ;;  %v4843_v37 = vld [vmem:[%s8777_s1 + $0x18] sm:$0xff] }
 0x952   :  { %6523 = vmatprep.subr.mxu1 %v9316_v33  ;;  %6561 = vmatprep.subr.mxu0 %v9317_v50  ;;  %v4842_v33 = vld [vmem:[%s8777_s1 + $0x10] sm:$0xff] }
 0x953   :  { %6524 = vmatpush3.msra.mxu1 %v9318_v47  ;;  %6562 = vmatpush3.msra.mxu0 %v9319_v0  ;;  %v4838_v50 = vld [vmem:[%s8782_s5 + $0x10] sm:$0xff]  ;;  %v4840_v47 = vld [vmem:[%s8777_s1] sm:$0xff] }
 0x954   :  { %4440 = vmatmul.mubr.f32.vlgmr.msra.gmra.mxu1 %v4213_v22  ;;  %4515 = vmatmul.mubr.f32.vlgmr.msra.gmra.mxu0 %v4215_v1  ;;  %v4839_v22 = vld [vmem:[%s8782_s5 + $0x18] sm:$0xff]  ;;  %v4836_v0 = vld [vmem:[%s8782_s5] sm:$0xff]  ;;  %s5950_s5 = sld [smem:[%s8904_s0 + %s7124_s2]]  }
 0x955   :  { %6717 = vmatprep.subr.mxu1 %v9186_v57  ;;  %4444 = vmatprep.mubr.f32.mxu1 %v4222_v35  ;;  %v4841_v35 = vld [vmem:[%s8777_s1 + $0x8] sm:$0xff]  ;;  %s5951_s1 = sld [smem:[%s8904_s0 + %s7123_s29]]  }
 0x956   :  { %4519 = vmatprep.mubr.f32.mxu0 %v4224_v4  ;;  %6718 = vmatpush3.msra.mxu1 %v4528_v45  ;;  %v5008_v45 = vld [vmem:[%s5938_s9 + $0x10] sm:$0x7] }
 0x957   :  { %6719 = vmatprep.subr.mxu1 %v9186_v57 }
 0x958   :  { %6720 = vmatpush3.msra.mxu1 %v4527_v39  ;;  %4520 = vmatmul.mubr.f32.gmra.mxu0 %v4223_v48  ;;  %v5007_v48 = vld [vmem:[%s5938_s9 + $0x8] sm:$0xff] }
 0x959   :  { %4445 = vmatmul.mubr.f32.gmra.mxu1 %v4221_v62  ;;  %6721 = vmatprep.subr.mxu1 %v9186_v57  ;;  %v5006_v62 = vld [vmem:[%s5938_s9] sm:$0xff]  ;;  %s5952_s9 = sld [smem:[%s8904_s0 + %s7125_s6]]  }
 0x95a   :  { %6722 = vmatpush3.msra.mxu1 %v4526_v40  ;;  %6737 = vmatprep.mubr.msk.f32.mxu0 %vm1029_vm6, %v7237_v52  ;;  %v302_v52 = vld [vmem:[%s5907_s24] sm:$0xff]  ;;  %s5948_s24 = sld [smem:[%s8904_s0 + %s7121_s21]]  }
 0x95b   :  { %6723 = vmatprep.subr.mxu1 %v9186_v57  ;;  %6725 = vmatprep.mubr.msk.f32.mxu1 %vm7093_vm12, %v9186_v57  ;;  %v9323_v40 = vld [vmem:[#allocation2_spill] sm:$0xff] }
 0x95c   :  { %6724 = vmatpush3.msra.mxu1 %v4525_v34  ;;  %305 = vperm.xlu1 %6906, %v302_v52   ;;  %v9324_v34 = vld [vmem:[#allocation3_spill] sm:$0xff]  ;;  %v5111_v52 = vld [vmem:[%s5940_s13 + $0x38] sm:$0xff] }
 0x95d   :  { %6726 = vmatmul.mubr.msk.f32.vlgmr.msra.gmra.mxu1 %vm245_vm2, %v8496_v27  ;;  %6728 = vmatprep.subr.mxu1 %v9186_v57 }
 0x95e   :  { %6732 = vmatprep.mubr.msk.f32.mxu1 %vm7093_vm12, %v9186_v57 }
 0x960   :  { %308 = vperm.xlu1 %6906, %v303_v23   ;;  %v5110_v23 = vld [vmem:[%s5940_s13 + $0x30] sm:$0xff] }
 0x9d7   :  { %v306_v8 = vpop.permute.xlu1 %305 }
 0x9d8   :  { %vm310_vm9 = vcmp.eq.s32.totalorder %v306_v8, %v9321_v44 }
 0x9d9   :  { %v5960_v55 = vsel %vm310_vm9, 1.0, %v9186_v57  ;;  %vm5645_vm9 = vcmask 15360  }
 0x9db   :  { %v309_v2 = vpop.permute.xlu1 %308 }
 0x9dc   :  { %vm311_vm10 = vcmp.eq.s32.totalorder %v309_v2, %v9321_v44  ;;  %v6056_v2 = vld [vmem:[%s5943_s3] ss:$0 sm:$0xff] }
 0x9dd   :  { %v5961_v1 = vsel %vm311_vm10, 1.0, %v9186_v57 }
 0x9f1   :  { %v6449_v24 = vpop.f32.mrf.mxu1  ;;  %v6487_v28 = vpop.f32.mrf.mxu0 }
 0x9f3   :  { %v6450_v9 = vpop.f32.mrf.mxu1  ;;  %v6488_v31 = vpop.f32.mrf.mxu0 }
 0x9f4   :  { %v6451_v5 = vadd.f32 %v6450_v9, %v6449_v24  ;;  %v6489_v56 = vadd.f32 %v6488_v31, %v6487_v28  ;;  %v5109_v24 = vld [vmem:[%s5940_s13 + $0x28] sm:$0xff]  ;;  %v5108_v28 = vld [vmem:[%s5940_s13 + $0x20] sm:$0xff]  ;;  %v5107_v9 = vld [vmem:[%s5940_s13 + $0x18] sm:$0xff] }
 0x9f5   :  { %v5106_v31 = vld [vmem:[%s5940_s13 + $0x10] sm:$0xff] }
 0x9f6   :  { %v4367_v30 = vadd.f32 %v6489_v56, %v6451_v5  ;;  %v6052_v5 = vld [vmem:[%s5939_s18] ss:$0 sm:$0xff] }
 0x9f7   :  { %v6452_v32 = vpop.f32.mrf.mxu1  ;;  %v6490_v27 = vpop.f32.mrf.mxu0 }
 0x9f9   :  { %v6453_v42 = vpop.f32.mrf.mxu1  ;;  %v6491_v41 = vpop.f32.mrf.mxu0 }
 0x9fa   :  { %v6454_v13 = vadd.f32 %v6453_v42, %v6452_v32  ;;  %v6492_v58 = vadd.f32 %v6491_v41, %v6490_v27  ;;  %v5105_v32 = vld [vmem:[%s5940_s13 + $0x8] sm:$0xff]  ;;  %v5104_v27 = vld [vmem:[%s5940_s13] sm:$0xff]  ;;  %s5953_s13 = sld [smem:[%s8904_s0 + %s7126_s10]]  }
 0x9fc   :  { %v4372_v17 = vadd.f32 %v6492_v58, %v6454_v13 }
 0xa14   :  { %v6525_v25 = vpop.f32.mrf.mxu1  ;;  %v6563_v21 = vpop.f32.mrf.mxu0 }
 0xa16   :  { %v6526_v63 = vpop.f32.mrf.mxu1  ;;  %v6564_v51 = vpop.f32.mrf.mxu0 }
 0xa17   :  { %v6527_v12 = vadd.f32 %v6526_v63, %v6525_v25  ;;  %v6565_v19 = vadd.f32 %v6564_v51, %v6563_v21 }
 0xa18   :  { %v6566_v6 = vpop.f32.mrf.mxu0 }
 0xa19   :  { %v6528_v49 = vpop.f32.mrf.mxu1  ;;  %v4442_v14 = vadd.f32 %v6527_v12, %v4367_v30 }
 0xa1a   :  { %v6567_v46 = vpop.f32.mrf.mxu0 }
 0xa1b   :  { %v6529_v20 = vpop.f32.mrf.mxu1  ;;  %v6568_v53 = vadd.f32 %v6567_v46, %v6566_v6  ;;  %v4517_v29 = vadd.f32 %v6565_v19, %v4442_v14  ;;  %v5208_v14 = vld [vmem:[%s5942_s22 + $0x8] sm:$0xff] }
 0xa1c   :  { %v6530_v43 = vadd.f32 %v6529_v20, %v6528_v49 }
 0xa1d   :  { %v4598_v61 = vpop.f32.mrf.mxu1 }
 0xa1e   :  { %v4447_v10 = vadd.f32 %v6530_v43, %v4372_v17  ;;  %v5210_v43 = vld [vmem:[%s5942_s22 + $0x18] sm:$0xff] }
 0xa1f   :  { %v6727_v18 = vpop.f32.mrf.mxu1 }
 0xa20   :  { %v4522_v3 = vadd.f32 %v6568_v53, %v4447_v10  ;;  %v5207_v10 = vld [vmem:[%s5942_s22] sm:$0xff] }
 0xa21   :  { %v6053_v53 = vld [vmem:[%s5941_s26] ss:$0 sm:$0xff] }
 0xa22   :  { %6729 = vmatpush3.msra.mxu1 %v4522_v3 }
 0xa23   :  { %6730 = vmatprep.subr.mxu1 %v9186_v57 }
 0xa24   :  { %6731 = vmatpush3.msra.mxu1 %v4517_v29 }
 0xa25   :  { %6733 = vmatmul.mubr.msk.f32.vlgmr.msra.gmra.mxu1 %vm1818_vm14, %v9320_v36 }
 0xa26   :  { %6742 = vmatprep.mubr.msk.f32.mxu1 %vm1029_vm6, %v5960_v55 }
 0xae5   :  { %v4668_v16 = vpop.f32.mrf.mxu1 }
 0xae6   :  { %v4669_v7 = vadd.f32 %v4668_v16, %v4598_v61  ;;  %v5209_v61 = vld [vmem:[%s5942_s22 + $0x10] sm:$0xff]  ;;  %v5306_v16 = vld [vmem:[%s5944_s30 + $0x8] sm:$0xff] }
 0xae7   :  { %v6734_v59 = vpop.f32.mrf.mxu1 }
 0xae8   :  { %v4679_v38 = vadd.f32 %v6040_v15, %v4669_v7  ;;  %v5305_v15 = vld [vmem:[%s5944_s30] sm:$0xff] }
 0xaea   :  { %6735 = vmatprep.subr.mxu0 %v4679_v38  ;;  %6740 = vmatprep.subr.mxu1 %v4679_v38 }
 0xaeb   :  { %6736 = vmatpush3.msra.mxu0 %v4679_v38  ;;  %6741 = vmatpush3.msra.mxu1 %v4679_v38 }
 0xaec   :  { %6738 = vmatmul.mubr.msk.f32.vlgmr.msra.gmra.mxu0 %vm1029_vm6, %v9322_v26  ;;  %6743 = vmatmul.mubr.msk.f32.vlgmr.msra.gmra.mxu1 %vm1029_vm6, %v5961_v1 }
 0xaed   :  { %6745 = vmatprep.subr.mxu0 %v4843_v37  ;;  %6756 = vmatprep.subr.mxu1 %v4839_v22 }
 0xaee   :  { %6746 = vmatpush3.msra.mxu0 %v4843_v37  ;;  %6757 = vmatpush3.msra.mxu1 %v4839_v22 }
 0xaef   :  { %6747 = vmatprep.subr.mxu0 %v4842_v33  ;;  %6758 = vmatprep.subr.mxu1 %v4838_v50 }
 0xaf0   :  { %6748 = vmatpush3.msra.mxu0 %v4842_v33  ;;  %6759 = vmatpush3.msra.mxu1 %v4838_v50  ;;  %v5401_v50 = vld [vmem:[%s5946_s7] sm:$0xff] }
 0xaf1   :  { %6749 = vmatprep.subr.mxu0 %v4841_v35  ;;  %6760 = vmatprep.subr.mxu1 %v4837_v11 }
 0xaf2   :  { %6750 = vmatpush3.msra.mxu0 %v4841_v35  ;;  %6761 = vmatpush3.msra.mxu1 %v4837_v11  ;;  %v6059_v35 = vld [vmem:[%s5945_s11] ss:$0 sm:$0xff] }
 0xaf3   :  { %6751 = vmatprep.subr.mxu0 %v4840_v47  ;;  %6762 = vmatprep.subr.mxu1 %v4836_v0 }
 0xaf4   :  { %6752 = vmatpush3.msra.mxu0 %v4840_v47  ;;  %6763 = vmatpush3.msra.mxu1 %v4836_v0 }
 0xaf5   :  { %6767 = vmatprep.subr.msk.mxu0 %vm508_vm0, %v5008_v45  ;;  %6776 = vmatprep.subr.mxu1 %v5111_v52 }
 0xbac   :  { %v6739_v4 = vpop.f32.mrf.mxu0  ;;  %v8801_v54 = vpop.f32.mrf.mxu1 }
 0xbae   :  { %v4746_v39 = vpop.f32.mrf.mxu0  ;;  %v8803_v60 = vpop.f32.mrf.mxu1 }
 0xbaf   :  { %6753 = vmatprep.mubr.msk.f32.mxu0 %vm245_vm2, %v8803_v60  ;;  %6764 = vmatprep.mubr.msk.f32.mxu1 %vm245_vm2, %v4746_v39 }
 0xbb0   :  { %6754 = vmatmul.mubr.msk.f32.vlgmr.msra.gmra.mxu0 %vm245_vm2, %v8801_v54  ;;  %6765 = vmatmul.mubr.msk.f32.vlgmr.msra.gmra.mxu1 %vm245_vm2, %v6739_v4 }
 0xbb1   :  { %6768 = vmatpush3.msk.msra.mxu0 %vm508_vm0, %v5008_v45  ;;  %6773 = vmatprep.mubr.msk.f32.mxu0 %vm196_vm1, %v9323_v40 }
 0xbb2   :  { %6769 = vmatprep.subr.mxu0 %v5007_v48  ;;  %6777 = vmatpush3.msra.mxu1 %v5111_v52  ;;  %v6062_v52 = vld [vmem:[%s5947_s20] ss:$0 sm:$0xff] }
 0xbb3   :  { %6770 = vmatpush3.msra.mxu0 %v5007_v48  ;;  %6778 = vmatprep.subr.mxu1 %v5110_v23  ;;  %v5964_v48 = vld [vmem:[%s5908_s16] ss:$0 sm:$0xff] }
 0xbb4   :  { %6771 = vmatprep.subr.mxu0 %v5006_v62  ;;  %6779 = vmatpush3.msra.mxu1 %v5110_v23 }
 0xbb5   :  { %6772 = vmatpush3.msra.mxu0 %v5006_v62  ;;  %6780 = vmatprep.subr.mxu1 %v5109_v24  ;;  %v9325_v62 = vld [vmem:[#allocation6_spill] sm:$0xff] }
 0xbb6   :  { %6774 = vmatmul.mubr.msk.f32.vlgmr.msra.gmra.mxu0 %vm196_vm1, %v9324_v34  ;;  %6781 = vmatpush3.msra.mxu1 %v5109_v24  ;;  %vm329_vm8 = vcmp.eq.s32.totalorder %v5964_v48, %v9325_v62 }
 0xbb7   :  { %6782 = vmatprep.subr.mxu1 %v5108_v28  ;;  %6795 = vmatprep.subr.mxu0 %v5210_v43  ;;  %v5965_v40 = vsel %vm329_vm8, 1.0, %v9186_v57 }
 0xbb8   :  { %6783 = vmatpush3.msra.mxu1 %v5108_v28  ;;  %6796 = vmatpush3.msra.mxu0 %v5210_v43  ;;  %v5490_v34 = vsel %vm1818_vm14, %v5965_v40, 0.0 }
 0xbb9   :  { %6784 = vmatprep.subr.mxu1 %v5107_v9  ;;  %6797 = vmatprep.subr.mxu0 %v5209_v61 }
 0xbba   :  { %6785 = vmatpush3.msra.mxu1 %v5107_v9  ;;  %6798 = vmatpush3.msra.mxu0 %v5209_v61 }
 0xbbb   :  { %6786 = vmatprep.subr.mxu1 %v5106_v31  ;;  %6799 = vmatprep.subr.mxu0 %v5208_v14 }
 0xbbc   :  { %6787 = vmatpush3.msra.mxu1 %v5106_v31  ;;  %6800 = vmatpush3.msra.mxu0 %v5208_v14  ;;  %v5643_v31 = vld [vmem:[%s5948_s24 + $0x18] sm:$0xff] }
 0xbbd   :  { %6788 = vmatprep.subr.mxu1 %v5105_v32  ;;  %6801 = vmatprep.subr.mxu0 %v5207_v10 }
 0xbbe   :  { %6789 = vmatpush3.msra.mxu1 %v5105_v32  ;;  %6802 = vmatpush3.msra.mxu0 %v5207_v10  ;;  %v5642_v32 = vld [vmem:[%s5948_s24 + $0x10] sm:$0xff] }
 0xbbf   :  { %6790 = vmatprep.subr.mxu1 %v5104_v27  ;;  %6806 = vmatprep.subr.mxu0 %v5306_v16 }
 0xbc0   :  { %6791 = vmatpush3.msra.mxu1 %v5104_v27  ;;  %5491 = vadd.xlane.f32.xlu0 %v5490_v34 }
 0xbc1   :  { %6813 = vmatprep.subr.mxu1 %v5401_v50 }
 0xc49   :  { %v5492_v27 = vpop.xlane.xlu0 %5491 }
 0xc70   :  { %v6755_v42 = vpop.f32.mrf.mxu0  ;;  %v6766_v41 = vpop.f32.mrf.mxu1 }
 0xc71   :  { %v5003_v63 = vadd.f32 %v6766_v41, %v6755_v42  ;;  %v5493_v42 = vmax.f32 %v5492_v27, 1.0 }
 0xc72   :  { %v4916_v25 = vpop.f32.mrf.mxu0  ;;  %v4997_v21 = vpop.f32.mrf.mxu1 }
 0xc73   :  { %v4998_v56 = vadd.f32 %v4997_v21, %v4916_v25  ;;  %6911 = vrcp.f32 %v5493_v42  ;;  %v5641_v25 = vld [vmem:[%s5948_s24 + $0x8] sm:$0xff] }
 0xc76   :  { %v6775_v51 = vpop.f32.mrf.mxu0 }
 0xc77   :  { %v5088_v13 = vadd.f32 %v6775_v51, %v5003_v63  ;;  %v5640_v51 = vld [vmem:[%s5948_s24] sm:$0xff] }
 0xc78   :  { %v5078_v58 = vpop.f32.mrf.mxu0 }
 0xc79   :  { %v5097_v6 = vadd.f32 %v6052_v5, %v5088_v13  ;;  %v5087_v49 = vadd.f32 %v5078_v58, %v4998_v56  ;;  %v5644_v56 = vld [vmem:[%s5949_s28] sm:$0x3] }
 0xc7b   :  { %v5096_v12 = vadd.f32 %v6052_v5, %v5087_v49  ;;  %v5101_v20 = vmul.f32 0.1, %v5097_v6  ;;  %vm5099_vm0 = vcmp.gt.f32.partialorder %v5097_v6, 0.0 }
 0xc7d   :  { %v5100_v46 = vmul.f32 0.1, %v5096_v12  ;;  %vm5098_vm1 = vcmp.gt.f32.partialorder %v5096_v12, 0.0  ;;  %v5103_v17 = vsel %vm5099_vm0, %v5097_v6, %v5101_v20  ;;  %v5808_v20 = vld [vmem:[%s5951_s1 + $0x8] sm:$0xff] }
 0xc7f   :  { %v5102_v30 = vsel %vm5098_vm1, %v5096_v12, %v5100_v46  ;;  %v5807_v46 = vld [vmem:[%s5951_s1] sm:$0xff] }
 0xc80   :  { %6792 = vmatprep.mubr.msk.f32.mxu1 %vm5119_vm11, %v5102_v30  ;;  %v6912_v41 = vpop.eup %6911 }
 0xc81   :  { %6793 = vmatmul.mubr.msk.f32.vlgmr.msra.gmra.mxu1 %vm5119_vm11, %v5103_v17  ;;  %v6070_v17 = vld [vmem:[%s5950_s5] ss:$0 sm:$0xff] }
 0xc82   :  { %6814 = vmatpush3.msra.mxu1 %v5401_v50 }
 0xc83   :  { %6825 = vmatprep.subr.mxu1 %v9186_v57 }
 0xd41   :  { %v6794_v18 = vpop.f32.mrf.mxu1 }
 0xd42   :  { %v5198_v19 = vadd.f32 %v6794_v18, %v6053_v53 }
 0xd43   :  { %v5192_v3 = vpop.f32.mrf.mxu1 }
 0xd44   :  { %v5193_v29 = vadd.f32 %v6053_v53, %v5192_v3  ;;  %v5204_v36 = vmul.f32 0.1, %v5198_v19  ;;  %vm5202_vm13 = vcmp.gt.f32.partialorder %v5198_v19, 0.0 }
 0xd46   :  { %vm5201_vm15 = vcmp.gt.f32.partialorder %v5193_v29, 0.0  ;;  %v5203_v8 = vmul.f32 0.1, %v5193_v29  ;;  %v5206_v55 = vsel %vm5202_vm13, %v5198_v19, %v5204_v36 }
 0xd48   :  { %v5205_v44 = vsel %vm5201_vm15, %v5193_v29, %v5203_v8 }
 0xd49   :  { %6803 = vmatprep.mubr.msk.f32.mxu0 %vm245_vm2, %v5205_v44 }
 0xd4a   :  { %6804 = vmatmul.mubr.msk.f32.vlgmr.msra.gmra.mxu0 %vm245_vm2, %v5206_v55 }
 0xd4b   :  { %6807 = vmatpush3.msra.mxu0 %v5306_v16 }
 0xd4c   :  { %6808 = vmatprep.subr.mxu0 %v5305_v15 }
 0xd4d   :  { %6809 = vmatpush3.msra.mxu0 %v5305_v15 }
 0xd4e   :  { %6818 = vmatprep.subr.mxu0 %v9186_v57 }
 0xe0a   :  { %v6805_v7 = vpop.f32.mrf.mxu0 }
 0xe0b   :  { %v5296_v59 = vadd.f32 %v6805_v7, %v6056_v2 }
 0xe0c   :  { %v5290_v38 = vpop.f32.mrf.mxu0 }
 0xe0d   :  { %v5291_v37 = vadd.f32 %v6056_v2, %v5290_v38  ;;  %v5302_v22 = vmul.f32 0.1, %v5296_v59  ;;  %vm5300_vm3 = vcmp.gt.f32.partialorder %v5296_v59, 0.0 }
 0xe0f   :  { %vm5299_vm4 = vcmp.gt.f32.partialorder %v5291_v37, 0.0  ;;  %v5301_v1 = vmul.f32 0.1, %v5291_v37  ;;  %v5304_v33 = vsel %vm5300_vm3, %v5296_v59, %v5302_v22 }
 0xe11   :  { %v5303_v26 = vsel %vm5299_vm4, %v5291_v37, %v5301_v1 }
 0xe12   :  { %6810 = vmatprep.mubr.msk.f32.mxu0 %vm1818_vm14, %v5303_v26 }
 0xe13   :  { %6811 = vmatmul.mubr.msk.f32.vlgmr.msra.gmra.mxu0 %vm1818_vm14, %v5304_v33 }
 0xe14   :  { %6819 = vmatpush3.msra.mxu0 %v8801_v54  ;;  %6822 = vmatprep.mubr.msk.f32.mxu0 %vm7093_vm12, %v9186_v57 }
 0xe15   :  { %6820 = vmatprep.subr.mxu0 %v9186_v57 }
 0xe16   :  { %6821 = vmatpush3.msra.mxu0 %v8803_v60 }
 0xe17   :  { %6832 = vmatprep.subr.mxu0 %v9186_v57  ;;  %6823 = vmatmul.mubr.msk.f32.vlgmr.msra.gmra.mxu0 %vm1818_vm14, %v5965_v40 }
 0xe18   :  { %6834 = vmatprep.mubr.msk.f32.mxu0 %vm7093_vm12, %v9186_v57 }
 0xed3   :  { %v6812_v11 = vpop.f32.mrf.mxu0 }
 0xed4   :  { %v5392_v47 = vadd.f32 %v6812_v11, %v6059_v35 }
 0xed5   :  { %v5386_v0 = vpop.f32.mrf.mxu0 }
 0xed6   :  { %v5387_v45 = vadd.f32 %v6059_v35, %v5386_v0  ;;  %v5398_v4 = vmul.f32 0.1, %v5392_v47  ;;  %vm5396_vm5 = vcmp.gt.f32.partialorder %v5392_v47, 0.0 }
 0xed7   :  { %v5564_v21 = vpop.f32.mrf.mxu0 }
 0xed8   :  { %vm5395_vm7 = vcmp.gt.f32.partialorder %v5387_v45, 0.0  ;;  %v5397_v54 = vmul.f32 0.1, %v5387_v45  ;;  %v5400_v60 = vsel %vm5396_vm5, %v5392_v47, %v5398_v4  ;;  %v5568_v63 = vmul.f32 %v6912_v41, %v5564_v21 }
 0xed9   :  { %v6824_v5 = vpop.f32.mrf.mxu0 }
 0xeda   :  { %v5399_v39 = vsel %vm5395_vm7, %v5387_v45, %v5397_v54 }
 0xedb   :  { %6815 = vmatprep.mubr.msk.f32.mxu1 %vm1029_vm6, %v5399_v39 }
 0xedc   :  { %6816 = vmatmul.mubr.msk.f32.vlgmr.msra.gmra.mxu1 %vm1029_vm6, %v5400_v60  ;;  %vm5649_vm6 = vcmask 1041408  }
 0xedd   :  { %6829 = vmatprep.mubr.msk.f32.mxu1 %vm7093_vm12, %v9186_v57  ;;  %6833 = vmatpush3.msk.msra.mxu0 %vm5649_vm6, %v5644_v56 }
 0xede   :  { %6848 = vmatprep.subr.mxu0 %v9186_v57 }
 0xf9c   :  { %v6817_v23 = vpop.f32.mrf.mxu1 }
 0xf9d   :  { %v5487_v24 = vadd.f32 %v6817_v23, %v6062_v52 }
 0xf9e   :  { %v5481_v28 = vpop.f32.mrf.mxu1 }
 0xf9f   :  { %v5482_v9 = vadd.f32 %v6062_v52, %v5481_v28  ;;  %6826 = vmatpush3.msra.mxu1 %v5487_v24 }
 0xfa0   :  { %6827 = vmatprep.subr.mxu1 %v9186_v57 }
 0xfa1   :  { %6828 = vmatpush3.msra.mxu1 %v5482_v9 }
 0xfa2   :  { %6830 = vmatmul.mubr.msk.f32.vlgmr.msra.gmra.mxu1 %vm1818_vm14, %v5965_v40  ;;  %6837 = vmatprep.subr.mxu1 %v9186_v57 }
 0xfa3   :  { %6838 = vmatpush3.msra.mxu1 %v5643_v31  ;;  %6845 = vmatprep.mubr.msk.f32.mxu1 %vm7093_vm12, %v9186_v57 }
 0xfa4   :  { %6839 = vmatprep.subr.mxu1 %v9186_v57 }
 0xfa5   :  { %6840 = vmatpush3.msra.mxu1 %v5642_v32 }
 0xfa6   :  { %6841 = vmatprep.subr.mxu1 %v9186_v57 }
 0xfa7   :  { %6842 = vmatpush3.msra.mxu1 %v5641_v25 }
 0xfa8   :  { %6843 = vmatprep.subr.mxu1 %v9186_v57 }
 0xfa9   :  { %6844 = vmatpush3.msra.mxu1 %v5640_v51 }
 0xfaa   :  { %6846 = vmatmul.mubr.msk.f32.vlgmr.msra.gmra.mxu1 %vm245_vm2, %v5568_v63 }
0x1062   :  { %v5635_v13 = vpop.f32.mrf.mxu1 }
0x1063   :  { %v5639_v58 = vmul.f32 %v6912_v41, %v5635_v13 }
0x1064   :  { %v6831_v6 = vpop.f32.mrf.mxu1 }
0x1065   :  { %6835 = vmatmul.mubr.msk.f32.vlgmr.msra.gmra.mxu0 %vm5645_vm9, %v5639_v58 }
0x1066   :  { %6852 = vmatprep.mubr.msk.f32.mxu0 %vm7093_vm12, %v9186_v57  ;;  %6849 = vmatpush3.msra.mxu0 %v5808_v20 }
0x1067   :  { %6850 = vmatprep.subr.mxu0 %v9186_v57  ;;  %v6071_v57 = vld [vmem:[%s5952_s9] ss:$0 sm:$0xff] }
0x1068   :  { %6851 = vmatpush3.msra.mxu0 %v5807_v46 }
0x106a   :  { %v5792_v49 = vpop.f32.mrf.mxu1 }
0x106c   :  { %v6847_v12 = vpop.f32.mrf.mxu1 }
0x1125   :  { %v5719_v30 = vpop.f32.mrf.mxu0 }
0x1126   :  { %v5793_v43 = vadd.f32 %v5792_v49, %v5719_v30 }
0x1127   :  { %v6836_v61 = vpop.f32.mrf.mxu0 }
0x1128   :  { %v5803_v14 = vadd.f32 %v6070_v17, %v5793_v43 }
0x112a   :  { %vm5804_vm2 = vcmp.gt.f32.partialorder %v5803_v14, 0.0  ;;  %v5805_v10 = vmul.f32 0.12, %v5803_v14 }
0x112c   :  { %v5806_v53 = vsel %vm5804_vm2, %v5803_v14, %v5805_v10 }
0x112d   :  { %6853 = vmatmul.mubr.msk.f32.vlgmr.msra.gmra.mxu0 %vm1818_vm14, %v5806_v53 }
0x11ed   :  { %v5885_v18 = vpop.f32.mrf.mxu0 }
0x11ee   :  { %v5886_v19 = vadd.f32 %v6071_v57, %v5885_v18 }
0x11ef   :  { %v6854_v3 = vpop.f32.mrf.mxu0 }
0x11f0   :  { %v5889_v29 = vsel %vm5645_vm9, %v5886_v19, -inf }
0x11f1   :  { %5890 = vmax.xlane.f32.xlu1 %v5889_v29 }
0x127a   :  { %v5891_v36 = vpop.xlane.xlu1 %5890 }
0x127b   :  { %v5892_v8 = vsub.f32 %v5886_v19, %v5891_v36 }
0x127d   :  { %v5893_v44 = vmul.f32 1.442695, %v5892_v8 }
0x127f   :  { %6913 = vpow2.f32 %v5893_v44 }
0x128c   :  { %v6914_v55 = vpop.eup %6913 }
0x128d   :  { %v5895_v16 = vsel %vm5645_vm9, %v6914_v55, 0.0 }
0x128e   :  { %5896 = vadd.xlane.f32.xlu0 %v5895_v16 }
0x1317   :  { %v5897_v15 = vpop.xlane.xlu0 %5896 }
0x1318   :  { %6915 = vlog2.f32 %v5897_v15 }
0x1325   :  { %v6916_v2 = vpop.eup %6915 }
0x1326   :  { %v5899_v7 = vmul.f32 0.6931472, %v6916_v2 }
0x1328   :  { %v5900_v59 = vadd.f32 %v5899_v7, %v5891_v36 }
0x132a   :  { %v5901_v38 = vsub.f32 %v5886_v19, %v5900_v59 }
0x132c   :  { %5902 = vst.msk [vmem:[%s5953_s13] sm:$0xff] %vm5645_vm9, %v5901_v38 }

</bundles_post_ra>
